<compile_context>
chip_gen: v7x
topology: tpu7x:2x2x1
jax: 0.10.0
libtpu: 0.0.40
codegen_flags: <defaults>
</compile_context>

<pallas_src>
import math
import functools

import jax
import jax.numpy as jnp
from jax.experimental import pallas as pl
from jax.experimental.pallas import tpu as pltpu


def encoder_kernel(xfull_ref, xq_ref,
                   wq_ref, bq_ref, wkv_ref, bkv_ref, wo_ref, bo_ref,
                   g1_ref, beta1_ref,
                   w1_ref, b1_ref, w2_ref, b2_ref,
                   g2_ref, beta2_ref,
                   o_ref,
                   k_cache, v_cache, att_scratch,
                   *, h, q_dim, v_dim):
    hq = h * q_dim

    # ---- K/V cache fill: once per batch element (seq-tile axis is "arbitrary",
    #      grid iterates t = 0..T-1 for each b, so the fill runs at t == 0). ----
    @pl.when(pl.program_id(1) == 0)
    def _fill_kv():
        xb = xfull_ref[...].astype(jnp.bfloat16)                       # (S, D)
        # Fused K+V projection: one N = h*q + h*v matmul (f32 accumulate).
        kv = (jnp.dot(xb, wkv_ref[...], preferred_element_type=jnp.float32)
              + bkv_ref[...])                                          # (S, h*q + h*v)
        kvb = kv.astype(jnp.bfloat16)
        k_cache[...] = kvb[:, :hq]                                     # (S, h*q)
        v_cache[...] = kvb[:, hq:]                                     # (S, h*v)

    # ---- Per-tile fused Q projection (1/sqrt(q) folded into wq/bq on host). ----
    xq_f32 = xq_ref[...]                                               # (TQ, D) residual
    xq_b = xq_f32.astype(jnp.bfloat16)
    q_all = (jnp.dot(xq_b, wq_ref[...], preferred_element_type=jnp.float32)
             + bq_ref[...]).astype(jnp.bfloat16)                       # (TQ, h*q)

    k_all = k_cache[...]                                               # (S, h*q) bf16
    v_all = v_cache[...]                                               # (S, h*v) bf16

    # ---- Per-head attention (static loop; h is small).  Scores contract the
    #      last dims of Q_i and K_i directly (no K transpose materialized). ----
    for i in range(h):
        q_i = q_all[:, i * q_dim:(i + 1) * q_dim]                      # (TQ, q)
        k_i = k_all[:, i * q_dim:(i + 1) * q_dim]                      # (S, q)
        v_i = v_all[:, i * v_dim:(i + 1) * v_dim]                      # (S, v)
        s = jax.lax.dot_general(q_i, k_i, (((1,), (1,)), ((), ())),
                                preferred_element_type=jnp.float32)    # (TQ, S)
        s = s - jnp.max(s, axis=-1, keepdims=True)
        p = jnp.exp(s)                                                 # f32 softmax
        p = p * pl.reciprocal(jnp.sum(p, axis=-1, keepdims=True), approx=True)
        a_i = jnp.dot(p.astype(jnp.bfloat16), v_i,
                      preferred_element_type=jnp.float32)              # (TQ, v)
        att_scratch[:, i * v_dim:(i + 1) * v_dim] = a_i.astype(jnp.bfloat16)

    # ---- Output projection: single K = h*v matmul over the concatenated heads. ----
    sa = (jnp.dot(att_scratch[...], wo_ref[...],
                  preferred_element_type=jnp.float32) + bo_ref[...])   # (TQ, D)

    # dropout -> identity (eval mode); residual add + LayerNorm 1
    y = sa + xq_f32
    mu = jnp.mean(y, axis=-1, keepdims=True)
    var = jnp.mean(jnp.square(y - mu), axis=-1, keepdims=True)
    y = (y - mu) * jax.lax.rsqrt(var + 1e-5) * g1_ref[...] + beta1_ref[...]

    # Position-wise feed forward (bf16 matmuls, f32 accumulate)
    ff = (jnp.dot(y.astype(jnp.bfloat16), w1_ref[...],
                  preferred_element_type=jnp.float32) + b1_ref[...])   # (TQ, d_ff)
    ff = jnp.maximum(ff, 0.0).astype(jnp.bfloat16)
    ff = (jnp.dot(ff, w2_ref[...],
                  preferred_element_type=jnp.float32) + b2_ref[...])   # (TQ, D)

    # dropout -> identity (eval mode); residual add + LayerNorm 2
    z = ff + y
    mu = jnp.mean(z, axis=-1, keepdims=True)
    var = jnp.mean(jnp.square(z - mu), axis=-1, keepdims=True)
    z = (z - mu) * jax.lax.rsqrt(var + 1e-5) * g2_ref[...] + beta2_ref[...]

    o_ref[...] = z.astype(o_ref.dtype)


def _pick_tq_and_vmem_limit(S):
    """Per-generation tile size / VMEM budget (v5e/v6e: 128 MiB, v7x: 64 MiB)."""
    try:
        cap = pltpu.get_tpu_info().vmem_capacity_bytes
    except Exception:  # pragma: no cover - conservative fallback
        cap = None
    if cap is not None and cap >= 96 * 1024 * 1024:
        return min(S, 512), 96 * 1024 * 1024      # v5e / v6e
    return min(S, 256), 48 * 1024 * 1024          # v7x (64 MiB physical)


def encoder_forward(x, params, *, h, q_dim, v_dim, tq=None):
    B, S, D = x.shape
    d_ff = params["w1"].shape[1]
    hq, hv = h * q_dim, h * v_dim

    auto_tq, vmem_limit = _pick_tq_and_vmem_limit(S)
    if tq is None:
        tq = auto_tq
    assert S % tq == 0, "TODO(synk): ragged sequence lengths not handled"

    bf16 = jnp.bfloat16
    scale = 1.0 / math.sqrt(q_dim)

    # Host-side weight prep: fold the softmax scale into W_q / b_q, fuse the
    # K and V projection weights into one 256-wide slab, cast matmul weights
    # to bf16 (halves HBM traffic, MXU-native).
    wq = (params["wq"] * scale).astype(bf16)                    # (D, h*q)
    bq = params["bq"] * scale                                   # (1, h*q) f32
    wkv = jnp.concatenate([params["wk"], params["wv"]], axis=1).astype(bf16)  # (D, hq+hv)
    bkv = jnp.concatenate([params["bk"], params["bv"]], axis=1)               # (1, hq+hv)
    wo = params["wo"].astype(bf16)                              # (h*v, D)
    w1 = params["w1"].astype(bf16)                              # (D, d_ff)
    w2 = params["w2"].astype(bf16)                              # (d_ff, D)

    def const_spec(shape):
        return pl.BlockSpec(shape, lambda b, t: (0,) * len(shape))

    in_specs = [
        # Full (S, D) slab for the KV-cache fill: index constant in t, so it is
        # only DMA'd when the batch element changes.
        pl.BlockSpec((None, S, D), lambda b, t: (b, 0, 0)),
        # Per-tile (tq, D) slab for the Q / residual path.
        pl.BlockSpec((None, tq, D), lambda b, t: (b, t, 0)),
        const_spec((D, hq)), const_spec((1, hq)),               # Wq, bq (scaled)
        const_spec((D, hq + hv)), const_spec((1, hq + hv)),     # fused Wkv, bkv
        const_spec((hv, D)), const_spec((1, D)),                # Wo, bo
        const_spec((1, D)), const_spec((1, D)),                 # LN1 gamma, beta
        const_spec((D, d_ff)), const_spec((1, d_ff)),           # W1, b1
        const_spec((d_ff, D)), const_spec((1, D)),              # W2, b2
        const_spec((1, D)), const_spec((1, D)),                 # LN2 gamma, beta
    ]

    kernel = functools.partial(encoder_kernel, h=h, q_dim=q_dim, v_dim=v_dim)

    return pl.pallas_call(
        kernel,
        out_shape=jax.ShapeDtypeStruct((B, S, D), x.dtype),
        grid_spec=pltpu.PrefetchScalarGridSpec(
            num_scalar_prefetch=0,
            grid=(B, S // tq),
            in_specs=in_specs,
            out_specs=pl.BlockSpec((None, tq, D), lambda b, t: (b, t, 0)),
            scratch_shapes=[
                pltpu.VMEM((S, hq), bf16),     # K cache (per batch element)
                pltpu.VMEM((S, hv), bf16),     # V cache (per batch element)
                pltpu.VMEM((tq, hv), bf16),    # concatenated per-head attention
            ],
        ),
        compiler_params=pltpu.CompilerParams(
            # Batch axis parallel (megacore / v7x 2-TC); seq-tile axis must be
            # sequential so the KV cache filled at t == 0 is reused by t > 0.
            dimension_semantics=("parallel", "arbitrary"),
            vmem_limit_bytes=vmem_limit,
        ),
    )(x, x,
      wq, bq, wkv, bkv, wo, params["bo"],
      params["g1"], params["beta1"],
      w1, params["b1"], w2, params["b2"],
      params["g2"], params["beta2"])


def encoder_reference(x, params, *, h, q_dim, v_dim):
    """Pure-JAX f32 reference matching the PyTorch forward (eval mode)."""
    Q = x @ params["wq"] + params["bq"]
    K = x @ params["wk"] + params["bk"]
    V = x @ params["wv"] + params["bv"]
    Qh = jnp.stack(jnp.split(Q, h, axis=-1), axis=0)   # (h, B, S, q)
    Kh = jnp.stack(jnp.split(K, h, axis=-1), axis=0)
    Vh = jnp.stack(jnp.split(V, h, axis=-1), axis=0)
    s = jnp.einsum("hbsq,hbtq->hbst", Qh, Kh) / math.sqrt(q_dim)
    p = jax.nn.softmax(s, axis=-1)
    a = jnp.einsum("hbst,hbtv->hbsv", p, Vh)           # (h, B, S, v)
    a = jnp.concatenate(list(a), axis=-1)              # (B, S, v*h)
    sa = a @ params["wo"] + params["bo"]

    def ln(t, g, b):
        m = jnp.mean(t, axis=-1, keepdims=True)
        var = jnp.mean((t - m) ** 2, axis=-1, keepdims=True)
        return (t - m) * jax.lax.rsqrt(var + 1e-5) * g + b

    y = ln(sa + x, params["g1"], params["beta1"])
    ff = jnp.maximum(y @ params["w1"] + params["b1"], 0.0) @ params["w2"] + params["b2"]
    return ln(ff + y, params["g2"], params["beta2"])


def make_params(key, d_model, q, v, h, d_ff):
    ks = jax.random.split(key, 16)

    def lin(kw, kb, fan_in, fan_out):
        w = jax.random.normal(kw, (fan_in, fan_out), jnp.float32) / math.sqrt(fan_in)
        b = 0.01 * jax.random.normal(kb, (1, fan_out), jnp.float32)
        return w, b

    wq, bq = lin(ks[0], ks[1], d_model, q * h)
    wk, bk = lin(ks[2], ks[3], d_model, q * h)
    wv, bv = lin(ks[4], ks[5], d_model, v * h)
    wo, bo = lin(ks[6], ks[7], v * h, d_model)
    w1, b1 = lin(ks[8], ks[9], d_model, d_ff)
    w2, b2 = lin(ks[10], ks[11], d_ff, d_model)
    g1 = 1.0 + 0.05 * jax.random.normal(ks[12], (1, d_model), jnp.float32)
    beta1 = 0.05 * jax.random.normal(ks[13], (1, d_model), jnp.float32)
    g2 = 1.0 + 0.05 * jax.random.normal(ks[14], (1, d_model), jnp.float32)
    beta2 = 0.05 * jax.random.normal(ks[15], (1, d_model), jnp.float32)
    return dict(
        wq=wq, bq=bq, wk=wk, bk=bk, wv=wv, bv=bv, wo=wo, bo=bo,
        g1=g1, beta1=beta1, w1=w1, b1=b1, w2=w2, b2=b2, g2=g2, beta2=beta2,
    )


if __name__ == "__main__":
    # Small but TPU-friendly shapes: d_model = h*q = h*v = 128 (lane-aligned),
    # S multiple of 8 (sublane), d_ff = 2048 (PositionwiseFeedForward default).
    B, S, d_model = 2, 16, 128
    q_dim, v_dim, h = 32, 32, 4
    d_ff = 2048

    key = jax.random.PRNGKey(0)
    k_x, k_p = jax.random.split(key)
    x = jax.random.normal(k_x, (B, S, d_model), jnp.float32)
    params = make_params(k_p, d_model, q_dim, v_dim, h, d_ff)

    out = encoder_forward(x, params, h=h, q_dim=q_dim, v_dim=v_dim)
    out = jax.block_until_ready(out)

    ref = encoder_reference(x, params, h=h, q_dim=q_dim, v_dim=v_dim)
    assert out.shape == (B, S, d_model)
    # bf16 matmul inputs + approximate reciprocal => relaxed tolerance vs f32 ref.
    assert jnp.allclose(out, ref, atol=5e-2, rtol=5e-2), "mismatch vs reference"

    print("KERNEL_OK")
</pallas_src>

<mosaic_0001>
module attributes {stable_mosaic.version = 11 : i64} {
  func.func @encoder_kernel(%arg0: i32, %arg1: i32, %arg2: memref<1x16x128xf32, #tpu.memory_space<vmem>>, %arg3: memref<1x16x128xf32, #tpu.memory_space<vmem>>, %arg4: memref<128x128xbf16, #tpu.memory_space<vmem>>, %arg5: memref<1x128xf32, #tpu.memory_space<vmem>>, %arg6: memref<128x256xbf16, #tpu.memory_space<vmem>>, %arg7: memref<1x256xf32, #tpu.memory_space<vmem>>, %arg8: memref<128x128xbf16, #tpu.memory_space<vmem>>, %arg9: memref<1x128xf32, #tpu.memory_space<vmem>>, %arg10: memref<1x128xf32, #tpu.memory_space<vmem>>, %arg11: memref<1x128xf32, #tpu.memory_space<vmem>>, %arg12: memref<128x2048xbf16, #tpu.memory_space<vmem>>, %arg13: memref<1x2048xf32, #tpu.memory_space<vmem>>, %arg14: memref<2048x128xbf16, #tpu.memory_space<vmem>>, %arg15: memref<1x128xf32, #tpu.memory_space<vmem>>, %arg16: memref<1x128xf32, #tpu.memory_space<vmem>>, %arg17: memref<1x128xf32, #tpu.memory_space<vmem>>, %arg18: memref<1x16x128xf32, #tpu.memory_space<vmem>>, %arg19: memref<16x128xbf16, #tpu.memory_space<vmem>>, %arg20: memref<16x128xbf16, #tpu.memory_space<vmem>>, %arg21: memref<16x128xbf16, #tpu.memory_space<vmem>>) attributes {dimension_semantics = [#tpu.dimension_semantics<parallel>, #tpu.dimension_semantics<arbitrary>], iteration_bounds = array<i64: 2, 1>, scalar_prefetch = 0 : i64, scratch_operands = 3 : i64, tpu.core_type = #tpu.core_type<tc>, window_params = [{transform_indices = @transform_0, window_bounds = array<i64: 1, 16, 128>}, {transform_indices = @transform_1, window_bounds = array<i64: 1, 16, 128>}, {pipeline_mode = #tpu.pipeline_mode<synchronous>, transform_indices = @transform_2, window_bounds = array<i64: 128, 128>}, {pipeline_mode = #tpu.pipeline_mode<synchronous>, transform_indices = @transform_3, window_bounds = array<i64: 1, 128>}, {pipeline_mode = #tpu.pipeline_mode<synchronous>, transform_indices = @transform_4, window_bounds = array<i64: 128, 256>}, {pipeline_mode = #tpu.pipeline_mode<synchronous>, transform_indices = @transform_5, window_bounds = array<i64: 1, 256>}, {pipeline_mode = #tpu.pipeline_mode<synchronous>, transform_indices = @transform_6, window_bounds = array<i64: 128, 128>}, {pipeline_mode = #tpu.pipeline_mode<synchronous>, transform_indices = @transform_7, window_bounds = array<i64: 1, 128>}, {pipeline_mode = #tpu.pipeline_mode<synchronous>, transform_indices = @transform_8, window_bounds = array<i64: 1, 128>}, {pipeline_mode = #tpu.pipeline_mode<synchronous>, transform_indices = @transform_9, window_bounds = array<i64: 1, 128>}, {pipeline_mode = #tpu.pipeline_mode<synchronous>, transform_indices = @transform_10, window_bounds = array<i64: 128, 2048>}, {pipeline_mode = #tpu.pipeline_mode<synchronous>, transform_indices = @transform_11, window_bounds = array<i64: 1, 2048>}, {pipeline_mode = #tpu.pipeline_mode<synchronous>, transform_indices = @transform_12, window_bounds = array<i64: 2048, 128>}, {pipeline_mode = #tpu.pipeline_mode<synchronous>, transform_indices = @transform_13, window_bounds = array<i64: 1, 128>}, {pipeline_mode = #tpu.pipeline_mode<synchronous>, transform_indices = @transform_14, window_bounds = array<i64: 1, 128>}, {pipeline_mode = #tpu.pipeline_mode<synchronous>, transform_indices = @transform_15, window_bounds = array<i64: 1, 128>}, {transform_indices = @transform_16, window_bounds = array<i64: 1, 16, 128>}]} {
    %c0_i32 = arith.constant 0 : i32
    %0 = arith.cmpi eq, %arg1, %c0_i32 : i32
    %1 = arith.extui %0 : i1 to i32
    %c0_i32_0 = arith.constant 0 : i32
    %2 = arith.cmpi ne, %1, %c0_i32_0 : i32
    scf.if %2 {
      %c0_71 = arith.constant 0 : index
      %c0_72 = arith.constant 0 : index
      %c0_73 = arith.constant 0 : index
      %159 = vector.load %arg2[%c0_71, %c0_72, %c0_73] : memref<1x16x128xf32, #tpu.memory_space<vmem>>, vector<1x16x128xf32>
      %160 = vector.shape_cast %159 : vector<1x16x128xf32> to vector<16x128xf32>
      %161 = arith.truncf %160 : vector<16x128xf32> to vector<16x128xbf16>
      %c0_74 = arith.constant 0 : index
      %c0_75 = arith.constant 0 : index
      %162 = vector.load %arg6[%c0_74, %c0_75] : memref<128x256xbf16, #tpu.memory_space<vmem>>, vector<128x256xbf16>
      %cst_76 = arith.constant dense<0.000000e+00> : vector<16x256xf32>
      %163 = tpu.matmul %161, %162, %cst_76 {dimension_numbers = #tpu.dot_dimension_numbers<[1], [0], [0], [1], [0, 0, 1, 1], [], []>} : vector<16x128xbf16>, vector<128x256xbf16>, vector<16x256xf32> -> vector<16x256xf32>
      %c0_77 = arith.constant 0 : index
      %c0_78 = arith.constant 0 : index
      %164 = vector.load %arg7[%c0_77, %c0_78] : memref<1x256xf32, #tpu.memory_space<vmem>>, vector<1x256xf32>
      %165 = vector.broadcast %164 : vector<1x256xf32> to vector<16x256xf32>
      %166 = arith.addf %163, %165 : vector<16x256xf32>
      %167 = arith.truncf %166 : vector<16x256xf32> to vector<16x256xbf16>
      %168 = vector.extract_strided_slice %167 {offsets = [0, 0], sizes = [16, 128], strides = [1, 1]} : vector<16x256xbf16> to vector<16x128xbf16>
      %c0_79 = arith.constant 0 : index
      %c0_80 = arith.constant 0 : index
      %169 = vector.load %arg19[%c0_79, %c0_80] : memref<16x128xbf16, #tpu.memory_space<vmem>>, vector<16x128xbf16>
      tpu.vector_store %arg19[%c0_79, %c0_80], %168 {strides = array<i32>} : memref<16x128xbf16, #tpu.memory_space<vmem>>, vector<16x128xbf16>,
      %170 = vector.extract_strided_slice %167 {offsets = [0, 128], sizes = [16, 128], strides = [1, 1]} : vector<16x256xbf16> to vector<16x128xbf16>
      %c0_81 = arith.constant 0 : index
      %c0_82 = arith.constant 0 : index
      %171 = vector.load %arg20[%c0_81, %c0_82] : memref<16x128xbf16, #tpu.memory_space<vmem>>, vector<16x128xbf16>
      tpu.vector_store %arg20[%c0_81, %c0_82], %170 {strides = array<i32>} : memref<16x128xbf16, #tpu.memory_space<vmem>>, vector<16x128xbf16>,
    } else {
    }
    %c0 = arith.constant 0 : index
    %c0_1 = arith.constant 0 : index
    %c0_2 = arith.constant 0 : index
    %3 = vector.load %arg3[%c0, %c0_1, %c0_2] : memref<1x16x128xf32, #tpu.memory_space<vmem>>, vector<1x16x128xf32>
    %4 = vector.shape_cast %3 : vector<1x16x128xf32> to vector<16x128xf32>
    %5 = arith.truncf %4 : vector<16x128xf32> to vector<16x128xbf16>
    %c0_3 = arith.constant 0 : index
    %c0_4 = arith.constant 0 : index
    %6 = vector.load %arg4[%c0_3, %c0_4] : memref<128x128xbf16, #tpu.memory_space<vmem>>, vector<128x128xbf16>
    %cst = arith.constant dense<0.000000e+00> : vector<16x128xf32>
    %7 = tpu.matmul %5, %6, %cst {dimension_numbers = #tpu.dot_dimension_numbers<[1], [0], [0], [1], [0, 0, 1, 1], [], []>} : vector<16x128xbf16>, vector<128x128xbf16>, vector<16x128xf32> -> vector<16x128xf32>
    %c0_5 = arith.constant 0 : index
    %c0_6 = arith.constant 0 : index
    %8 = vector.load %arg5[%c0_5, %c0_6] : memref<1x128xf32, #tpu.memory_space<vmem>>, vector<1x128xf32>
    %9 = vector.broadcast %8 : vector<1x128xf32> to vector<16x128xf32>
    %10 = arith.addf %7, %9 : vector<16x128xf32>
    %11 = arith.truncf %10 : vector<16x128xf32> to vector<16x128xbf16>
    %c0_7 = arith.constant 0 : index
    %c0_8 = arith.constant 0 : index
    %12 = vector.load %arg19[%c0_7, %c0_8] : memref<16x128xbf16, #tpu.memory_space<vmem>>, vector<16x128xbf16>
    %c0_9 = arith.constant 0 : index
    %c0_10 = arith.constant 0 : index
    %13 = vector.load %arg20[%c0_9, %c0_10] : memref<16x128xbf16, #tpu.memory_space<vmem>>, vector<16x128xbf16>
    %14 = vector.extract_strided_slice %11 {offsets = [0, 0], sizes = [16, 32], strides = [1, 1]} : vector<16x128xbf16> to vector<16x32xbf16>
    %15 = vector.extract_strided_slice %12 {offsets = [0, 0], sizes = [16, 32], strides = [1, 1]} : vector<16x128xbf16> to vector<16x32xbf16>
    %16 = vector.extract_strided_slice %13 {offsets = [0, 0], sizes = [16, 32], strides = [1, 1]} : vector<16x128xbf16> to vector<16x32xbf16>
    %cst_11 = arith.constant dense<0.000000e+00> : vector<16x16xf32>
    %17 = tpu.matmul %14, %15, %cst_11 {dimension_numbers = #tpu.dot_dimension_numbers<[1], [1], [0], [0], [0, 0, 1, 0], [], []>} : vector<16x32xbf16>, vector<16x32xbf16>, vector<16x16xf32> -> vector<16x16xf32>
    %cst_12 = arith.constant dense<0xFF800000> : vector<16xf32>
    %18 = vector.multi_reduction <maximumf>, %17, %cst_12 [1] : vector<16x16xf32> to vector<16xf32>
    %19 = vector.shape_cast %18 : vector<16xf32> to vector<16x1xf32>
    %20 = vector.broadcast %19 : vector<16x1xf32> to vector<16x16xf32>
    %21 = arith.subf %17, %20 : vector<16x16xf32>
    %22 = math.exp %21 : vector<16x16xf32>
    %cst_13 = arith.constant dense<0.000000e+00> : vector<16xf32>
    %23 = vector.multi_reduction <add>, %22, %cst_13 [1] : vector<16x16xf32> to vector<16xf32>
    %24 = vector.shape_cast %23 : vector<16xf32> to vector<16x1xf32>
    %25 = tpu.reciprocal %24 {approx = true} : vector<16x1xf32> -> vector<16x1xf32>
    %26 = vector.broadcast %25 : vector<16x1xf32> to vector<16x16xf32>
    %27 = arith.mulf %22, %26 : vector<16x16xf32>
    %28 = arith.truncf %27 : vector<16x16xf32> to vector<16x16xbf16>
    %cst_14 = arith.constant dense<0.000000e+00> : vector<16x32xf32>
    %29 = tpu.matmul %28, %16, %cst_14 {dimension_numbers = #tpu.dot_dimension_numbers<[1], [0], [0], [1], [0, 0, 1, 1], [], []>} : vector<16x16xbf16>, vector<16x32xbf16>, vector<16x32xf32> -> vector<16x32xf32>
    %30 = arith.truncf %29 : vector<16x32xf32> to vector<16x32xbf16>
    %c0_15 = arith.constant 0 : index
    %c0_16 = arith.constant 0 : index
    %31 = vector.load %arg21[%c0_15, %c0_16] : memref<16x128xbf16, #tpu.memory_space<vmem>>, vector<16x32xbf16>
    tpu.vector_store %arg21[%c0_15, %c0_16], %30 {strides = array<i32>} : memref<16x128xbf16, #tpu.memory_space<vmem>>, vector<16x32xbf16>,
    %32 = vector.extract_strided_slice %11 {offsets = [0, 32], sizes = [16, 32], strides = [1, 1]} : vector<16x128xbf16> to vector<16x32xbf16>
    %33 = vector.extract_strided_slice %12 {offsets = [0, 32], sizes = [16, 32], strides = [1, 1]} : vector<16x128xbf16> to vector<16x32xbf16>
    %34 = vector.extract_strided_slice %13 {offsets = [0, 32], sizes = [16, 32], strides = [1, 1]} : vector<16x128xbf16> to vector<16x32xbf16>
    %cst_17 = arith.constant dense<0.000000e+00> : vector<16x16xf32>
    %35 = tpu.matmul %32, %33, %cst_17 {dimension_numbers = #tpu.dot_dimension_numbers<[1], [1], [0], [0], [0, 0, 1, 0], [], []>} : vector<16x32xbf16>, vector<16x32xbf16>, vector<16x16xf32> -> vector<16x16xf32>
    %cst_18 = arith.constant dense<0xFF800000> : vector<16xf32>
    %36 = vector.multi_reduction <maximumf>, %35, %cst_18 [1] : vector<16x16xf32> to vector<16xf32>
    %37 = vector.shape_cast %36 : vector<16xf32> to vector<16x1xf32>
    %38 = vector.broadcast %37 : vector<16x1xf32> to vector<16x16xf32>
    %39 = arith.subf %35, %38 : vector<16x16xf32>
    %40 = math.exp %39 : vector<16x16xf32>
    %cst_19 = arith.constant dense<0.000000e+00> : vector<16xf32>
    %41 = vector.multi_reduction <add>, %40, %cst_19 [1] : vector<16x16xf32> to vector<16xf32>
    %42 = vector.shape_cast %41 : vector<16xf32> to vector<16x1xf32>
    %43 = tpu.reciprocal %42 {approx = true} : vector<16x1xf32> -> vector<16x1xf32>
    %44 = vector.broadcast %43 : vector<16x1xf32> to vector<16x16xf32>
    %45 = arith.mulf %40, %44 : vector<16x16xf32>
    %46 = arith.truncf %45 : vector<16x16xf32> to vector<16x16xbf16>
    %cst_20 = arith.constant dense<0.000000e+00> : vector<16x32xf32>
    %47 = tpu.matmul %46, %34, %cst_20 {dimension_numbers = #tpu.dot_dimension_numbers<[1], [0], [0], [1], [0, 0, 1, 1], [], []>} : vector<16x16xbf16>, vector<16x32xbf16>, vector<16x32xf32> -> vector<16x32xf32>
    %48 = arith.truncf %47 : vector<16x32xf32> to vector<16x32xbf16>
    %c0_21 = arith.constant 0 : index
    %c32 = arith.constant 32 : index
    %49 = vector.load %arg21[%c0_21, %c32] : memref<16x128xbf16, #tpu.memory_space<vmem>>, vector<16x32xbf16>
    tpu.vector_store %arg21[%c0_21, %c32], %48 {strides = array<i32>} : memref<16x128xbf16, #tpu.memory_space<vmem>>, vector<16x32xbf16>,
    %50 = vector.extract_strided_slice %11 {offsets = [0, 64], sizes = [16, 32], strides = [1, 1]} : vector<16x128xbf16> to vector<16x32xbf16>
    %51 = vector.extract_strided_slice %12 {offsets = [0, 64], sizes = [16, 32], strides = [1, 1]} : vector<16x128xbf16> to vector<16x32xbf16>
    %52 = vector.extract_strided_slice %13 {offsets = [0, 64], sizes = [16, 32], strides = [1, 1]} : vector<16x128xbf16> to vector<16x32xbf16>
    %cst_22 = arith.constant dense<0.000000e+00> : vector<16x16xf32>
    %53 = tpu.matmul %50, %51, %cst_22 {dimension_numbers = #tpu.dot_dimension_numbers<[1], [1], [0], [0], [0, 0, 1, 0], [], []>} : vector<16x32xbf16>, vector<16x32xbf16>, vector<16x16xf32> -> vector<16x16xf32>
    %cst_23 = arith.constant dense<0xFF800000> : vector<16xf32>
    %54 = vector.multi_reduction <maximumf>, %53, %cst_23 [1] : vector<16x16xf32> to vector<16xf32>
    %55 = vector.shape_cast %54 : vector<16xf32> to vector<16x1xf32>
    %56 = vector.broadcast %55 : vector<16x1xf32> to vector<16x16xf32>
    %57 = arith.subf %53, %56 : vector<16x16xf32>
    %58 = math.exp %57 : vector<16x16xf32>
    %cst_24 = arith.constant dense<0.000000e+00> : vector<16xf32>
    %59 = vector.multi_reduction <add>, %58, %cst_24 [1] : vector<16x16xf32> to vector<16xf32>
    %60 = vector.shape_cast %59 : vector<16xf32> to vector<16x1xf32>
    %61 = tpu.reciprocal %60 {approx = true} : vector<16x1xf32> -> vector<16x1xf32>
    %62 = vector.broadcast %61 : vector<16x1xf32> to vector<16x16xf32>
    %63 = arith.mulf %58, %62 : vector<16x16xf32>
    %64 = arith.truncf %63 : vector<16x16xf32> to vector<16x16xbf16>
    %cst_25 = arith.constant dense<0.000000e+00> : vector<16x32xf32>
    %65 = tpu.matmul %64, %52, %cst_25 {dimension_numbers = #tpu.dot_dimension_numbers<[1], [0], [0], [1], [0, 0, 1, 1], [], []>} : vector<16x16xbf16>, vector<16x32xbf16>, vector<16x32xf32> -> vector<16x32xf32>
    %66 = arith.truncf %65 : vector<16x32xf32> to vector<16x32xbf16>
    %c0_26 = arith.constant 0 : index
    %c64 = arith.constant 64 : index
    %67 = vector.load %arg21[%c0_26, %c64] : memref<16x128xbf16, #tpu.memory_space<vmem>>, vector<16x32xbf16>
    tpu.vector_store %arg21[%c0_26, %c64], %66 {strides = array<i32>} : memref<16x128xbf16, #tpu.memory_space<vmem>>, vector<16x32xbf16>,
    %68 = vector.extract_strided_slice %11 {offsets = [0, 96], sizes = [16, 32], strides = [1, 1]} : vector<16x128xbf16> to vector<16x32xbf16>
    %69 = vector.extract_strided_slice %12 {offsets = [0, 96], sizes = [16, 32], strides = [1, 1]} : vector<16x128xbf16> to vector<16x32xbf16>
    %70 = vector.extract_strided_slice %13 {offsets = [0, 96], sizes = [16, 32], strides = [1, 1]} : vector<16x128xbf16> to vector<16x32xbf16>
    %cst_27 = arith.constant dense<0.000000e+00> : vector<16x16xf32>
    %71 = tpu.matmul %68, %69, %cst_27 {dimension_numbers = #tpu.dot_dimension_numbers<[1], [1], [0], [0], [0, 0, 1, 0], [], []>} : vector<16x32xbf16>, vector<16x32xbf16>, vector<16x16xf32> -> vector<16x16xf32>
    %cst_28 = arith.constant dense<0xFF800000> : vector<16xf32>
    %72 = vector.multi_reduction <maximumf>, %71, %cst_28 [1] : vector<16x16xf32> to vector<16xf32>
    %73 = vector.shape_cast %72 : vector<16xf32> to vector<16x1xf32>
    %74 = vector.broadcast %73 : vector<16x1xf32> to vector<16x16xf32>
    %75 = arith.subf %71, %74 : vector<16x16xf32>
    %76 = math.exp %75 : vector<16x16xf32>
    %cst_29 = arith.constant dense<0.000000e+00> : vector<16xf32>
    %77 = vector.multi_reduction <add>, %76, %cst_29 [1] : vector<16x16xf32> to vector<16xf32>
    %78 = vector.shape_cast %77 : vector<16xf32> to vector<16x1xf32>
    %79 = tpu.reciprocal %78 {approx = true} : vector<16x1xf32> -> vector<16x1xf32>
    %80 = vector.broadcast %79 : vector<16x1xf32> to vector<16x16xf32>
    %81 = arith.mulf %76, %80 : vector<16x16xf32>
    %82 = arith.truncf %81 : vector<16x16xf32> to vector<16x16xbf16>
    %cst_30 = arith.constant dense<0.000000e+00> : vector<16x32xf32>
    %83 = tpu.matmul %82, %70, %cst_30 {dimension_numbers = #tpu.dot_dimension_numbers<[1], [0], [0], [1], [0, 0, 1, 1], [], []>} : vector<16x16xbf16>, vector<16x32xbf16>, vector<16x32xf32> -> vector<16x32xf32>
    %84 = arith.truncf %83 : vector<16x32xf32> to vector<16x32xbf16>
    %c0_31 = arith.constant 0 : index
    %c96 = arith.constant 96 : index
    %85 = vector.load %arg21[%c0_31, %c96] : memref<16x128xbf16, #tpu.memory_space<vmem>>, vector<16x32xbf16>
    tpu.vector_store %arg21[%c0_31, %c96], %84 {strides = array<i32>} : memref<16x128xbf16, #tpu.memory_space<vmem>>, vector<16x32xbf16>,
    %c0_32 = arith.constant 0 : index
    %c0_33 = arith.constant 0 : index
    %86 = vector.load %arg21[%c0_32, %c0_33] : memref<16x128xbf16, #tpu.memory_space<vmem>>, vector<16x128xbf16>
    %c0_34 = arith.constant 0 : index
    %c0_35 = arith.constant 0 : index
    %87 = vector.load %arg8[%c0_34, %c0_35] : memref<128x128xbf16, #tpu.memory_space<vmem>>, vector<128x128xbf16>
    %cst_36 = arith.constant dense<0.000000e+00> : vector<16x128xf32>
    %88 = tpu.matmul %86, %87, %cst_36 {dimension_numbers = #tpu.dot_dimension_numbers<[1], [0], [0], [1], [0, 0, 1, 1], [], []>} : vector<16x128xbf16>, vector<128x128xbf16>, vector<16x128xf32> -> vector<16x128xf32>
    %c0_37 = arith.constant 0 : index
    %c0_38 = arith.constant 0 : index
    %89 = vector.load %arg9[%c0_37, %c0_38] : memref<1x128xf32, #tpu.memory_space<vmem>>, vector<1x128xf32>
    %90 = vector.broadcast %89 : vector<1x128xf32> to vector<16x128xf32>
    %91 = arith.addf %88, %90 : vector<16x128xf32>
    %92 = arith.addf %91, %4 : vector<16x128xf32>
    %cst_39 = arith.constant dense<0.000000e+00> : vector<16xf32>
    %93 = vector.multi_reduction <add>, %92, %cst_39 [1] : vector<16x128xf32> to vector<16xf32>
    %94 = vector.shape_cast %93 : vector<16xf32> to vector<16x1xf32>
    %cst_40 = arith.constant 1.280000e+02 : f32
    %95 = vector.broadcast %cst_40 : f32 to vector<16x1xf32>
    %96 = arith.divf %94, %95 : vector<16x1xf32>
    %97 = vector.broadcast %96 : vector<16x1xf32> to vector<16x128xf32>
    %98 = arith.subf %92, %97 : vector<16x128xf32>
    %99 = arith.mulf %98, %98 : vector<16x128xf32>
    %cst_41 = arith.constant dense<0.000000e+00> : vector<16xf32>
    %100 = vector.multi_reduction <add>, %99, %cst_41 [1] : vector<16x128xf32> to vector<16xf32>
    %101 = vector.shape_cast %100 : vector<16xf32> to vector<16x1xf32>
    %cst_42 = arith.constant 1.280000e+02 : f32
    %102 = vector.broadcast %cst_42 : f32 to vector<16x1xf32>
    %103 = arith.divf %101, %102 : vector<16x1xf32>
    %104 = vector.broadcast %96 : vector<16x1xf32> to vector<16x128xf32>
    %105 = arith.subf %92, %104 : vector<16x128xf32>
    %cst_43 = arith.constant 9.99999974E-6 : f32
    %106 = vector.broadcast %cst_43 : f32 to vector<16x1xf32>
    %107 = arith.addf %103, %106 : vector<16x1xf32>
    %108 = math.rsqrt %107 : vector<16x1xf32>
    %109 = vector.broadcast %108 : vector<16x1xf32> to vector<16x128xf32>
    %110 = arith.mulf %105, %109 : vector<16x128xf32>
    %c0_44 = arith.constant 0 : index
    %c0_45 = arith.constant 0 : index
    %111 = vector.load %arg10[%c0_44, %c0_45] : memref<1x128xf32, #tpu.memory_space<vmem>>, vector<1x128xf32>
    %112 = vector.broadcast %111 : vector<1x128xf32> to vector<16x128xf32>
    %113 = arith.mulf %110, %112 : vector<16x128xf32>
    %c0_46 = arith.constant 0 : index
    %c0_47 = arith.constant 0 : index
    %114 = vector.load %arg11[%c0_46, %c0_47] : memref<1x128xf32, #tpu.memory_space<vmem>>, vector<1x128xf32>
    %115 = vector.broadcast %114 : vector<1x128xf32> to vector<16x128xf32>
    %116 = arith.addf %113, %115 : vector<16x128xf32>
    %117 = arith.truncf %116 : vector<16x128xf32> to vector<16x128xbf16>
    %c0_48 = arith.constant 0 : index
    %c0_49 = arith.constant 0 : index
    %118 = vector.load %arg12[%c0_48, %c0_49] : memref<128x2048xbf16, #tpu.memory_space<vmem>>, vector<128x2048xbf16>
    %cst_50 = arith.constant dense<0.000000e+00> : vector<16x2048xf32>
    %119 = tpu.matmul %117, %118, %cst_50 {dimension_numbers = #tpu.dot_dimension_numbers<[1], [0], [0], [1], [0, 0, 1, 1], [], []>} : vector<16x128xbf16>, vector<128x2048xbf16>, vector<16x2048xf32> -> vector<16x2048xf32>
    %c0_51 = arith.constant 0 : index
    %c0_52 = arith.constant 0 : index
    %120 = vector.load %arg13[%c0_51, %c0_52] : memref<1x2048xf32, #tpu.memory_space<vmem>>, vector<1x2048xf32>
    %121 = vector.broadcast %120 : vector<1x2048xf32> to vector<16x2048xf32>
    %122 = arith.addf %119, %121 : vector<16x2048xf32>
    %cst_53 = arith.constant 0.000000e+00 : f32
    %123 = vector.broadcast %cst_53 : f32 to vector<16x2048xf32>
    %124 = arith.maximumf %122, %123 : vector<16x2048xf32>
    %125 = arith.truncf %124 : vector<16x2048xf32> to vector<16x2048xbf16>
    %c0_54 = arith.constant 0 : index
    %c0_55 = arith.constant 0 : index
    %126 = vector.load %arg14[%c0_54, %c0_55] : memref<2048x128xbf16, #tpu.memory_space<vmem>>, vector<2048x128xbf16>
    %cst_56 = arith.constant dense<0.000000e+00> : vector<16x128xf32>
    %127 = tpu.matmul %125, %126, %cst_56 {dimension_numbers = #tpu.dot_dimension_numbers<[1], [0], [0], [1], [0, 0, 1, 1], [], []>} : vector<16x2048xbf16>, vector<2048x128xbf16>, vector<16x128xf32> -> vector<16x128xf32>
    %c0_57 = arith.constant 0 : index
    %c0_58 = arith.constant 0 : index
    %128 = vector.load %arg15[%c0_57, %c0_58] : memref<1x128xf32, #tpu.memory_space<vmem>>, vector<1x128xf32>
    %129 = vector.broadcast %128 : vector<1x128xf32> to vector<16x128xf32>
    %130 = arith.addf %127, %129 : vector<16x128xf32>
    %131 = arith.addf %130, %116 : vector<16x128xf32>
    %cst_59 = arith.constant dense<0.000000e+00> : vector<16xf32>
    %132 = vector.multi_reduction <add>, %131, %cst_59 [1] : vector<16x128xf32> to vector<16xf32>
    %133 = vector.shape_cast %132 : vector<16xf32> to vector<16x1xf32>
    %cst_60 = arith.constant 1.280000e+02 : f32
    %134 = vector.broadcast %cst_60 : f32 to vector<16x1xf32>
    %135 = arith.divf %133, %134 : vector<16x1xf32>
    %136 = vector.broadcast %135 : vector<16x1xf32> to vector<16x128xf32>
    %137 = arith.subf %131, %136 : vector<16x128xf32>
    %138 = arith.mulf %137, %137 : vector<16x128xf32>
    %cst_61 = arith.constant dense<0.000000e+00> : vector<16xf32>
    %139 = vector.multi_reduction <add>, %138, %cst_61 [1] : vector<16x128xf32> to vector<16xf32>
    %140 = vector.shape_cast %139 : vector<16xf32> to vector<16x1xf32>
    %cst_62 = arith.constant 1.280000e+02 : f32
    %141 = vector.broadcast %cst_62 : f32 to vector<16x1xf32>
    %142 = arith.divf %140, %141 : vector<16x1xf32>
    %143 = vector.broadcast %135 : vector<16x1xf32> to vector<16x128xf32>
    %144 = arith.subf %131, %143 : vector<16x128xf32>
    %cst_63 = arith.constant 9.99999974E-6 : f32
    %145 = vector.broadcast %cst_63 : f32 to vector<16x1xf32>
    %146 = arith.addf %142, %145 : vector<16x1xf32>
    %147 = math.rsqrt %146 : vector<16x1xf32>
    %148 = vector.broadcast %147 : vector<16x1xf32> to vector<16x128xf32>
    %149 = arith.mulf %144, %148 : vector<16x128xf32>
    %c0_64 = arith.constant 0 : index
    %c0_65 = arith.constant 0 : index
    %150 = vector.load %arg16[%c0_64, %c0_65] : memref<1x128xf32, #tpu.memory_space<vmem>>, vector<1x128xf32>
    %151 = vector.broadcast %150 : vector<1x128xf32> to vector<16x128xf32>
    %152 = arith.mulf %149, %151 : vector<16x128xf32>
    %c0_66 = arith.constant 0 : index
    %c0_67 = arith.constant 0 : index
    %153 = vector.load %arg17[%c0_66, %c0_67] : memref<1x128xf32, #tpu.memory_space<vmem>>, vector<1x128xf32>
    %154 = vector.broadcast %153 : vector<1x128xf32> to vector<16x128xf32>
    %155 = arith.addf %152, %154 : vector<16x128xf32>
    %c0_68 = arith.constant 0 : index
    %c0_69 = arith.constant 0 : index
    %c0_70 = arith.constant 0 : index
    %156 = vector.load %arg18[%c0_68, %c0_69, %c0_70] : memref<1x16x128xf32, #tpu.memory_space<vmem>>, vector<1x16x128xf32>
    %157 = vector.shape_cast %156 : vector<1x16x128xf32> to vector<16x128xf32>
    %158 = vector.shape_cast %155 : vector<16x128xf32> to vector<1x16x128xf32>
    tpu.vector_store %arg18[%c0_68, %c0_69, %c0_70], %158 {strides = array<i32>} : memref<1x16x128xf32, #tpu.memory_space<vmem>>, vector<1x16x128xf32>,
    return
  }
  func.func @transform_0(%arg0: i32, %arg1: i32) -> (i32, i32, i32) {
    %c0_i32 = arith.constant 0 : i32
    %c0_i32_0 = arith.constant 0 : i32
    %c0_i32_1 = arith.constant 0 : i32
    return %arg0, %c0_i32, %c0_i32_0 : i32, i32, i32
  }
  func.func @transform_1(%arg0: i32, %arg1: i32) -> (i32, i32, i32) {
    %c0_i32 = arith.constant 0 : i32
    %c0_i32_0 = arith.constant 0 : i32
    return %arg0, %arg1, %c0_i32 : i32, i32, i32
  }
  func.func @transform_2(%arg0: i32, %arg1: i32) -> (i32, i32) {
    %c0_i32 = arith.constant 0 : i32
    %c0_i32_0 = arith.constant 0 : i32
    %c0_i32_1 = arith.constant 0 : i32
    return %c0_i32, %c0_i32_0 : i32, i32
  }
  func.func @transform_3(%arg0: i32, %arg1: i32) -> (i32, i32) {
    %c0_i32 = arith.constant 0 : i32
    %c0_i32_0 = arith.constant 0 : i32
    %c0_i32_1 = arith.constant 0 : i32
    return %c0_i32, %c0_i32_0 : i32, i32
  }
  func.func @transform_4(%arg0: i32, %arg1: i32) -> (i32, i32) {
    %c0_i32 = arith.constant 0 : i32
    %c0_i32_0 = arith.constant 0 : i32
    %c0_i32_1 = arith.constant 0 : i32
    return %c0_i32, %c0_i32_0 : i32, i32
  }
  func.func @transform_5(%arg0: i32, %arg1: i32) -> (i32, i32) {
    %c0_i32 = arith.constant 0 : i32
    %c0_i32_0 = arith.constant 0 : i32
    %c0_i32_1 = arith.constant 0 : i32
    return %c0_i32, %c0_i32_0 : i32, i32
  }
  func.func @transform_6(%arg0: i32, %arg1: i32) -> (i32, i32) {
    %c0_i32 = arith.constant 0 : i32
    %c0_i32_0 = arith.constant 0 : i32
    %c0_i32_1 = arith.constant 0 : i32
    return %c0_i32, %c0_i32_0 : i32, i32
  }
  func.func @transform_7(%arg0: i32, %arg1: i32) -> (i32, i32) {
    %c0_i32 = arith.constant 0 : i32
    %c0_i32_0 = arith.constant 0 : i32
    %c0_i32_1 = arith.constant 0 : i32
    return %c0_i32, %c0_i32_0 : i32, i32
  }
  func.func @transform_8(%arg0: i32, %arg1: i32) -> (i32, i32) {
    %c0_i32 = arith.constant 0 : i32
    %c0_i32_0 = arith.constant 0 : i32
    %c0_i32_1 = arith.constant 0 : i32
    return %c0_i32, %c0_i32_0 : i32, i32
  }
  func.func @transform_9(%arg0: i32, %arg1: i32) -> (i32, i32) {
    %c0_i32 = arith.constant 0 : i32
    %c0_i32_0 = arith.constant 0 : i32
    %c0_i32_1 = arith.constant 0 : i32
    return %c0_i32, %c0_i32_0 : i32, i32
  }
  func.func @transform_10(%arg0: i32, %arg1: i32) -> (i32, i32) {
    %c0_i32 = arith.constant 0 : i32
    %c0_i32_0 = arith.constant 0 : i32
    %c0_i32_1 = arith.constant 0 : i32
    return %c0_i32, %c0_i32_0 : i32, i32
  }
  func.func @transform_11(%arg0: i32, %arg1: i32) -> (i32, i32) {
    %c0_i32 = arith.constant 0 : i32
    %c0_i32_0 = arith.constant 0 : i32
    %c0_i32_1 = arith.constant 0 : i32
    return %c0_i32, %c0_i32_0 : i32, i32
  }
  func.func @transform_12(%arg0: i32, %arg1: i32) -> (i32, i32) {
    %c0_i32 = arith.constant 0 : i32
    %c0_i32_0 = arith.constant 0 : i32
    %c0_i32_1 = arith.constant 0 : i32
    return %c0_i32, %c0_i32_0 : i32, i32
  }
  func.func @transform_13(%arg0: i32, %arg1: i32) -> (i32, i32) {
    %c0_i32 = arith.constant 0 : i32
    %c0_i32_0 = arith.constant 0 : i32
    %c0_i32_1 = arith.constant 0 : i32
    return %c0_i32, %c0_i32_0 : i32, i32
  }
  func.func @transform_14(%arg0: i32, %arg1: i32) -> (i32, i32) {
    %c0_i32 = arith.constant 0 : i32
    %c0_i32_0 = arith.constant 0 : i32
    %c0_i32_1 = arith.constant 0 : i32
    return %c0_i32, %c0_i32_0 : i32, i32
  }
  func.func @transform_15(%arg0: i32, %arg1: i32) -> (i32, i32) {
    %c0_i32 = arith.constant 0 : i32
    %c0_i32_0 = arith.constant 0 : i32
    %c0_i32_1 = arith.constant 0 : i32
    return %c0_i32, %c0_i32_0 : i32, i32
  }
  func.func @transform_16(%arg0: i32, %arg1: i32) -> (i32, i32, i32) {
    %c0_i32 = arith.constant 0 : i32
    %c0_i32_0 = arith.constant 0 : i32
    return %arg0, %arg1, %c0_i32 : i32, i32, i32
  }
}

</mosaic_0001>

<bundles_post_ra>
// kernel: tpu_custom_call.1
= control target key start
LH: loop header
LB: loop body
LE: loop exit
PB: predicated region body
PF: predicated region fallthrough
CT: control target
= control target key end

     0   :  { %s6429_s0 = inlined_call_operand.hbm [shape: f32[2,16,128], index: 0, kind: input, shape index: {}]   ;;  %s6430_s1 = inlined_call_operand.hbm [shape: f32[2,16,128], index: 1, kind: input, shape index: {}]   ;;  %s6431_s2 = inlined_call_operand.hbm [shape: bf16[128,128], index: 2, kind: input, shape index: {}]   ;;  %s6432_s3 = inlined_call_operand.vmem [shape: f32[1,128], index: 3, kind: input, shape index: {}]   ;;  %s6433_s4 = inlined_call_operand.hbm [shape: bf16[128,256], index: 4, kind: input, shape index: {}]   ;;  %s6434_s5 = inlined_call_operand.vmem [shape: f32[1,256], index: 5, kind: input, shape index: {}]   ;;  %s6435_s6 = inlined_call_operand.hbm [shape: bf16[128,128], index: 6, kind: input, shape index: {}]   ;;  %s6436_s7 = inlined_call_operand.vmem [shape: f32[1,128], index: 7, kind: input, shape index: {}]   ;;  %s6437_s8 = inlined_call_operand.vmem [shape: f32[1,128], index: 8, kind: input, shape index: {}]   ;;  %s6438_s9 = inlined_call_operand.vmem [shape: f32[1,128], index: 9, kind: input, shape index: {}]   ;;  %s6439_s10 = inlined_call_operand.hbm [shape: bf16[128,2048], index: 10, kind: input, shape index: {}]   ;;  %s6440_s11 = inlined_call_operand.vmem [shape: f32[1,2048], index: 11, kind: input, shape index: {}]   ;;  %s6441_s12 = inlined_call_operand.hbm [shape: bf16[2048,128], index: 12, kind: input, shape index: {}]   ;;  %s6442_s13 = inlined_call_operand.vmem [shape: f32[1,128], index: 13, kind: input, shape index: {}]   ;;  %s6443_s14 = inlined_call_operand.vmem [shape: f32[1,128], index: 14, kind: input, shape index: {}]   ;;  %s6444_s15 = inlined_call_operand.vmem [shape: f32[1,128], index: 15, kind: input, shape index: {}]   ;;  %s6445_s16 = inlined_call_operand.hbm [shape: f32[2,16,128], index: 16, kind: output, shape index: {}]  }
   0x1   :  { %6462 = sst [smem:[#allocation26_spill]] %s6429_s0 }
   0x2   :  { %6463 = sst [smem:[#allocation27_spill]] %s6431_s2 }
   0x3   :  { %6464 = sst [smem:[#allocation28_spill]] %s6432_s3 }
   0x4   :  { %6465 = sst [smem:[#allocation29_spill]] %s6433_s4 }
   0x5   :  { %6466 = sst [smem:[#allocation30_spill]] %s6435_s6 }
   0x6   :  { %6467 = sst [smem:[#allocation31_spill]] %s6436_s7 }
   0x7   :  { %6468 = sst [smem:[#allocation32_spill]] %s6437_s8 }
   0x8   :  { %6469 = sst [smem:[#allocation33_spill]] %s6438_s9 }
   0x9   :  { %6470 = sst [smem:[#allocation34_spill]] %s6439_s10 }
   0xa   :  { %6471 = sst [smem:[#allocation35_spill]] %s6440_s11 }
   0xb   :  { %6472 = sst [smem:[#allocation36_spill]] %s6441_s12 }
   0xc   :  { %6473 = sst [smem:[#allocation37_spill]] %s6442_s13 }
   0xd   :  { %6474 = sst [smem:[#allocation38_spill]] %s6443_s14 }
   0xe   :  { %6475 = sst [smem:[#allocation39_spill]] %s6444_s15 }
   0xf   :  { %6476 = sst [smem:[#allocation40_spill]] %s6445_s16 }
  0x10   :  { %21 = vsyncpa [#allocation6], 0 }
  0x11   :  { %23 = vsyncpa [#allocation6 + $0x1], 0 }
  0x12   :  { %24 = vsyncpa [#allocation9], 0 }
  0x13   :  { %26 = vsyncpa [#allocation9 + $0x1], 0 }
  0x14   :  { %27 = vsyncpa [#allocation12], 0 }
  0x15   :  { %28 = vsyncpa [#allocation15], 0 }
  0x16   :  { %29 = vsyncpa [#allocation7], 0 }
  0x17   :  { %31 = vsyncpa [#allocation7 + $0x1], 0  ;;  %s5815_s21 = smov 0   ;;  %s5817_s22 = smov 0  }
  0x18   :  { %s5819_s23 = smov 0   ;;  %s5821_s24 = smov 0  }
  0x19   :  { %s5823_s25 = smov 0   ;;  %s5825_s26 = smov 0  }
  0x1a LB: > { %6477 = sst [smem:[#allocation24_spill]] %s5699_s24  ;;  %s5846_s27 = sadd.s32 4294967295, %s5707_s26   ;;  %s5707_s26 = sphi %s5825_s26, %s37_s26   ;;  %s5703_s25 = sphi %s5823_s25, %s6523_s25   ;;  %s5699_s24 = sphi %s5821_s24, %s6522_s24   ;;  %s5695_s23 = sphi %s5819_s23, %s6521_s23   ;;  %s5691_s22 = sphi %s5817_s22, %s6520_s22   ;;  %s5687_s21 = sphi %s5815_s21, %s6519_s21  }
  0x1b   : > { %p4437_p0 = scmp.ge.s32.totalorder %s5707_s26, 1  ;;  %p6453_p1 = scmp.eq.s32.totalorder %s5846_s27, 0 }
  0x1c   : > { %p430_p2 = scmp.lt.s32.totalorder %s5707_s26, 3  ;;  %s5709_s29 = smov [#allocation10]  }
  0x1d   : > { %s442_s30 = sshll.u32 %s5709_s29, 4  ;;  %s5710_s17 = smov [#allocation11]   ;;  %s5855_s30 = int_to_ptr.vmem [resolvable:$true] %s442_s30 }
  0x1e   : > { %p5851_p3 = pnand %p4437_p0, %p430_p2  ;;  %s458_s18 = sshll.u32 %s5710_s17, 4  ;;  %s5866_s18 = int_to_ptr.vmem [resolvable:$true] %s458_s18 }
  0x1f   : > { %s6480_s2 = sld [smem:[#allocation27_spill]] }
  0x20   : > { %s6478_s28 = scalar_select %p5851_p3, 1, 0 }
  0x21   : > { %p5094_p4 = pneg %p5851_p3 }
  0x23   : > { %p5862_p6 = pnand %p5094_p4, %p6453_p1 }
  0x25   : > { %s5409_s16 = scalar_lea.hbm %s6480_s2, 1024  ;;  %p5876_p8 = pneg %p5862_p6 }
  0x26   : > { %p5410_p7 = scmp.ne.s32.totalorder %s6480_s2, %s5409_s16  ;;  %p5416_p11 = scmp.lt.u32.totalorder %s5409_s16, %s6480_s2 }
  0x28   : > { %p5412_p9 = pnand %p5876_p8, %p5410_p7 }
  0x2a   : > { %p5413_p10 = pneg %p5412_p9 }
  0x2c   : > { %p5418_p12 = pnand %p5416_p11, %p5413_p10 }
  0x2e   : > { %5421 = shalt.err (!%p5418_p12)
}
  0x2f   : > { %s5422_s15 = scalar_lea.vmem %s5855_s30, 1024  ;;  %p5430_p4 = scmp.lt.s32.totalorder %s5855_s30, %s5855_s30 }
  0x30   : > { %p5423_p13 = scmp.ne.s32.totalorder %s5855_s30, %s5422_s15  ;;  %p5431_p5 = scmp.lt.s32.totalorder %s5422_s15, %s5422_s15 }
  0x32   : > { %p5425_p0 = pnand %p5423_p13, %p5876_p8  ;;  %p5432_p7 = por %p5431_p5, %p5430_p4 }
  0x34   : > { %p5426_p2 = pneg %p5425_p0 }
  0x36   : > { %p5433_p9 = pnand %p5432_p7, %p5426_p2 }
  0x38   : > { %5436 = shalt.err (!%p5433_p9)
}
  0x39   : > { %s6451_s19 = smov 64   ;;  %s6449_s16 = smov 4  }
  0x3a   : > { %5097 = dma.hbm_to_vmem [thread:$0]  (!%p5862_p6), %s6480_s2, 1024, %s5855_s30, [#allocation9], %s6451_s19, %s6451_s19, %s6449_s16  }
  0x3b   : > { %s6482_s4 = sld [smem:[#allocation29_spill]] }
  0x41   : > { %s5437_s15 = scalar_lea.hbm %s6482_s4, 2048 }
  0x42   : > { %p5438_p5 = scmp.ne.s32.totalorder %s6482_s4, %s5437_s15  ;;  %p5444_p12 = scmp.lt.u32.totalorder %s5437_s15, %s6482_s4 }
  0x44   : > { %p5440_p10 = pnand %p5438_p5, %p5876_p8 }
  0x46   : > { %p5441_p11 = pneg %p5440_p10 }
  0x48   : > { %p5446_p13 = pnand %p5444_p12, %p5441_p11 }
  0x4a   : > { %5449 = shalt.err (!%p5446_p13)
}
  0x4b   : > { %s5450_s30 = scalar_lea.vmem %s5866_s18, 2048  ;;  %p5458_p7 = scmp.lt.s32.totalorder %s5866_s18, %s5866_s18 }
  0x4c   : > { %p5451_p0 = scmp.ne.s32.totalorder %s5866_s18, %s5450_s30  ;;  %p5459_p9 = scmp.lt.s32.totalorder %s5450_s30, %s5450_s30 }
  0x4e   : > { %p5453_p2 = pnand %p5451_p0, %p5876_p8  ;;  %p5460_p5 = por %p5459_p9, %p5458_p7 }
  0x50   : > { %p5454_p4 = pneg %p5453_p2 }
  0x52   : > { %p5461_p10 = pnand %p5460_p5, %p5454_p4 }
  0x54   : > { %5464 = shalt.err (!%p5461_p10)
}
  0x55   : > { %s6455_s11 = smov 128   ;;  %s6457_s8 = smov 8  }
  0x56   : > { %5100 = dma.hbm_to_vmem [thread:$0]  (!%p5862_p6), %s6482_s4, 2048, %s5866_s18, [#allocation12], %s6455_s11, %s6455_s11, %s6457_s8  }
  0x57   : > { %s5715_s24 = smov [#allocation14]   ;;  %s5716_s29 = smov [#allocation13]  }
  0x58   : > { %s496_s20 = sshll.u32 %s5715_s24, 4  ;;  %s474_s17 = sshll.u32 %s5716_s29, 4  ;;  %s497_s20 = int_to_ptr.vmem [resolvable:$true] %s496_s20  ;;  %s475_s17 = int_to_ptr.vmem [resolvable:$true] %s474_s17 }
  0x59   : > { %s6483_s10 = sld [smem:[#allocation34_spill]] }
  0x5f   : > { %s5465_s16 = scalar_lea.hbm %s6483_s10, 16384 }
  0x60   : > { %p5466_p11 = scmp.ne.s32.totalorder %s6483_s10, %s5465_s16  ;;  %p5472_p0 = scmp.lt.u32.totalorder %s5465_s16, %s6483_s10 }
  0x62   : > { %p5468_p12 = pnand %p5466_p11, %p5876_p8 }
  0x64   : > { %p5469_p13 = pneg %p5468_p12 }
  0x66   : > { %p5474_p2 = pnand %p5472_p0, %p5469_p13 }
  0x68   : > { %5477 = shalt.err (!%p5474_p2)
}
  0x69   : > { %s5478_s18 = scalar_lea.vmem %s497_s20, 16384  ;;  %p5486_p5 = scmp.lt.s32.totalorder %s497_s20, %s497_s20 }
  0x6a   : > { %p5479_p4 = scmp.ne.s32.totalorder %s497_s20, %s5478_s18  ;;  %p5487_p10 = scmp.lt.s32.totalorder %s5478_s18, %s5478_s18 }
  0x6c   : > { %p5481_p7 = pnand %p5479_p4, %p5876_p8  ;;  %p5488_p1 = por %p5487_p10, %p5486_p5 }
  0x6e   : > { %p5482_p9 = pneg %p5481_p7 }
  0x70   : > { %p5489_p3 = pnand %p5488_p1, %p5482_p9 }
  0x72   : > { %5492 = shalt.err (!%p5489_p3)
}
  0x73   : > { %s5717_s2 = smov 1024   ;;  %s6484_s19 = smov 64  }
  0x74   : > { %5106 = dma.hbm_to_vmem [thread:$0]  (!%p5862_p6), %s6483_s10, 16384, %s497_s20, [#allocation15], %s5717_s2, %s5717_s2, %s6484_s19  }
  0x75   : > { %s6485_s6 = sld [smem:[#allocation30_spill]] }
  0x7b   : > { %s5493_s13 = scalar_lea.hbm %s6485_s6, 1024 }
  0x7c   : > { %p5494_p11 = scmp.ne.s32.totalorder %s6485_s6, %s5493_s13  ;;  %p5500_p12 = scmp.lt.u32.totalorder %s5493_s13, %s6485_s6 }
  0x7e   : > { %p5496_p1 = pnand %p5494_p11, %p5876_p8 }
  0x80   : > { %p5497_p3 = pneg %p5496_p1 }
  0x82   : > { %p5502_p13 = pnand %p5500_p12, %p5497_p3 }
  0x84   : > { %5505 = shalt.err (!%p5502_p13)
}
  0x85   : > { %s5506_s18 = scalar_lea.vmem %s475_s17, 1024  ;;  %p5514_p7 = scmp.lt.s32.totalorder %s475_s17, %s475_s17 }
  0x86   : > { %p5507_p0 = scmp.ne.s32.totalorder %s475_s17, %s5506_s18  ;;  %p5515_p9 = scmp.lt.s32.totalorder %s5506_s18, %s5506_s18 }
  0x88   : > { %p5509_p2 = pnand %p5507_p0, %p5876_p8  ;;  %p5516_p5 = por %p5515_p9, %p5514_p7 }
  0x8a   : > { %p5510_p4 = pneg %p5509_p2 }
  0x8c   : > { %p5517_p10 = pnand %p5516_p5, %p5510_p4 }
  0x8e   : > { %5520 = shalt.err (!%p5517_p10)
}
  0x8f   : > { %s6486_s20 = smov 4   ;;  %s5718_s3 = smov [#allocation16]  }
  0x90   : > { %5103 = dma.hbm_to_vmem [thread:$0]  (!%p5862_p6), %s6485_s6, 1024, %s475_s17, [#allocation12], %s6484_s19, %s6484_s19, %s6486_s20  }
  0x91   : > { %s512_s7 = sshll.u32 %s5718_s3, 4  ;;  %s6487_s12 = sld [smem:[#allocation36_spill]]  ;;  %s513_s7 = int_to_ptr.vmem [resolvable:$true] %s512_s7 }
  0x97   : > { %s5521_s24 = scalar_lea.hbm %s6487_s12, 16384 }
  0x98   : > { %p5522_p11 = scmp.ne.s32.totalorder %s6487_s12, %s5521_s24  ;;  %p5528_p12 = scmp.lt.u32.totalorder %s5521_s24, %s6487_s12 }
  0x9a   : > { %p5524_p1 = pnand %p5522_p11, %p5876_p8 }
  0x9c   : > { %p5525_p3 = pneg %p5524_p1 }
  0x9e   : > { %p5530_p13 = pnand %p5528_p12, %p5525_p3 }
  0xa0   : > { %5533 = shalt.err (!%p5530_p13)
}
  0xa1   : > { %s5534_s17 = scalar_lea.vmem %s513_s7, 16384  ;;  %p5542_p7 = scmp.lt.s32.totalorder %s513_s7, %s513_s7 }
  0xa2   : > { %p5535_p0 = scmp.ne.s32.totalorder %s513_s7, %s5534_s17  ;;  %p5543_p9 = scmp.lt.s32.totalorder %s5534_s17, %s5534_s17 }
  0xa4   : > { %p5537_p2 = pnand %p5535_p0, %p5876_p8  ;;  %p5544_p5 = por %p5543_p9, %p5542_p7 }
  0xa6   : > { %p5538_p4 = pneg %p5537_p2 }
  0xa8   : > { %p5545_p10 = pnand %p5544_p5, %p5538_p4 }
  0xaa   : > { %5548 = shalt.err (!%p5545_p10)
}
  0xab   : > { %5109 = dma.hbm_to_vmem [thread:$0]  (!%p5862_p6), %s6487_s12, 16384, %s513_s7, [#allocation15], %s6484_s19, %s6484_s19, %s6486_s20  }
  0xac   : > { %s4436_s14 = sadd.s32 4294967294, %s5707_s26   ;;  %s49_s0 = sadd.s32 1, %s5703_s25 }
  0xad   : > { %p51_p8 = scmp.ge.s32.totalorder %s49_s0, 2  ;;  %s56_s3 = sadd.s32 1, %s5695_s23 }
  0xae   : > { %p63_p11 = scmp.ne.s32.totalorder %s5695_s23, %s5691_s22  ;;  %p64_p1 = scmp.eq.s32.totalorder %s5707_s26, 0 }
  0xaf   : > { %s6525_s0 = smov (%p51_p8, %s49_s0), 0  ;;  %p69_p12 = scmp.ne.s32.totalorder %s5691_s22, %s5687_s21 }
  0xb0   : > { %6488 = sst [smem:[#allocation25_spill]] %s6525_s0  ;;  %p5995_p3 = por %p64_p1, %p63_p11 }
  0xb1   : > { %s53_s19 = ssub.s32 %s5703_s25, %s6525_s0  ;;  %p417_p6 = scmp.eq.s32.totalorder %s5846_s27, 1 }
  0xb2   : > { %p54_p13 = scmp.eq.s32.totalorder %s53_s19, 0  ;;  %p6490_p0 = scmp.eq.s32.totalorder %s5846_s27, 0 }
  0xb3   : > { %p6010_p4 = por %p417_p6, %p63_p11  ;;  %p423_p7 = scmp.eq.s32.totalorder %s4436_s14, 1 }
  0xb4   : > { %p6006_p2 = por %p6490_p0, %p69_p12  ;;  %p5126_p5 = scmp.lt.s32.totalorder %s5707_s26, 2 }
  0xb5   : > { %s6492_s7 = scalar_select %p6010_p4, 1, 0 }
  0xb6   : > { %s6015_s13 = scalar_select %p54_p13, %s5695_s23, %s56_s3  }
  0xb7   : > { %p6017_p9 = por %p423_p7, %p69_p12  ;;  %s535_s29 = sand.u32 1, %s5695_s23  }
  0xb8   : > { %s4767_s15 = sshll.u32 %s5703_s25, 8  ;;  %s6024_s30 = sshll.u32 %s535_s29, 4 }
  0xb9   : > { %s6493_s24 = scalar_select %p6017_p9, 1, 0 }
  0xba   : > { %s6494_s2 = sld [smem:[#allocation26_spill]]  ;;  %s539_s14 = scalar_lea.vmem [#allocation5], %s6024_s30 }
  0xbb   : > { %s546_s3 = sshll.u32 %s539_s14, 4  ;;  %p6034_p10 = pnand %p5126_p5, %p5995_p3  ;;  %s6038_s3 = int_to_ptr.vmem [resolvable:$true] %s546_s3 }
  0xbc   : > { %s6043_s17 = scalar_lea.hbm %s6430_s1, %s4767_s15  ;;  %s6045_s8 = scalar_lea.sflag [#allocation6], %s535_s29 }
  0xbd   : > { %p5551_p11 = pneg %p6034_p10 }
  0xc0   : > { %s6029_s9 = scalar_lea.hbm %s6494_s2, %s4767_s15  ;;  %s5554_s6 = scalar_lea.hbm %s6494_s2, 512 }
  0xc1   : > { %s5549_s4 = scalar_lea.hbm %s6029_s9, 256  ;;  %p5555_p12 = scmp.lt.u32.totalorder %s6029_s9, %s6494_s2 }
  0xc2   : > { %p5550_p8 = scmp.ne.s32.totalorder %s6029_s9, %s5549_s4  ;;  %p5556_p6 = scmp.lt.u32.totalorder %s5554_s6, %s5549_s4 }
  0xc3   : > { %p5558_p0 = scmp.lt.u32.totalorder %s5549_s4, %s6029_s9 }
  0xc4   : > { %p5552_p1 = pnand %p5551_p11, %p5550_p8  ;;  %p5557_p13 = por %p5556_p6, %p5555_p12 }
  0xc6   : > { %p5553_p3 = pneg %p5552_p1  ;;  %p5559_p7 = por %p5558_p0, %p5557_p13 }
  0xc8   : > { %p5560_p5 = pnand %p5559_p7, %p5553_p3 }
  0xca   : > { %5563 = shalt.err (!%p5560_p5)
}
  0xcb   : > { %s5564_s11 = scalar_lea.vmem %s6038_s3, 256  ;;  %s5719_s29 = smov [#allocation5]  }
  0xcc   : > { %p5565_p8 = scmp.ne.s32.totalorder %s6038_s3, %s5564_s11  ;;  %s5569_s15 = sshll.u32 %s5719_s29, 4  ;;  %s5570_s15 = int_to_ptr.vmem [resolvable:$false] %s5569_s15 }
  0xcd   : > { %s5571_s10 = scalar_lea.vmem %s5570_s15, 512  ;;  %p5572_p4 = scmp.lt.s32.totalorder %s6038_s3, %s5570_s15 }
  0xce   : > { %p5567_p1 = pnand %p5565_p8, %p5551_p11  ;;  %p5573_p12 = scmp.lt.s32.totalorder %s5571_s10, %s5564_s11 }
  0xd0   : > { %p5568_p9 = pneg %p5567_p1  ;;  %p5574_p6 = por %p5573_p12, %p5572_p4 }
  0xd2   : > { %p5575_p13 = pnand %p5574_p6, %p5568_p9 }
  0xd4   : > { %5578 = shalt.err (!%p5575_p13)
}
  0xd5   : > { %s6496_s4 = smov 8   ;;  %s6497_s6 = smov 128  }
  0xd6   : > { %5113 = dma.hbm_to_vmem [thread:$0]  (!%p6034_p10), %s6029_s9, 256, %s6038_s3, %s6045_s8, %s6497_s6, %s6497_s6, %s6496_s4  }
  0xd7   : > { %s560_s12 = scalar_lea.vmem [#allocation8], %s6024_s30  ;;  %s556_s16 = sand.u32 1, %s5707_s26  }
  0xd8   : > { %s569_s18 = sshll.u32 %s560_s12, 4  ;;  %s6080_s14 = scalar_lea.sflag [#allocation9], %s556_s16  ;;  %s6078_s18 = int_to_ptr.vmem [resolvable:$true] %s569_s18 }
  0xd9   : > { %s5579_s11 = scalar_lea.hbm %s6043_s17, 256  ;;  %s5584_s10 = scalar_lea.hbm %s6430_s1, 512 }
  0xda   : > { %p5580_p4 = scmp.ne.s32.totalorder %s6043_s17, %s5579_s11  ;;  %p5585_p0 = scmp.lt.u32.totalorder %s6043_s17, %s6430_s1 }
  0xdb   : > { %p5586_p7 = scmp.lt.u32.totalorder %s5584_s10, %s5579_s11  ;;  %p5588_p8 = scmp.lt.u32.totalorder %s5579_s11, %s6043_s17 }
  0xdc   : > { %p5582_p9 = pnand %p5580_p4, %p5551_p11 }
  0xdd   : > { %p5587_p5 = por %p5586_p7, %p5585_p0 }
  0xde   : > { %p5583_p3 = pneg %p5582_p9 }
  0xdf   : > { %p5589_p1 = por %p5588_p8, %p5587_p5 }
  0xe1   : > { %p5590_p12 = pnand %p5589_p1, %p5583_p3 }
  0xe3   : > { %5593 = shalt.err (!%p5590_p12)
}
  0xe4   : > { %s5594_s8 = scalar_lea.vmem %s6078_s18, 256  ;;  %s5720_s30 = smov [#allocation8]  }
  0xe5   : > { %p5595_p6 = scmp.ne.s32.totalorder %s6078_s18, %s5594_s8  ;;  %s5599_s9 = sshll.u32 %s5720_s30, 4  ;;  %s5600_s9 = int_to_ptr.vmem [resolvable:$false] %s5599_s9 }
  0xe6   : > { %s5601_s0 = scalar_lea.vmem %s5600_s9, 512  ;;  %p5602_p9 = scmp.lt.s32.totalorder %s6078_s18, %s5600_s9 }
  0xe7   : > { %p5597_p13 = pnand %p5595_p6, %p5551_p11  ;;  %p5603_p0 = scmp.lt.s32.totalorder %s5601_s0, %s5594_s8 }
  0xe9   : > { %p5598_p4 = pneg %p5597_p13  ;;  %p5604_p7 = por %p5603_p0, %p5602_p9 }
  0xeb   : > { %p5605_p5 = pnand %p5604_p7, %p5598_p4 }
  0xed   : > { %5608 = shalt.err (!%p5605_p5)
}
  0xee   : > { %5116 = dma.hbm_to_vmem [thread:$0]  (!%p6034_p10), %s6043_s17, 256, %s6078_s18, %s6080_s14, %s6497_s6, %s6497_s6, %s6496_s4  }
  0xef   : > { %p6498_p11 = scmp.ne.s32.totalorder %s6478_s28, 0 }
  0xf0   : > { %s6112_s2 = sand.u32 (!%p6498_p11), 1, %s5691_s22  }
  0xf1   : > { %581 = sbr.rel (%p6498_p11) target bundleno = 3362 (0xd22), region = 84  ;;  %s6115_s3 = sshll.u32 (!%p6498_p11), %s6112_s2, 4 }
  0xf2   : > { %s584_s19 = scalar_lea.sflag (!%p6498_p11), [#allocation6], %s6112_s2  ;;  %s587_s12 = scalar_lea.vmem (!%p6498_p11), [#allocation5], %s6115_s3 }
  0xf8   : > { %5662 = dma.done.wait (%p6006_p2), %s584_s19, 256  }
  0xf9   : > { %5664 = vsyncadd (%p6006_p2), %s584_s19, 4294967040  ;;  %s592_s28 = sand.u32 1, %s5846_s27   ;;  %s6125_s4 = scalar_lea.vmem [#allocation8], %s6115_s3 }
  0xfa   : > { %s593_s17 = scalar_lea.sflag [#allocation9], %s592_s28 }
  0xfb   : > { %5666 = dma.done.wait (%p6006_p2), %s593_s17, 256  }
  0xfc   : > { %5668 = vsyncadd (%p6006_p2), %s593_s17, 4294967040  ;;  %p6499_p10 = scmp.eq.s32.totalorder %s5846_s27, 0 }
  0xfe   : > { %5670 = dma.done.wait (%p6499_p10), [#allocation9], 1024   ;;  %p6500_p3 = pmov %p6499_p10 }
 0x100   : > { %5672 = vsyncadd (%p6500_p3), [#allocation9], 4294966272  ;;  %p6501_p8 = pmov %p6500_p3 }
 0x101   : > { %p6502_p1 = pmov %p6500_p3 }
 0x102   : > { %5674 = dma.done.wait (%p6501_p8), [#allocation12], 3072  }
 0x103   : > { %5676 = vsyncadd (%p6502_p1), [#allocation12], 4294964224  ;;  %p6503_p12 = pmov %p6502_p1 }
 0x104   : > { %p6504_p6 = pmov %p6502_p1 }
 0x105   : > { %5678 = dma.done.wait (%p6503_p12), [#allocation15], 32768  }
 0x106   : > { %5680 = vsyncadd (%p6504_p6), [#allocation15], 4294934528  ;;  %v5721_v0 = vmov 0.0   ;;  %v5722_v1 = vmov 0   ;;  %vm5723_vm0 = vmmov 0   ;;  %v5205_v6 = vld [vmem:[#allocation10] sm:$0xff]   ;;  %v698_v32 = vlaneseq }
 0x107   : > { %4980 = vmatprep.subr.bf16.mxu1 %v5721_v0  ;;  %820 = vmatprep.mubr.bf16.mxu0 %v5722_v1  ;;  %v5199_v2 = vld [vmem:[#allocation11 + $0x4] ss:$8 sps:$4 sm:$0xff]   ;;  %v5201_v3 = vld [vmem:[#allocation11] ss:$8 sps:$4 sm:$0xff]   ;;  %v5202_v4 = vld [vmem:[#allocation11 + $0x14] ss:$8 sps:$4 sm:$0xff]  }
 0x108   : > { %4996 = vmatprep.mubr.msk.bf16.mxu1 %vm5723_vm0, %v5721_v0  ;;  %788 = vmatprep.subr.bf16.mxu0 %v5199_v2  ;;  %v5204_v5 = vld [vmem:[#allocation11 + $0x10] ss:$8 sps:$4 sm:$0xff]   ;;  %v5206_v7 = vld [vmem:[#allocation11 + $0x24] ss:$8 sps:$4 sm:$0xff]   ;;  %v5208_v9 = vld [vmem:[#allocation11 + $0x20] ss:$8 sps:$4 sm:$0xff]  }
 0x109   : > { %789 = vmatpush1.bf16.msra.mxu0 %v5201_v3  ;;  %4981 = vmatpush3.bf16.msra.mxu1 %v5205_v6  ;;  %v5209_v8 = vld [vmem:[#allocation10 + $0x8] sm:$0xff]   ;;  %v5210_v10 = vld [vmem:[#allocation11 + $0x34] ss:$8 sps:$4 sm:$0xff]   ;;  %v5212_v12 = vld [vmem:[#allocation11 + $0x30] ss:$8 sps:$4 sm:$0xff]   ;;  %v6166_v33 = vshrl.u32 %v698_v32, 7 }
 0x10a   : > { %790 = vmatprep.subr.bf16.mxu0 %v5202_v4  ;;  %4982 = vmatprep.subr.bf16.mxu1 %v5721_v0  ;;  %v5213_v11 = vld [vmem:[#allocation10 + $0x10] sm:$0xff]   ;;  %v5214_v13 = vld [vmem:[#allocation11 + $0x44] ss:$8 sps:$4 sm:$0xff]   ;;  %v5217_v14 = vld [vmem:[#allocation10 + $0x18] sm:$0xff]   ;;  %s6505_s16 = sld [smem:[#allocation28_spill]]  ;;  %vm953_vm1 = vcmask 261120  }
 0x10b   : > { %v5216_v15 = vld [vmem:[#allocation11 + $0x40] ss:$8 sps:$4 sm:$0xff]   ;;  %v5218_v16 = vld [vmem:[#allocation11 + $0x54] ss:$8 sps:$4 sm:$0xff]   ;;  %v5220_v18 = vld [vmem:[#allocation11 + $0x50] ss:$8 sps:$4 sm:$0xff]  }
 0x10c   : > { %v5221_v17 = vld [vmem:[#allocation10 + $0x20] sm:$0xff]   ;;  %v5225_v20 = vld [vmem:[#allocation10 + $0x28] sm:$0xff]   ;;  %v5226_v22 = vld [vmem:[#allocation11 + $0x74] ss:$8 sps:$4 sm:$0xff]   ;;  %v6169_v34 = vsub.s32 0, %v6166_v33  ;;  %v6175_v36 = vsub.s32 1, %v6166_v33 }
 0x10d   : > { %791 = vmatpush1.bf16.msra.mxu0 %v5204_v5  ;;  %4983 = vmatpush3.bf16.msra.mxu1 %v5209_v8  ;;  %v5222_v19 = vld [vmem:[#allocation11 + $0x64] ss:$8 sps:$4 sm:$0xff]   ;;  %v5224_v21 = vld [vmem:[#allocation11 + $0x60] ss:$8 sps:$4 sm:$0xff]   ;;  %v5229_v23 = vld [vmem:[#allocation10 + $0x30] sm:$0xff]   ;;  %vm1001_vm2 = vcmask 130048  }
 0x10e   : > { %792 = vmatprep.subr.bf16.mxu0 %v5206_v7  ;;  %4984 = vmatprep.subr.bf16.mxu1 %v5721_v0  ;;  %v5228_v24 = vld [vmem:[#allocation11 + $0x70] ss:$8 sps:$4 sm:$0xff]   ;;  %s5724_s14 = smov 96   ;;  %s5725_s11 = smov 32   ;;  %vm1200_vm3 = vcmask 523520   ;;  %vm1328_vm4 = vcmask 785920  }
 0x10f   : > { %v677_v25 = vld [vmem:[%s587_s12] sm:$0xff]  ;;  %v678_v26 = vld [vmem:[%s587_s12 + $0x8] sm:$0xff]  ;;  %s5726_s29 = smov 64   ;;  %vm1456_vm5 = vcmask 1048320   ;;  %s6506_s8 = sld [smem:[#allocation31_spill]] }
 0x110   : > { %v5230_v27 = vld [vmem:[#allocation10 + $0x38] sm:$0xff]   ;;  %v835_v28 = vld [vmem:[%s6125_s4] sm:$0xff]  ;;  %v679_v30 = vpack.c.bf16 %v678_v26, %v677_v25  ;;  %s6507_s0 = sld [smem:[#allocation32_spill]]  ;;  %s6508_s28 = sld [smem:[#allocation33_spill]] }
 0x111   : > { %793 = vmatpush1.bf16.msra.mxu0 %v5208_v9  ;;  %4985 = vmatpush3.bf16.msra.mxu1 %v5213_v11  ;;  %v836_v29 = vld [vmem:[%s6125_s4 + $0x8] sm:$0xff]  ;;  %s6509_s27 = sld [smem:[#allocation35_spill]]  ;;  %s6512_s10 = sld [smem:[#allocation38_spill]] }
 0x112   : > { %794 = vmatprep.subr.bf16.mxu0 %v5210_v10  ;;  %4986 = vmatprep.subr.bf16.mxu1 %v5721_v0  ;;  %v837_v31 = vpack.c.bf16 %v836_v29, %v835_v28  ;;  %v696_v35 = vld [vmem:[%s6434_s5] sm:$0x3]  ;;  %s6513_s9 = sld [smem:[#allocation39_spill]]  ;;  %s669_s19 = scalar_lea.vmem [#allocation17], %s6115_s3 }
 0x113   : > { %v701_v37 = vrot.slane %v696_v35, %v6169_v34  ;;  %v705_v39 = vrot.slane %v696_v35, %v6175_v36  ;;  %v4475_v40 = vld [vmem:[%s6505_s16] ss:$0 sm:$0xff]  ;;  %s4278_s12 = sshll.u32 %s669_s19, 4  ;;  %s4263_s6 = scalar_lea.sflag [#allocation7], %s6112_s2  ;;  %s6380_s12 = int_to_ptr.vmem [resolvable:$true] %s4278_s12 }
 0x114   : > { %s5609_s18 = scalar_lea.vmem %s6380_s12, 256  ;;  %p6515_p13 = scmp.ne.s32.totalorder %s6492_s7, 0 }
 0x115   : > { %795 = vmatpush1.bf16.msra.mxu0 %v5212_v12  ;;  %4987 = vmatpush3.bf16.msra.mxu1 %v5217_v14  ;;  %p5610_p2 = scmp.ne.s32.totalorder %s6380_s12, %s5609_s18  ;;  %s5727_s3 = smov [#allocation17]  }
 0x116   : > { %796 = vmatprep.subr.bf16.mxu0 %v5214_v13  ;;  %4988 = vmatprep.subr.bf16.mxu1 %v5721_v0  ;;  %s5613_s16 = sshll.u32 %s5727_s3, 4  ;;  %s5614_s16 = int_to_ptr.vmem [resolvable:$false] %s5613_s16 }
 0x117   : > { %p5611_p4 = pnand %p5610_p2, %p6515_p13  ;;  %p5616_p0 = scmp.lt.s32.totalorder %s6380_s12, %s5614_s16 }
 0x119   : > { %797 = vmatpush1.bf16.msra.mxu0 %v5216_v15  ;;  %4989 = vmatpush3.bf16.msra.mxu1 %v5221_v17  ;;  %p5612_p9 = pneg %p5611_p4 }
 0x11a   : > { %798 = vmatprep.subr.bf16.mxu0 %v5218_v16  ;;  %4990 = vmatprep.subr.bf16.mxu1 %v5721_v0 }
 0x11d   : > { %799 = vmatpush1.bf16.msra.mxu0 %v5220_v18  ;;  %4991 = vmatpush3.bf16.msra.mxu1 %v5225_v20 }
 0x11e   : > { %800 = vmatprep.subr.bf16.mxu0 %v5222_v19  ;;  %4992 = vmatprep.subr.bf16.mxu1 %v5721_v0 }
 0x121   : > { %801 = vmatpush1.bf16.msra.mxu0 %v5224_v21  ;;  %4993 = vmatpush3.bf16.msra.mxu1 %v5229_v23 }
 0x122   : > { %802 = vmatprep.subr.bf16.mxu0 %v5226_v22  ;;  %4994 = vmatprep.subr.bf16.mxu1 %v5721_v0 }
 0x125   : > { %803 = vmatpush1.bf16.msra.mxu0 %v5228_v24  ;;  %4995 = vmatpush3.bf16.msra.mxu1 %v5230_v27 }
 0x126   : > { %5024 = vmatprep.subr.bf16.mxu0 %v5721_v0  ;;  %5000 = vmatprep.subr.bf16.mxu1 %v5721_v0 }
 0x128   : > { %821 = vmatmul.mubr.bf16.vlgmr.msra.gmra.mrb[0].mxu0 %v679_v30  ;;  %4997 = vmatmul.mubr.bf16.vlgmr.msra.gmra.mrb[0].mxu1 %v837_v31 }
 0x129   : > { %5026 = vmatprep.mubr.msk.bf16.mxu0 %vm5723_vm0, %v5721_v0  ;;  %5002 = vmatprep.mubr.msk.bf16.mxu1 %vm5723_vm0, %v5721_v0 }
 0x1fb   : > { %v822_v38 = vpop.f32.mrb[0].mxu0  ;;  %v943_v43 = vpop.f32.mrb[0].mxu1 }
 0x1fc   : > { %v824_v41 = vpop.f32.mrb[1].mxu0  ;;  %v823_v44 = vadd.f32 %v822_v38, %v701_v37  ;;  %v944_v47 = vadd.f32 %v4475_v40, %v943_v43  ;;  %v4998_v48 = vpop.f32.mrb[1].mxu1 }
 0x1fd   : > { %v826_v42 = vpop.f32.mrb[2].mxu0  ;;  %v825_v49 = vadd.f32 %v824_v41, %v705_v39  ;;  %v946_v51 = vpop.f32.mrb[2].mxu1 }
 0x1fe   : > { %v827_v45 = vadd.f32 %v826_v42, %v701_v37  ;;  %v828_v46 = vpop.f32.mrb[3].mxu0  ;;  %v947_v53 = vadd.f32 %v4475_v40, %v946_v51  ;;  %v4999_v54 = vpop.f32.mrb[3].mxu1 }
 0x1ff   : > { %v829_v50 = vadd.f32 %v828_v46, %v705_v39 }
 0x200   : > { %v831_v52 = vpack.c.bf16 %v827_v45, %v823_v44  ;;  %v950_v56 = vpack.c.bf16 %v947_v53, %v944_v47 }
 0x201   : > { %v6182_v55 = vpack.c.bf16 %v829_v50, %v825_v49 }
 0x202   : > { %v958_v57 = vsel %vm953_vm1, %v831_v52, 0 }
 0x203   : > { %5001 = vmatpush3.bf16.xpose.msra.mxu1 %v958_v57 }
 0x204   : > { %5006 = vmatprep.subr.bf16.mxu1 %v5721_v0 }
 0x20a   : > { %5003 = vmatmul.mubr.msk.bf16.vlgmr.msra.gmra.mrb[4].mxu1 %vm953_vm1, %v950_v56 }
 0x20b   : > { %5007 = vmatpush3.bf16.msra.mxu1 %v6182_v55  ;;  %5008 = vmatprep.mubr.msk.bf16.mxu1 %vm5723_vm0, %v5721_v0 }
 0x20c   : > { %5012 = vmatprep.subr.bf16.mxu1 %v5721_v0 }
 0x2dd   : > { %v994_v58 = vpop.f32.mrb[4].mxu1 }
 0x2de   : > { %v5004_v59 = vpop.f32.mrb[5].mxu1  ;;  %v1002_v60 = vsel %vm1001_vm2, %v994_v58, -inf }
 0x2df   : > { %1003 = vmax.xlane.f32.xlu0 %v1002_v60  ;;  %v997_v61 = vpop.f32.mrb[6].mxu1 }
 0x2e0   : > { %v5005_v62 = vpop.f32.mrb[7].mxu1  ;;  %v1005_v63 = vsel %vm1001_vm2, %v997_v61, -inf }
 0x2e3   : > { %1006 = vmax.xlane.f32.xlu0 %v1005_v63 }
 0x2f9   : > { %1075 = vrot.lane.b32.xlu0 %v831_v52, %s5724_s14 }
 0x2fd   : > { %1332 = vrot.lane.b32.xlu0 %v831_v52, %s5725_s11 }
 0x36c   : > { %v1004_v2 = vpop.xlane.xlu0 %1003 }
 0x36d   : > { %v1008_v3 = vsub.f32 %v994_v58, %v1004_v2 }
 0x36f   : > { %v1010_v4 = vmul.f32 1.442695, %v1008_v3 }
 0x370   : > { %v1007_v5 = vpop.xlane.xlu0 %1006 }
 0x371   : > { %5367 = vpow2.f32 %v1010_v4  ;;  %v1009_v6 = vsub.f32 %v997_v61, %v1007_v5 }
 0x373   : > { %v1012_v7 = vmul.f32 1.442695, %v1009_v6 }
 0x374   : > { %v1076_v15 = vpop.permute.xlu0 %1075 }
 0x375   : > { %5369 = vpow2.f32 %v1012_v7  ;;  %v1081_v24 = vsel %vm953_vm1, %v1076_v15, 0 }
 0x378   : > { %v1333_v22 = vpop.permute.xlu0 %1332 }
 0x379   : > { %v1338_v26 = vsel %vm953_vm1, %v1333_v22, 0 }
 0x37b   : > { %v5368_v8 = vpop.eup %5367 }
 0x37c   : > { %v1014_v9 = vsel %vm1001_vm2, %v5368_v8, 0.0 }
 0x37d   : > { %1015 = vadd.xlane.f32.xlu1 %v1014_v9 }
 0x37f   : > { %v5370_v10 = vpop.eup %5369 }
 0x380   : > { %v1017_v11 = vsel %vm1001_vm2, %v5370_v10, 0.0 }
 0x381   : > { %1018 = vadd.xlane.f32.xlu1 %v1017_v11 }
 0x392   : > { %1072 = vrot.lane.b32.xlu1 %v950_v56, %s5724_s14 }
 0x396   : > { %1204 = vrot.lane.b32.xlu1 %v831_v52, %s5726_s29 }
 0x39a   : > { %1202 = vrot.lane.b32.xlu1 %v950_v56, %s5726_s29 }
 0x39e   : > { %1330 = vrot.lane.b32.xlu1 %v950_v56, %s5725_s11 }
 0x40a   : > { %v1016_v12 = vpop.xlane.xlu1 %1015 }
 0x40b   : > { %5371 = vrcp.f32 %v1016_v12 }
 0x40e   : > { %v1019_v13 = vpop.xlane.xlu1 %1018 }
 0x40f   : > { %5373 = vrcp.f32 %v1019_v13 }
 0x412   : > { %v1073_v14 = vpop.permute.xlu1 %1072 }
 0x415   : > { %v5372_v17 = vpop.eup %5371 }
 0x416   : > { %v1205_v16 = vpop.permute.xlu1 %1204  ;;  %v1022_v20 = vmul.f32 %v5372_v17, %v5368_v8 }
 0x417   : > { %v1210_v18 = vsel %vm953_vm1, %v1205_v16, 0 }
 0x418   : > { %5025 = vmatpush3.bf16.xpose.msra.mxu0 %v1210_v18 }
 0x419   : > { %v5374_v19 = vpop.eup %5373  ;;  %5036 = vmatprep.subr.bf16.mxu0 %v5721_v0 }
 0x41a   : > { %v1023_v21 = vmul.f32 %v5374_v19, %v5370_v10  ;;  %v1203_v25 = vpop.permute.xlu1 %1202 }
 0x41c   : > { %v1024_v23 = vpack.c.bf16 %v1023_v21, %v1022_v20 }
 0x41e   : > { %5009 = vmatmul.mubr.msk.bf16.vlgmr.msra.gmra.mrb[8].mxu1 %vm1001_vm2, %v1024_v23  ;;  %v1331_v27 = vpop.permute.xlu1 %1330 }
 0x41f   : > { %5013 = vmatpush3.bf16.xpose.msra.mxu1 %v1081_v24  ;;  %5027 = vmatmul.mubr.msk.bf16.vlgmr.msra.gmra.mrb[4].mxu0 %vm953_vm1, %v1203_v25 }
 0x420   : > { %5037 = vmatpush3.bf16.xpose.msra.mxu0 %v1338_v26  ;;  %5014 = vmatprep.mubr.msk.bf16.mxu1 %vm5723_vm0, %v5721_v0 }
 0x421   : > { %5038 = vmatprep.mubr.msk.bf16.mxu0 %vm5723_vm0, %v5721_v0  ;;  %5018 = vmatprep.subr.bf16.mxu1 %v5721_v0 }
 0x422   : > { %5048 = vmatprep.subr.bf16.mxu0 %v5721_v0 }
 0x426   : > { %5015 = vmatmul.mubr.msk.bf16.vlgmr.msra.gmra.mrb[12].mxu1 %vm953_vm1, %v1073_v14 }
 0x427   : > { %5039 = vmatmul.mubr.msk.bf16.vlgmr.msra.gmra.mrb[8].mxu0 %vm953_vm1, %v1331_v27  ;;  %5020 = vmatprep.mubr.msk.bf16.mxu1 %vm5723_vm0, %v5721_v0 }
 0x428   : > { %5064 = vmatprep.mubr.msk.bf16.mxu0 %vm5723_vm0, %v5721_v0 }
 0x4f1   : > { %v1062_v28 = vpop.f32.mrb[8].mxu1 }
 0x4f2   : > { %v5010_v29 = vpop.f32.mrb[9].mxu1  ;;  %v1246_v30 = vpop.f32.mrb[4].mxu0 }
 0x4f3   : > { %v1065_v31 = vpop.f32.mrb[10].mxu1  ;;  %v5028_v32 = vpop.f32.mrb[5].mxu0  ;;  %v1253_v50 = vsel %vm1001_vm2, %v1246_v30, -inf }
 0x4f4   : > { %v1069_v35 = vpack.c.bf16 %v1065_v31, %v1062_v28  ;;  %v5011_v37 = vpop.f32.mrb[11].mxu1  ;;  %v1249_v38 = vpop.f32.mrb[6].mxu0 }
 0x4f5   : > { %v5029_v39 = vpop.f32.mrb[7].mxu0  ;;  %v1256_v52 = vsel %vm1001_vm2, %v1249_v38, -inf }
 0x4f6   : > { %1070 = vst.msk [vmem:[#allocation4] sm:$0xff] %vm953_vm1, %v1069_v35 }
 0x4f9   : > { %v1117_v40 = vpop.f32.mrb[12].mxu1 }
 0x4fa   : > { %v5016_v41 = vpop.f32.mrb[13].mxu1  ;;  %v1374_v42 = vpop.f32.mrb[8].mxu0  ;;  %v1124_v43 = vsel %vm1001_vm2, %v1117_v40, -inf }
 0x4fb   : > { %v5040_v44 = vpop.f32.mrb[9].mxu0  ;;  %1125 = vmax.xlane.f32.xlu0 %v1124_v43  ;;  %v1120_v45 = vpop.f32.mrb[14].mxu1  ;;  %v1381_v53 = vsel %vm1001_vm2, %v1374_v42, -inf }
 0x4fc   : > { %v5017_v46 = vpop.f32.mrb[15].mxu1  ;;  %v1377_v47 = vpop.f32.mrb[10].mxu0  ;;  %v1127_v48 = vsel %vm1001_vm2, %v1120_v45, -inf }
 0x4fd   : > { %v5041_v49 = vpop.f32.mrb[11].mxu0  ;;  %1128 = vmax.xlane.f32.xlu1 %v1127_v48  ;;  %v1384_v51 = vsel %vm1001_vm2, %v1377_v47, -inf }
 0x4fe   : > { %v5231_v49 = vld [vmem:[#allocation13] sm:$0xff]  }
 0x4ff   : > { %1254 = vmax.xlane.f32.xlu0 %v1253_v50  ;;  %5049 = vmatpush3.bf16.msra.mxu0 %v5231_v49  ;;  %v5232_v50 = vld [vmem:[#allocation13 + $0x8] sm:$0xff]  }
 0x500   : > { %5050 = vmatprep.subr.bf16.mxu0 %v5721_v0 }
 0x501   : > { %1385 = vmax.xlane.f32.xlu1 %v1384_v51  ;;  %v5233_v51 = vld [vmem:[#allocation13 + $0x10] sm:$0xff]  }
 0x503   : > { %1257 = vmax.xlane.f32.xlu0 %v1256_v52  ;;  %5051 = vmatpush3.bf16.msra.mxu0 %v5232_v50  ;;  %v5234_v52 = vld [vmem:[#allocation13 + $0x18] sm:$0xff]  }
 0x504   : > { %5052 = vmatprep.subr.bf16.mxu0 %v5721_v0 }
 0x507   : > { %1382 = vmax.xlane.f32.xlu0 %v1381_v53  ;;  %5053 = vmatpush3.bf16.msra.mxu0 %v5233_v51  ;;  %v1647_v51 = vld [vmem:[#allocation14 + $0x100] sm:$0xff] }
 0x508   : > { %5054 = vmatprep.subr.bf16.mxu0 %v5721_v0 }
 0x50b   : > { %5055 = vmatpush3.bf16.msra.mxu0 %v5234_v52  ;;  %v1655_v52 = vld [vmem:[#allocation14 + $0x140] sm:$0xff] }
 0x50c   : > { %5056 = vmatprep.subr.bf16.mxu0 %v5721_v0 }
 0x588   : > { %v1126_v54 = vpop.xlane.xlu0 %1125 }
 0x589   : > { %v1130_v2 = vsub.f32 %v1117_v40, %v1126_v54  ;;  %v5235_v54 = vld [vmem:[#allocation13 + $0x20] sm:$0xff]  }
 0x58a   : > { %v1129_v56 = vpop.xlane.xlu1 %1128  ;;  %5057 = vmatpush3.bf16.msra.mxu0 %v5235_v54  ;;  %v4536_v54 = vcombine.high %v1647_v51, %v1655_v52 }
 0x58b   : > { %v1131_v3 = vsub.f32 %v1120_v45, %v1129_v56  ;;  %v1132_v8 = vmul.f32 1.442695, %v1130_v2  ;;  %5058 = vmatprep.subr.bf16.mxu0 %v5721_v0 }
 0x58c   : > { %v1255_v57 = vpop.xlane.xlu0 %1254 }
 0x58d   : > { %v1259_v58 = vsub.f32 %v1246_v30, %v1255_v57  ;;  %v1134_v9 = vmul.f32 1.442695, %v1131_v3  ;;  %v5238_v3 = vld [vmem:[#allocation13 + $0x38] sm:$0xff]  }
 0x58e   : > { %v1386_v59 = vpop.xlane.xlu1 %1385 }
 0x58f   : > { %v1261_v60 = vmul.f32 1.442695, %v1259_v58  ;;  %v1388_v61 = vsub.f32 %v1377_v47, %v1386_v59  ;;  %v5236_v58 = vld [vmem:[#allocation13 + $0x28] sm:$0xff]  }
 0x590   : > { %v1258_v62 = vpop.xlane.xlu0 %1257  ;;  %5059 = vmatpush3.bf16.msra.mxu0 %v5236_v58 }
 0x591   : > { %5375 = vpow2.f32 %v1261_v60  ;;  %v1260_v63 = vsub.f32 %v1249_v38, %v1258_v62  ;;  %v1391_v4 = vmul.f32 1.442695, %v1388_v61  ;;  %5060 = vmatprep.subr.bf16.mxu0 %v5721_v0  ;;  %v5237_v62 = vld [vmem:[#allocation13 + $0x30] sm:$0xff]  }
 0x593   : > { %v1263_v5 = vmul.f32 1.442695, %v1260_v63 }
 0x594   : > { %v1383_v6 = vpop.xlane.xlu0 %1382  ;;  %5061 = vmatpush3.bf16.msra.mxu0 %v5237_v62  ;;  %v1664_v62 = vld [vmem:[#allocation14 + $0x188] sm:$0xff] }
 0x595   : > { %5377 = vpow2.f32 %v1263_v5  ;;  %v1387_v7 = vsub.f32 %v1374_v42, %v1383_v6  ;;  %5062 = vmatprep.subr.bf16.mxu0 %v5721_v0 }
 0x596   : > { %5379 = vpow2.f32 %v1391_v4 }
 0x597   : > { %v1389_v10 = vmul.f32 1.442695, %v1387_v7 }
 0x598   : > { %5063 = vmatpush3.bf16.msra.mxu0 %v5238_v3 }
 0x599   : > { %5381 = vpow2.f32 %v1389_v10 }
 0x59a   : > { %5383 = vpow2.f32 %v1132_v8 }
 0x59b   : > { %v5376_v11 = vpop.eup %5375  ;;  %5385 = vpow2.f32 %v1134_v9 }
 0x59c   : > { %v1265_v12 = vsel %vm1001_vm2, %v5376_v11, 0.0 }
 0x59d   : > { %1266 = vadd.xlane.f32.xlu0 %v1265_v12 }
 0x59f   : > { %v5378_v13 = vpop.eup %5377 }
 0x5a0   : > { %v1268_v14 = vsel %vm1001_vm2, %v5378_v13, 0.0  ;;  %v5380_v15 = vpop.eup %5379 }
 0x5a1   : > { %1269 = vadd.xlane.f32.xlu1 %v1268_v14  ;;  %v1396_v19 = vsel %vm1001_vm2, %v5380_v15, 0.0  ;;  %v4492_v14 = vld [vmem:[%s6506_s8] ss:$0 sm:$0xff] }
 0x5a3   : > { %v5382_v16 = vpop.eup %5381 }
 0x5a4   : > { %v5384_v17 = vpop.eup %5383  ;;  %v1393_v18 = vsel %vm1001_vm2, %v5382_v16, 0.0 }
 0x5a5   : > { %v5386_v20 = vpop.eup %5385  ;;  %1394 = vadd.xlane.f32.xlu0 %v1393_v18  ;;  %1397 = vadd.xlane.f32.xlu1 %v1396_v19  ;;  %v1136_v21 = vsel %vm1001_vm2, %v5384_v17, 0.0 }
 0x5a6   : > { %v1139_v22 = vsel %vm1001_vm2, %v5386_v20, 0.0 }
 0x5a9   : > { %1137 = vadd.xlane.f32.xlu0 %v1136_v21  ;;  %1140 = vadd.xlane.f32.xlu1 %v1139_v22  ;;  %v5407_v21 = vld [vmem:[%s6125_s4] sm:$0xff] }
 0x5ba   : > { %1276 = vrot.lane.b32.xlu1 %v6182_v55, %s5726_s29 }
 0x5be   : > { %1404 = vrot.lane.b32.xlu1 %v6182_v55, %s5725_s11 }
 0x5bf   : > { %1148 = vrot.lane.b32.xlu0 %v6182_v55, %s5724_s14 }
 0x62a   : > { %v1267_v23 = vpop.xlane.xlu0 %1266 }
 0x62e   : > { %v1270_v24 = vpop.xlane.xlu1 %1269 }
 0x632   : > { %v1395_v25 = vpop.xlane.xlu0 %1394  ;;  %v1398_v26 = vpop.xlane.xlu1 %1397 }
 0x636   : > { %v1138_v27 = vpop.xlane.xlu0 %1137  ;;  %v1141_v28 = vpop.xlane.xlu1 %1140 }
 0x637   : > { %5387 = vrcp.f32 %v1138_v27  ;;  %v1616_v27 = vld [vmem:[#allocation14 + $0x8] sm:$0xff] }
 0x638   : > { %5389 = vrcp.f32 %v1141_v28 }
 0x639   : > { %5391 = vrcp.f32 %v1270_v24 }
 0x63a   : > { %v1149_v29 = vpop.permute.xlu0 %1148  ;;  %5393 = vrcp.f32 %v1267_v23  ;;  %v1277_v38 = vpop.permute.xlu1 %1276  ;;  %v5408_v23 = vld [vmem:[%s6125_s4 + $0x8] sm:$0xff]  ;;  %s6514_s4 = sld [smem:[#allocation40_spill]] }
 0x63b   : > { %5019 = vmatpush3.bf16.msra.mxu1 %v1149_v29  ;;  %5395 = vrcp.f32 %v1395_v25  ;;  %v1615_v25 = vld [vmem:[#allocation14] sm:$0xff] }
 0x63c   : > { %5030 = vmatprep.subr.bf16.mxu1 %v5721_v0  ;;  %5397 = vrcp.f32 %v1398_v26  ;;  %v1623_v26 = vld [vmem:[#allocation14 + $0x40] sm:$0xff] }
 0x63d   : > { %v4503_v28 = vcombine.low %v1615_v25, %v1623_v26  ;;  %v4504_v29 = vcombine.high %v1615_v25, %v1623_v26  ;;  %v1720_v25 = vld [vmem:[#allocation14 + $0x348] sm:$0xff] }
 0x63e   : > { %v1405_v45 = vpop.permute.xlu1 %1404 }
 0x641   : > { %v5388_v30 = vpop.eup %5387 }
 0x642   : > { %v5390_v31 = vpop.eup %5389  ;;  %v1144_v32 = vmul.f32 %v5388_v30, %v5384_v17  ;;  %v1624_v30 = vld [vmem:[#allocation14 + $0x48] sm:$0xff] }
 0x643   : > { %v1145_v35 = vmul.f32 %v5390_v31, %v5386_v20  ;;  %v5392_v37 = vpop.eup %5391  ;;  %v1631_v31 = vld [vmem:[#allocation14 + $0x80] sm:$0xff] }
 0x644   : > { %v5394_v39 = vpop.eup %5393  ;;  %v1274_v40 = vmul.f32 %v5392_v37, %v5378_v13 }
 0x645   : > { %v1146_v55 = vpack.c.bf16 %v1145_v35, %v1144_v32  ;;  %v1273_v41 = vmul.f32 %v5394_v39, %v5376_v11  ;;  %v5396_v42 = vpop.eup %5395  ;;  %v1639_v32 = vld [vmem:[#allocation14 + $0xc0] sm:$0xff]  ;;  %v4505_v35 = vcombine.low %v1616_v27, %v1624_v30  ;;  %v1640_v39 = vld [vmem:[#allocation14 + $0xc8] sm:$0xff] }
 0x646   : > { %v5398_v44 = vpop.eup %5397  ;;  %v1401_v46 = vmul.f32 %v5396_v42, %v5382_v16  ;;  %v4520_v37 = vcombine.high %v1631_v31, %v1639_v32 }
 0x647   : > { %5021 = vmatmul.mubr.msk.bf16.vlgmr.msra.gmra.mrb[16].mxu1 %vm1001_vm2, %v1146_v55  ;;  %v1275_v43 = vpack.c.bf16 %v1274_v40, %v1273_v41  ;;  %v1402_v47 = vmul.f32 %v5398_v44, %v5380_v15  ;;  %v4506_v55 = vcombine.high %v1616_v27, %v1624_v30  ;;  %v4519_v41 = vcombine.low %v1631_v31, %v1639_v32  ;;  %v1735_v30 = vld [vmem:[#allocation14 + $0x3c0] sm:$0xff]  ;;  %v1728_v31 = vld [vmem:[#allocation14 + $0x388] sm:$0xff] }
 0x648   : > { %5031 = vmatpush3.bf16.msra.mxu1 %v1277_v38  ;;  %5032 = vmatprep.mubr.msk.bf16.mxu1 %vm5723_vm0, %v5721_v0  ;;  %v1632_v38 = vld [vmem:[#allocation14 + $0x88] sm:$0xff] }
 0x649   : > { %5042 = vmatprep.subr.bf16.mxu1 %v5721_v0  ;;  %v1403_v48 = vpack.c.bf16 %v1402_v47, %v1401_v46  ;;  %v4522_v40 = vcombine.high %v1632_v38, %v1640_v39  ;;  %2510 = vmatprep.subr.bf16.mxu0 %v4506_v55  ;;  %v4521_v42 = vcombine.low %v1632_v38, %v1640_v39  ;;  %v1617_v39 = vld [vmem:[#allocation14 + $0x10] sm:$0xff] }
 0x64f   : > { %5033 = vmatmul.mubr.msk.bf16.vlgmr.msra.gmra.mrb[20].mxu1 %vm1001_vm2, %v1275_v43 }
 0x650   : > { %5043 = vmatpush3.bf16.msra.mxu1 %v1405_v45  ;;  %5044 = vmatprep.mubr.msk.bf16.mxu1 %vm5723_vm0, %v5721_v0 }
 0x651   : > { %2467 = vmatprep.subr.bf16.mxu1 %v4504_v29  ;;  %v1727_v29 = vld [vmem:[#allocation14 + $0x380] sm:$0xff] }
 0x652   : > { %v4616_v32 = vcombine.high %v1727_v29, %v1735_v30  ;;  %v4615_v55 = vcombine.low %v1727_v29, %v1735_v30 }
 0x657   : > { %5045 = vmatmul.mubr.msk.bf16.vlgmr.msra.gmra.mrb[24].mxu1 %vm1001_vm2, %v1403_v48 }
 0x658   : > { %2499 = vmatprep.mubr.bf16.mxu1 %v5722_v1  ;;  %2468 = vmatpush1.bf16.msra.mxu1 %v4503_v28 }
 0x659   : > { %2469 = vmatprep.subr.bf16.mxu1 %v4520_v37 }
 0x65c   : > { %2470 = vmatpush1.bf16.msra.mxu1 %v4519_v41  ;;  %v1618_v41 = vld [vmem:[#allocation14 + $0x18] sm:$0xff] }
 0x65d   : > { %2471 = vmatprep.subr.bf16.mxu1 %v4536_v54 }
 0x71a   : > { %v1188_v53 = vpop.f32.mrb[16].mxu1 }
 0x71b   : > { %v5022_v56 = vpop.f32.mrb[17].mxu1 }
 0x71c   : > { %v1191_v57 = vpop.f32.mrb[18].mxu1  ;;  %v1656_v56 = vld [vmem:[#allocation14 + $0x148] sm:$0xff] }
 0x71d   : > { %v1195_v59 = vpack.c.bf16 %v1191_v57, %v1188_v53  ;;  %v5023_v60 = vpop.f32.mrb[19].mxu1  ;;  %v1648_v53 = vld [vmem:[#allocation14 + $0x108] sm:$0xff]  ;;  %v4535_v57 = vcombine.low %v1647_v51, %v1655_v52 }
 0x71e   : > { %v4537_v58 = vcombine.low %v1648_v53, %v1656_v56  ;;  %v1663_v60 = vld [vmem:[#allocation14 + $0x180] sm:$0xff] }
 0x71f   : > { %1197 = vrot.lane.b32.xlu1 %v1195_v59, %s5725_s11  ;;  %v4538_v59 = vcombine.high %v1648_v53, %v1656_v56  ;;  %2472 = vmatpush1.bf16.msra.mxu1 %v4535_v57  ;;  %s6511_s11 = sld [smem:[#allocation24_spill]] }
 0x722   : > { %v1316_v61 = vpop.f32.mrb[20].mxu1 }
 0x723   : > { %v5034_v63 = vpop.f32.mrb[21].mxu1 }
 0x724   : > { %v1319_v2 = vpop.f32.mrb[22].mxu1 }
 0x725   : > { %v1323_v4 = vpack.c.bf16 %v1319_v2, %v1316_v61  ;;  %v5035_v5 = vpop.f32.mrb[23].mxu1  ;;  %v1671_v61 = vld [vmem:[#allocation14 + $0x1c0] sm:$0xff]  ;;  %v1672_v2 = vld [vmem:[#allocation14 + $0x1c8] sm:$0xff] }
 0x726   : > { %v4552_v63 = vcombine.high %v1663_v60, %v1671_v61  ;;  %v4551_v3 = vcombine.low %v1663_v60, %v1671_v61  ;;  %v4554_v5 = vcombine.high %v1664_v62, %v1672_v2 }
 0x727   : > { %1325 = vrot.lane.b32.xlu0 %v1323_v4, %s5726_s29  ;;  %v4553_v4 = vcombine.low %v1664_v62, %v1672_v2  ;;  %v4502_v62 = vld [vmem:[%s6508_s28] ss:$0 sm:$0xff]  ;;  %v1633_v2 = vld [vmem:[#allocation14 + $0x90] sm:$0xff] }
 0x728   : > { %2473 = vmatprep.subr.bf16.mxu1 %v4552_v63 }
 0x729   : > { %2474 = vmatpush1.bf16.msra.mxu1 %v4551_v3  ;;  %v1641_v3 = vld [vmem:[#allocation14 + $0xd0] sm:$0xff] }
 0x72a   : > { %v1444_v6 = vpop.f32.mrb[24].mxu1 }
 0x72b   : > { %v5046_v7 = vpop.f32.mrb[25].mxu1 }
 0x72c   : > { %v1447_v8 = vpop.f32.mrb[26].mxu1  ;;  %v1687_v7 = vld [vmem:[#allocation14 + $0x240] sm:$0xff] }
 0x72d   : > { %v1451_v9 = vpack.c.bf16 %v1447_v8, %v1444_v6  ;;  %v5047_v10 = vpop.f32.mrb[27].mxu1  ;;  %v1679_v6 = vld [vmem:[#allocation14 + $0x200] sm:$0xff]  ;;  %v1680_v8 = vld [vmem:[#allocation14 + $0x208] sm:$0xff] }
 0x72e   : > { %v1688_v10 = vld [vmem:[#allocation14 + $0x248] sm:$0xff] }
 0x72f   : > { %1453 = vrot.lane.b32.xlu1 %v1451_v9, %s5724_s14  ;;  %v4568_v9 = vcombine.high %v1679_v6, %v1687_v7  ;;  %s6510_s14 = sld [smem:[#allocation37_spill]] }
 0x731   : > { %2475 = vmatprep.subr.bf16.mxu1 %v4568_v9 }
 0x791   : > { %v1198_v11 = vpop.permute.xlu1 %1197 }
 0x792   : > { %1201 = vst.msk [vmem:[#allocation4] sm:$0xff] %vm1200_vm3, %v1198_v11  ;;  %v4567_v11 = vcombine.low %v1679_v6, %v1687_v7 }
 0x794   : > { %2476 = vmatpush1.bf16.msra.mxu1 %v4567_v11  ;;  %v1650_v11 = vld [vmem:[#allocation14 + $0x118] sm:$0xff] }
 0x799   : > { %v1326_v12 = vpop.permute.xlu0 %1325 }
 0x79a   : > { %1329 = vst.msk [vmem:[#allocation4] sm:$0xff] %vm1328_vm4, %v1326_v12  ;;  %v4569_v12 = vcombine.low %v1680_v8, %v1688_v10 }
 0x7a1   : > { %v1454_v0 = vpop.permute.xlu1 %1453 }
 0x7a2   : > { %1457 = vst.msk [vmem:[#allocation4] sm:$0xff] %vm1456_vm5, %v1454_v0  ;;  %v4570_v0 = vcombine.high %v1680_v8, %v1688_v10  ;;  %v4524_v8 = vcombine.high %v1633_v2, %v1641_v3  ;;  %v1657_v10 = vld [vmem:[#allocation14 + $0x150] sm:$0xff] }
 0x7a9   : > { %v1458_v13 = vld [vmem:[#allocation4] sm:$0xff] }
 0x7aa   : > { %5065 = vmatmul.mubr.bf16.vlgmr.msra.gmra.mrb[12].mxu0 %v1458_v13  ;;  %v1695_v13 = vld [vmem:[#allocation14 + $0x280] sm:$0xff] }
 0x7ab   : > { %2542 = vmatprep.mubr.bf16.mxu0 %v5722_v1  ;;  %2511 = vmatpush1.bf16.msra.mxu0 %v4505_v35  ;;  %v1736_v35 = vld [vmem:[#allocation14 + $0x3c8] sm:$0xff] }
 0x7ac   : > { %2512 = vmatprep.subr.bf16.mxu0 %v4522_v40  ;;  %v4617_v37 = vcombine.low %v1728_v31, %v1736_v35  ;;  %v4618_v38 = vcombine.high %v1728_v31, %v1736_v35  ;;  %v1625_v40 = vld [vmem:[#allocation14 + $0x50] sm:$0xff] }
 0x7ad   : > { %v1705_v35 = vld [vmem:[#allocation14 + $0x2d0] sm:$0xff] }
 0x7af   : > { %2513 = vmatpush1.bf16.msra.mxu0 %v4521_v42  ;;  %v4507_v42 = vcombine.low %v1617_v39, %v1625_v40 }
 0x7b0   : > { %2514 = vmatprep.subr.bf16.mxu0 %v4538_v59 }
 0x7b3   : > { %2515 = vmatpush1.bf16.msra.mxu0 %v4537_v58  ;;  %v4501_v58 = vld [vmem:[%s6507_s0] ss:$0 sm:$0xff]  ;;  %s4769_s0 = sshll.u32 %s6511_s11, 8 }
 0x7b4   : > { %2516 = vmatprep.subr.bf16.mxu0 %v4554_v5  ;;  %v1642_v5 = vld [vmem:[#allocation14 + $0xd8] sm:$0xff]  ;;  %s6378_s20 = scalar_lea.hbm %s6514_s4, %s4769_s0 }
 0x7b7   : > { %2517 = vmatpush1.bf16.msra.mxu0 %v4553_v4  ;;  %v1634_v4 = vld [vmem:[#allocation14 + $0x98] sm:$0xff] }
 0x7b8   : > { %2518 = vmatprep.subr.bf16.mxu0 %v4570_v0  ;;  %v4526_v9 = vcombine.high %v1634_v4, %v1642_v5  ;;  %v4523_v0 = vcombine.low %v1633_v2, %v1641_v3  ;;  %v1628_v2 = vld [vmem:[#allocation14 + $0x68] sm:$0xff] }
 0x7bb   : > { %2519 = vmatpush1.bf16.msra.mxu0 %v4569_v12  ;;  %v1658_v12 = vld [vmem:[#allocation14 + $0x158] sm:$0xff] }
 0x87d   : > { %v1564_v15 = vpop.f32.mrb[12].mxu0 }
 0x87e   : > { %v1565_v16 = vadd.f32 %v4492_v14, %v1564_v15  ;;  %v5066_v17 = vpop.f32.mrb[13].mxu0  ;;  %v1696_v15 = vld [vmem:[#allocation14 + $0x288] sm:$0xff] }
 0x87f   : > { %v1567_v18 = vpop.f32.mrb[14].mxu0  ;;  %v1704_v17 = vld [vmem:[#allocation14 + $0x2c8] sm:$0xff] }
 0x880   : > { %v1568_v19 = vadd.f32 %v4492_v14, %v1567_v18  ;;  %v5067_v20 = vpop.f32.mrb[15].mxu0  ;;  %v1571_v22 = vadd.f32 %v5407_v21, %v1565_v16  ;;  %v1703_v14 = vld [vmem:[#allocation14 + $0x2c0] sm:$0xff] }
 0x881   : > { %v4584_v16 = vcombine.high %v1695_v13, %v1703_v14  ;;  %v4583_v18 = vcombine.low %v1695_v13, %v1703_v14  ;;  %v4586_v20 = vcombine.high %v1696_v15, %v1704_v17  ;;  %v1711_v21 = vld [vmem:[#allocation14 + $0x300] sm:$0xff]  ;;  %v4525_v13 = vcombine.low %v1634_v4, %v1642_v5 }
 0x882   : > { %1573 = vadd.xlane.f32.xlu0 %v1571_v22  ;;  %v1572_v24 = vadd.f32 %v5408_v23, %v1568_v19  ;;  %v4585_v19 = vcombine.low %v1696_v15, %v1704_v17  ;;  %v1712_v23 = vld [vmem:[#allocation14 + $0x308] sm:$0xff]  ;;  %v4542_v15 = vcombine.high %v1650_v11, %v1658_v12  ;;  %v1673_v17 = vld [vmem:[#allocation14 + $0x1d0] sm:$0xff] }
 0x883   : > { %2477 = vmatprep.subr.bf16.mxu1 %v4584_v16  ;;  %2520 = vmatprep.subr.bf16.mxu0 %v4586_v20  ;;  %v4601_v27 = vcombine.low %v1712_v23, %v1720_v25  ;;  %v4602_v28 = vcombine.high %v1712_v23, %v1720_v25  ;;  %v1665_v16 = vld [vmem:[#allocation14 + $0x190] sm:$0xff] }
 0x884   : > { %1575 = vadd.xlane.f32.xlu1 %v1572_v24  ;;  %2478 = vmatpush1.bf16.msra.mxu1 %v4583_v18  ;;  %v1666_v18 = vld [vmem:[#allocation14 + $0x198] sm:$0xff]  ;;  %v1689_v25 = vld [vmem:[#allocation14 + $0x250] sm:$0xff] }
 0x885   : > { %2521 = vmatpush1.bf16.msra.mxu0 %v4585_v19  ;;  %v1674_v19 = vld [vmem:[#allocation14 + $0x1d8] sm:$0xff] }
 0x886   : > { %2522 = vmatprep.subr.bf16.mxu0 %v4602_v28  ;;  %v4558_v23 = vcombine.high %v1666_v18, %v1674_v19  ;;  %v4555_v28 = vcombine.low %v1665_v16, %v1673_v17  ;;  %v4557_v29 = vcombine.low %v1666_v18, %v1674_v19  ;;  %v1660_v18 = vld [vmem:[#allocation14 + $0x168] sm:$0xff] }
 0x889   : > { %2523 = vmatpush1.bf16.msra.mxu0 %v4601_v27  ;;  %v1690_v27 = vld [vmem:[#allocation14 + $0x258] sm:$0xff] }
 0x88a   : > { %2524 = vmatprep.subr.bf16.mxu0 %v4618_v38 }
 0x88d   : > { %2525 = vmatpush1.bf16.msra.mxu0 %v4617_v37  ;;  %v1706_v37 = vld [vmem:[#allocation14 + $0x2d8] sm:$0xff] }
 0x90f   : > { %v1574_v43 = vpop.xlane.xlu0 %1573 }
 0x910   : > { %v1578_v44 = vmul.f32 0.0078125, %v1574_v43  ;;  %v4508_v43 = vcombine.high %v1617_v39, %v1625_v40 }
 0x911   : > { %v1576_v45 = vpop.xlane.xlu1 %1575 }
 0x912   : > { %v6264_v46 = vsub.f32 %v1571_v22, %v1578_v44  ;;  %v1579_v47 = vmul.f32 0.0078125, %v1576_v45  ;;  %v1719_v22 = vld [vmem:[#allocation14 + $0x340] sm:$0xff]  ;;  %v1626_v44 = vld [vmem:[#allocation14 + $0x58] sm:$0xff] }
 0x913   : > { %v4599_v26 = vcombine.low %v1711_v21, %v1719_v22  ;;  %v4509_v45 = vcombine.low %v1618_v41, %v1626_v44 }
 0x914   : > { %v6266_v48 = vsub.f32 %v1572_v24, %v1579_v47  ;;  %v1582_v49 = vmul.f32 %v6264_v46, %v6264_v46  ;;  %v4600_v24 = vcombine.high %v1711_v21, %v1719_v22  ;;  %v4510_v47 = vcombine.high %v1618_v41, %v1626_v44  ;;  %v1714_v44 = vld [vmem:[#allocation14 + $0x318] sm:$0xff] }
 0x915   : > { %v4541_v21 = vcombine.low %v1650_v11, %v1658_v12  ;;  %v4556_v22 = vcombine.high %v1665_v16, %v1673_v17  ;;  %v1644_v11 = vld [vmem:[#allocation14 + $0xe8] sm:$0xff]  ;;  %v1659_v16 = vld [vmem:[#allocation14 + $0x160] sm:$0xff] }
 0x916   : > { %1584 = vadd.xlane.f32.xlu0 %v1582_v49  ;;  %v1583_v50 = vmul.f32 %v6266_v48, %v6266_v48  ;;  %2479 = vmatprep.subr.bf16.mxu1 %v4600_v24  ;;  %v1681_v24 = vld [vmem:[#allocation14 + $0x210] sm:$0xff]  ;;  %v1652_v17 = vld [vmem:[#allocation14 + $0x128] sm:$0xff] }
 0x917   : > { %2480 = vmatpush1.bf16.msra.mxu1 %v4599_v26  ;;  %2596 = vmatprep.subr.bf16.mxu0 %v4510_v47  ;;  %v1682_v26 = vld [vmem:[#allocation14 + $0x218] sm:$0xff]  ;;  %v4572_v30 = vcombine.high %v1681_v24, %v1689_v25  ;;  %v4571_v38 = vcombine.low %v1681_v24, %v1689_v25  ;;  %v1675_v24 = vld [vmem:[#allocation14 + $0x1e0] sm:$0xff]  ;;  %v1668_v25 = vld [vmem:[#allocation14 + $0x1a8] sm:$0xff] }
 0x918   : > { %2481 = vmatprep.subr.bf16.mxu1 %v4616_v32  ;;  %v4574_v31 = vcombine.high %v1682_v26, %v1690_v27  ;;  %v1697_v32 = vld [vmem:[#allocation14 + $0x290] sm:$0xff]  ;;  %v4573_v39 = vcombine.low %v1682_v26, %v1690_v27  ;;  %v1676_v26 = vld [vmem:[#allocation14 + $0x1e8] sm:$0xff] }
 0x919   : > { %v4588_v40 = vcombine.high %v1697_v32, %v1705_v35  ;;  %v4587_v47 = vcombine.low %v1697_v32, %v1705_v35  ;;  %v1691_v32 = vld [vmem:[#allocation14 + $0x260] sm:$0xff]  ;;  %v1684_v35 = vld [vmem:[#allocation14 + $0x228] sm:$0xff] }
 0x91a   : > { %1586 = vadd.xlane.f32.xlu0 %v1583_v50 }
 0x91b   : > { %2482 = vmatpush1.bf16.msra.mxu1 %v4615_v55  ;;  %v1698_v55 = vld [vmem:[#allocation14 + $0x298] sm:$0xff] }
 0x91c   : > { %2553 = vmatprep.subr.bf16.mxu1 %v4508_v43  ;;  %v4590_v41 = vcombine.high %v1698_v55, %v1706_v37  ;;  %v1721_v43 = vld [vmem:[#allocation14 + $0x350] sm:$0xff] }
 0x9a3   : > { %v1585_v49 = vpop.xlane.xlu0 %1584 }
 0x9a4   : > { %v1588_v50 = vmul.f32 0.0078125, %v1585_v49  ;;  %v4589_v49 = vcombine.low %v1698_v55, %v1706_v37  ;;  %v1692_v55 = vld [vmem:[#allocation14 + $0x268] sm:$0xff] }
 0x9a6   : > { %v1590_v51 = vadd.f32 1e-05, %v1588_v50 }
 0x9a7   : > { %v1587_v52 = vpop.xlane.xlu0 %1586 }
 0x9a8   : > { %5399 = vrsqrt.f32 %v1590_v51  ;;  %v1589_v53 = vmul.f32 0.0078125, %v1587_v52  ;;  %v1729_v52 = vld [vmem:[#allocation14 + $0x390] sm:$0xff] }
 0x9aa   : > { %v1591_v54 = vadd.f32 1e-05, %v1589_v53  ;;  %v1737_v53 = vld [vmem:[#allocation14 + $0x3d0] sm:$0xff] }
 0x9ab   : > { %v4619_v3 = vcombine.low %v1729_v52, %v1737_v53 }
 0x9ac   : > { %5401 = vrsqrt.f32 %v1591_v54  ;;  %v1730_v54 = vld [vmem:[#allocation14 + $0x398] sm:$0xff] }
 0x9b2   : > { %v5400_v56 = vpop.eup %5399 }
 0x9b3   : > { %v1594_v57 = vmul.f32 %v5400_v56, %v6264_v46  ;;  %v1738_v56 = vld [vmem:[#allocation14 + $0x3d8] sm:$0xff] }
 0x9b4   : > { %v4621_v4 = vcombine.low %v1730_v54, %v1738_v56 }
 0x9b5   : > { %v1603_v60 = vmul.f32 %v4501_v58, %v1594_v57 }
 0x9b6   : > { %v5402_v59 = vpop.eup %5401 }
 0x9b7   : > { %v1595_v61 = vmul.f32 %v5402_v59, %v6266_v48  ;;  %v6280_v6 = vadd.f32 %v4502_v62, %v1603_v60  ;;  %v1649_v48 = vld [vmem:[#allocation14 + $0x110] sm:$0xff]  ;;  %v4620_v59 = vcombine.high %v1729_v52, %v1737_v53  ;;  %v4622_v60 = vcombine.high %v1730_v54, %v1738_v56  ;;  %v1723_v52 = vld [vmem:[#allocation14 + $0x360] sm:$0xff]  ;;  %v1716_v53 = vld [vmem:[#allocation14 + $0x328] sm:$0xff] }
 0x9b8   : > { %v4540_v14 = vcombine.high %v1649_v48, %v1657_v10  ;;  %v4539_v20 = vcombine.low %v1649_v48, %v1657_v10  ;;  %v1643_v48 = vld [vmem:[#allocation14 + $0xe0] sm:$0xff]  ;;  %v1636_v10 = vld [vmem:[#allocation14 + $0xa8] sm:$0xff] }
 0x9b9   : > { %v1604_v63 = vmul.f32 %v4501_v58, %v1595_v61  ;;  %v1619_v61 = vld [vmem:[#allocation14 + $0x20] sm:$0xff]  ;;  %v1724_v54 = vld [vmem:[#allocation14 + $0x368] sm:$0xff] }
 0x9bb   : > { %v6282_v46 = vadd.f32 %v4502_v62, %v1604_v63  ;;  %v1627_v62 = vld [vmem:[#allocation14 + $0x60] sm:$0xff]  ;;  %v1620_v63 = vld [vmem:[#allocation14 + $0x28] sm:$0xff] }
 0x9bc   : > { %v4512_v5 = vcombine.high %v1619_v61, %v1627_v62  ;;  %v4511_v12 = vcombine.low %v1619_v61, %v1627_v62  ;;  %v1739_v61 = vld [vmem:[#allocation14 + $0x3e0] sm:$0xff]  ;;  %v1732_v62 = vld [vmem:[#allocation14 + $0x3a8] sm:$0xff] }
 0x9bd   : > { %v6286_v7 = vpack.c.bf16 %v6282_v46, %v6280_v6 }
 0x9bf   : > { %2500 = vmatmul.mubr.bf16.vlgmr.msra.gmra.mrb[28].mxu1 %v6286_v7  ;;  %2543 = vmatmul.mubr.bf16.vlgmr.msra.gmra.mrb[16].mxu0 %v6286_v7 }
 0x9c0   : > { %2554 = vmatpush1.bf16.msra.mxu1 %v4507_v42  ;;  %2597 = vmatpush1.bf16.msra.mxu0 %v4509_v45  ;;  %v1713_v42 = vld [vmem:[#allocation14 + $0x310] sm:$0xff]  ;;  %v1722_v45 = vld [vmem:[#allocation14 + $0x358] sm:$0xff] }
 0x9c1   : > { %2555 = vmatprep.subr.bf16.mxu1 %v4524_v8  ;;  %2598 = vmatprep.subr.bf16.mxu0 %v4526_v9  ;;  %v4604_v50 = vcombine.high %v1713_v42, %v1721_v43  ;;  %v4606_v51 = vcombine.high %v1714_v44, %v1722_v45  ;;  %v4603_v57 = vcombine.low %v1713_v42, %v1721_v43  ;;  %v1635_v9 = vld [vmem:[#allocation14 + $0xa0] sm:$0xff]  ;;  %v1700_v43 = vld [vmem:[#allocation14 + $0x2a8] sm:$0xff] }
 0x9c2   : > { %2585 = vmatprep.mubr.bf16.mxu1 %v5722_v1  ;;  %2628 = vmatprep.mubr.bf16.mxu0 %v5722_v1  ;;  %v4605_v58 = vcombine.low %v1714_v44, %v1722_v45  ;;  %v4514_v8 = vcombine.high %v1620_v63, %v1628_v2  ;;  %v4527_v19 = vcombine.low %v1635_v9, %v1643_v48  ;;  %v1707_v42 = vld [vmem:[#allocation14 + $0x2e0] sm:$0xff]  ;;  %v1708_v44 = vld [vmem:[#allocation14 + $0x2e8] sm:$0xff] }
 0x9c4   : > { %2556 = vmatpush1.bf16.msra.mxu1 %v4523_v0  ;;  %2599 = vmatpush1.bf16.msra.mxu0 %v4525_v13  ;;  %v4513_v0 = vcombine.low %v1620_v63, %v1628_v2  ;;  %v4528_v13 = vcombine.high %v1635_v9, %v1643_v48  ;;  %v1740_v63 = vld [vmem:[#allocation14 + $0x3e8] sm:$0xff]  ;;  %v1629_v9 = vld [vmem:[#allocation14 + $0x70] sm:$0xff]  ;;  %v1622_v48 = vld [vmem:[#allocation14 + $0x38] sm:$0xff] }
 0x9c5   : > { %2557 = vmatprep.subr.bf16.mxu1 %v4540_v14  ;;  %2600 = vmatprep.subr.bf16.mxu0 %v4542_v15  ;;  %v4530_v14 = vcombine.high %v1636_v10, %v1644_v11  ;;  %v1651_v15 = vld [vmem:[#allocation14 + $0x120] sm:$0xff] }
 0x9c6   : > { %v4543_v27 = vcombine.low %v1651_v15, %v1659_v16 }
 0x9c8   : > { %2558 = vmatpush1.bf16.msra.mxu1 %v4539_v20  ;;  %2601 = vmatpush1.bf16.msra.mxu0 %v4541_v21  ;;  %v4529_v20 = vcombine.low %v1636_v10, %v1644_v11  ;;  %v4544_v21 = vcombine.high %v1651_v15, %v1659_v16  ;;  %v1630_v10 = vld [vmem:[#allocation14 + $0x78] sm:$0xff]  ;;  %v1645_v15 = vld [vmem:[#allocation14 + $0xf0] sm:$0xff] }
 0x9c9   : > { %2559 = vmatprep.subr.bf16.mxu1 %v4556_v22  ;;  %2602 = vmatprep.subr.bf16.mxu0 %v4558_v23  ;;  %v4546_v22 = vcombine.high %v1652_v17, %v1660_v18  ;;  %v1667_v23 = vld [vmem:[#allocation14 + $0x1a0] sm:$0xff]  ;;  %v1638_v16 = vld [vmem:[#allocation14 + $0xb8] sm:$0xff] }
 0x9ca   : > { %v4559_v37 = vcombine.low %v1667_v23, %v1675_v24 }
 0x9cc   : > { %2560 = vmatpush1.bf16.msra.mxu1 %v4555_v28  ;;  %2603 = vmatpush1.bf16.msra.mxu0 %v4557_v29  ;;  %v4545_v28 = vcombine.low %v1652_v17, %v1660_v18  ;;  %v4560_v29 = vcombine.high %v1667_v23, %v1675_v24  ;;  %v1646_v17 = vld [vmem:[#allocation14 + $0xf8] sm:$0xff]  ;;  %v1661_v23 = vld [vmem:[#allocation14 + $0x170] sm:$0xff] }
 0x9cd   : > { %2561 = vmatprep.subr.bf16.mxu1 %v4572_v30  ;;  %2604 = vmatprep.subr.bf16.mxu0 %v4574_v31  ;;  %v4562_v30 = vcombine.high %v1668_v25, %v1676_v26  ;;  %v1683_v31 = vld [vmem:[#allocation14 + $0x220] sm:$0xff]  ;;  %v1654_v24 = vld [vmem:[#allocation14 + $0x138] sm:$0xff] }
 0x9ce   : > { %v4575_v45 = vcombine.low %v1683_v31, %v1691_v32 }
 0x9d0   : > { %2562 = vmatpush1.bf16.msra.mxu1 %v4571_v38  ;;  %2605 = vmatpush1.bf16.msra.mxu0 %v4573_v39  ;;  %v4561_v38 = vcombine.low %v1668_v25, %v1676_v26  ;;  %v4576_v39 = vcombine.high %v1683_v31, %v1691_v32  ;;  %v1662_v25 = vld [vmem:[#allocation14 + $0x178] sm:$0xff]  ;;  %v1677_v31 = vld [vmem:[#allocation14 + $0x1f0] sm:$0xff] }
 0x9d1   : > { %2563 = vmatprep.subr.bf16.mxu1 %v4588_v40  ;;  %2606 = vmatprep.subr.bf16.mxu0 %v4590_v41  ;;  %v4578_v40 = vcombine.high %v1684_v35, %v1692_v55  ;;  %v1699_v41 = vld [vmem:[#allocation14 + $0x2a0] sm:$0xff]  ;;  %v1670_v32 = vld [vmem:[#allocation14 + $0x1b8] sm:$0xff] }
 0x9d2   : > { %v4591_v56 = vcombine.low %v1699_v41, %v1707_v42 }
 0x9d4   : > { %2564 = vmatpush1.bf16.msra.mxu1 %v4587_v47  ;;  %2607 = vmatpush1.bf16.msra.mxu0 %v4589_v49  ;;  %v4577_v47 = vcombine.low %v1684_v35, %v1692_v55  ;;  %v4592_v49 = vcombine.high %v1699_v41, %v1707_v42  ;;  %v1678_v35 = vld [vmem:[#allocation14 + $0x1f8] sm:$0xff]  ;;  %v1693_v41 = vld [vmem:[#allocation14 + $0x270] sm:$0xff] }
 0x9d5   : > { %2565 = vmatprep.subr.bf16.mxu1 %v4604_v50  ;;  %2608 = vmatprep.subr.bf16.mxu0 %v4606_v51  ;;  %v4594_v50 = vcombine.high %v1700_v43, %v1708_v44  ;;  %v1715_v51 = vld [vmem:[#allocation14 + $0x320] sm:$0xff]  ;;  %v1686_v42 = vld [vmem:[#allocation14 + $0x238] sm:$0xff] }
 0x9d6   : > { %v4607_v2 = vcombine.low %v1715_v51, %v1723_v52 }
 0x9d8   : > { %2566 = vmatpush1.bf16.msra.mxu1 %v4603_v57  ;;  %2609 = vmatpush1.bf16.msra.mxu0 %v4605_v58  ;;  %v4593_v57 = vcombine.low %v1700_v43, %v1708_v44  ;;  %v4608_v58 = vcombine.high %v1715_v51, %v1723_v52  ;;  %v1694_v43 = vld [vmem:[#allocation14 + $0x278] sm:$0xff] }
 0x9d9   : > { %2567 = vmatprep.subr.bf16.mxu1 %v4620_v59  ;;  %2610 = vmatprep.subr.bf16.mxu0 %v4622_v60  ;;  %v4610_v59 = vcombine.high %v1716_v53, %v1724_v54  ;;  %v1731_v60 = vld [vmem:[#allocation14 + $0x3a0] sm:$0xff]  ;;  %v1702_v51 = vld [vmem:[#allocation14 + $0x2b8] sm:$0xff] }
 0x9da   : > { %v4623_v11 = vcombine.low %v1731_v60, %v1739_v61  ;;  %v1710_v52 = vld [vmem:[#allocation14 + $0x2f8] sm:$0xff] }
 0x9dc   : > { %2568 = vmatpush1.bf16.msra.mxu1 %v4619_v3  ;;  %2611 = vmatpush1.bf16.msra.mxu0 %v4621_v4  ;;  %v4609_v3 = vcombine.low %v1716_v53, %v1724_v54  ;;  %v4624_v4 = vcombine.high %v1731_v60, %v1739_v61  ;;  %v4581_v54 = vcombine.low %v1686_v42, %v1694_v43  ;;  %v1718_v60 = vld [vmem:[#allocation14 + $0x338] sm:$0xff] }
 0x9dd   : > { %2639 = vmatprep.subr.bf16.mxu1 %v4512_v5  ;;  %2682 = vmatprep.subr.bf16.mxu0 %v4514_v8  ;;  %v4626_v5 = vcombine.high %v1732_v62, %v1740_v63  ;;  %v1621_v8 = vld [vmem:[#allocation14 + $0x30] sm:$0xff]  ;;  %v1726_v61 = vld [vmem:[#allocation14 + $0x378] sm:$0xff] }
 0x9de   : > { %v4515_v18 = vcombine.low %v1621_v8, %v1629_v9 }
 0x9df   : > { %2586 = vmatmul.mubr.bf16.vlgmr.msra.gmra.mrb[32].mxu1 %v6286_v7  ;;  %2629 = vmatmul.mubr.bf16.vlgmr.msra.gmra.mrb[20].mxu0 %v6286_v7 }
 0x9e0   : > { %2640 = vmatpush1.bf16.msra.mxu1 %v4511_v12  ;;  %2683 = vmatpush1.bf16.msra.mxu0 %v4513_v0  ;;  %v4625_v12 = vcombine.low %v1732_v62, %v1740_v63  ;;  %v4516_v0 = vcombine.high %v1621_v8, %v1629_v9  ;;  %v4597_v63 = vcombine.low %v1702_v51, %v1710_v52  ;;  %v1734_v8 = vld [vmem:[#allocation14 + $0x3b8] sm:$0xff] }
 0x9e1   : > { %2641 = vmatprep.subr.bf16.mxu1 %v4528_v13  ;;  %2684 = vmatprep.subr.bf16.mxu0 %v4530_v14  ;;  %v4518_v13 = vcombine.high %v1622_v48, %v1630_v10  ;;  %v1637_v14 = vld [vmem:[#allocation14 + $0xb0] sm:$0xff]  ;;  %v1742_v9 = vld [vmem:[#allocation14 + $0x3f8] sm:$0xff] }
 0x9e2   : > { %2671 = vmatprep.mubr.bf16.mxu1 %v5722_v1  ;;  %2714 = vmatprep.mubr.bf16.mxu0 %v5722_v1  ;;  %v4531_v26 = vcombine.low %v1637_v14, %v1645_v15 }
 0x9e4   : > { %2642 = vmatpush1.bf16.msra.mxu1 %v4527_v19  ;;  %2685 = vmatpush1.bf16.msra.mxu0 %v4529_v20  ;;  %v4517_v19 = vcombine.low %v1622_v48, %v1630_v10  ;;  %v4532_v20 = vcombine.high %v1637_v14, %v1645_v15  ;;  %v4613_v10 = vcombine.low %v1718_v60, %v1726_v61  ;;  %v5239_v14 = vld [vmem:[#allocation16 + $0x40] sm:$0xff]  }
 0x9e5   : > { %2643 = vmatprep.subr.bf16.mxu1 %v4544_v21  ;;  %2686 = vmatprep.subr.bf16.mxu0 %v4546_v22  ;;  %v4534_v21 = vcombine.high %v1638_v16, %v1646_v17  ;;  %v1653_v22 = vld [vmem:[#allocation14 + $0x130] sm:$0xff]  ;;  %v5240_v15 = vld [vmem:[#allocation16 + $0xc0] sm:$0xff]  }
 0x9e6   : > { %v4547_v55 = vcombine.low %v1653_v22, %v1661_v23 }
 0x9e8   : > { %2644 = vmatpush1.bf16.msra.mxu1 %v4543_v27  ;;  %2687 = vmatpush1.bf16.msra.mxu0 %v4545_v28  ;;  %v4533_v27 = vcombine.low %v1638_v16, %v1646_v17  ;;  %v4548_v28 = vcombine.high %v1653_v22, %v1661_v23  ;;  %v5241_v16 = vld [vmem:[#allocation16] sm:$0xff]   ;;  %v5247_v22 = vld [vmem:[#allocation16 + $0x50] sm:$0xff]  }
 0x9e9   : > { %2645 = vmatprep.subr.bf16.mxu1 %v4560_v29  ;;  %2688 = vmatprep.subr.bf16.mxu0 %v4562_v30  ;;  %v4550_v29 = vcombine.high %v1654_v24, %v1662_v25  ;;  %v1669_v30 = vld [vmem:[#allocation14 + $0x1b0] sm:$0xff]  ;;  %v5242_v17 = vld [vmem:[#allocation16 + $0x80] sm:$0xff]  }
 0x9ea   : > { %v4563_v44 = vcombine.low %v1669_v30, %v1677_v31  ;;  %v5248_v23 = vld [vmem:[#allocation16 + $0xd0] sm:$0xff]  }
 0x9ec   : > { %2646 = vmatpush1.bf16.msra.mxu1 %v4559_v37  ;;  %2689 = vmatpush1.bf16.msra.mxu0 %v4561_v38  ;;  %v4549_v37 = vcombine.low %v1654_v24, %v1662_v25  ;;  %v4564_v38 = vcombine.high %v1669_v30, %v1677_v31  ;;  %v5249_v24 = vld [vmem:[#allocation16 + $0x10] sm:$0xff]   ;;  %v5256_v30 = vld [vmem:[#allocation16 + $0xe0] sm:$0xff]  }
 0x9ed   : > { %2647 = vmatprep.subr.bf16.mxu1 %v4576_v39  ;;  %2690 = vmatprep.subr.bf16.mxu0 %v4578_v40  ;;  %v4566_v39 = vcombine.high %v1670_v32, %v1678_v35  ;;  %v1685_v40 = vld [vmem:[#allocation14 + $0x230] sm:$0xff]  ;;  %v5257_v31 = vld [vmem:[#allocation16 + $0x20] sm:$0xff]  }
 0x9ee   : > { %v4579_v53 = vcombine.low %v1685_v40, %v1693_v41  ;;  %v5250_v25 = vld [vmem:[#allocation16 + $0x90] sm:$0xff]  }
 0x9f0   : > { %2648 = vmatpush1.bf16.msra.mxu1 %v4575_v45  ;;  %2691 = vmatpush1.bf16.msra.mxu0 %v4577_v47  ;;  %v4565_v45 = vcombine.low %v1670_v32, %v1678_v35  ;;  %v4580_v47 = vcombine.high %v1685_v40, %v1693_v41  ;;  %v5258_v32 = vld [vmem:[#allocation16 + $0xa0] sm:$0xff]   ;;  %v5259_v35 = vld [vmem:[#allocation16 + $0x68] sm:$0xff]   ;;  %v5264_v40 = vld [vmem:[#allocation16 + $0xf0] sm:$0xff]  }
 0x9f1   : > { %2649 = vmatprep.subr.bf16.mxu1 %v4592_v49  ;;  %2692 = vmatprep.subr.bf16.mxu0 %v4594_v50  ;;  %v1701_v49 = vld [vmem:[#allocation14 + $0x2b0] sm:$0xff] }
 0x9f2   : > { %v1709_v50 = vld [vmem:[#allocation14 + $0x2f0] sm:$0xff] }
 0x9f3   : > { %v4595_v62 = vcombine.low %v1701_v49, %v1709_v50  ;;  %v5265_v41 = vld [vmem:[#allocation16 + $0x30] sm:$0xff]  }
 0x9f4   : > { %2650 = vmatpush1.bf16.msra.mxu1 %v4591_v56  ;;  %2693 = vmatpush1.bf16.msra.mxu0 %v4593_v57  ;;  %v4596_v56 = vcombine.high %v1701_v49, %v1709_v50  ;;  %v4598_v57 = vcombine.high %v1702_v51, %v1710_v52  ;;  %v5272_v49 = vld [vmem:[#allocation16 + $0x1c0] sm:$0xff]   ;;  %v1757_v50 = vsub.s32 2, %v6166_v33  ;;  %v6306_v51 = vld [vmem:[%s6509_s27] sm:$0xff]  ;;  %v1761_v52 = vsub.s32 3, %v6166_v33 }
 0x9f5   : > { %2651 = vmatprep.subr.bf16.mxu1 %v4608_v58  ;;  %2694 = vmatprep.subr.bf16.mxu0 %v4610_v59  ;;  %v1717_v58 = vld [vmem:[#allocation14 + $0x330] sm:$0xff] }
 0x9f6   : > { %v1725_v59 = vld [vmem:[#allocation14 + $0x370] sm:$0xff] }
 0x9f7   : > { %v4611_v48 = vcombine.low %v1717_v58, %v1725_v59 }
 0x9f8   : > { %2652 = vmatpush1.bf16.msra.mxu1 %v4607_v2  ;;  %2695 = vmatpush1.bf16.msra.mxu0 %v4609_v3  ;;  %v4612_v2 = vcombine.high %v1717_v58, %v1725_v59  ;;  %v4614_v3 = vcombine.high %v1718_v60, %v1726_v61 }
 0x9f9   : > { %2653 = vmatprep.subr.bf16.mxu1 %v4624_v4  ;;  %2696 = vmatprep.subr.bf16.mxu0 %v4626_v5  ;;  %v1733_v4 = vld [vmem:[#allocation14 + $0x3b0] sm:$0xff] }
 0x9fa   : > { %v1741_v5 = vld [vmem:[#allocation14 + $0x3f0] sm:$0xff] }
 0x9fc   : > { %2654 = vmatpush1.bf16.msra.mxu1 %v4623_v11  ;;  %2697 = vmatpush1.bf16.msra.mxu0 %v4625_v12  ;;  %v4628_v11 = vcombine.high %v1733_v4, %v1741_v5  ;;  %v4630_v12 = vcombine.high %v1734_v8, %v1742_v9 }
 0x9fd   : > { %2725 = vmatprep.subr.bf16.mxu1 %v4516_v0  ;;  %2768 = vmatprep.subr.bf16.mxu0 %v4518_v13  ;;  %v4627_v0 = vcombine.low %v1733_v4, %v1741_v5  ;;  %v4629_v13 = vcombine.low %v1734_v8, %v1742_v9 }
 0x9ff   : > { %2672 = vmatmul.mubr.bf16.vlgmr.msra.gmra.mrb[36].mxu1 %v6286_v7  ;;  %2715 = vmatmul.mubr.bf16.vlgmr.msra.gmra.mrb[24].mxu0 %v6286_v7 }
 0xa00   : > { %2726 = vmatpush1.bf16.msra.mxu1 %v4515_v18  ;;  %2769 = vmatpush1.bf16.msra.mxu0 %v4517_v19  ;;  %v5243_v18 = vld [vmem:[#allocation16 + $0x48] sm:$0xff]  }
 0xa01   : > { %2727 = vmatprep.subr.bf16.mxu1 %v4532_v20  ;;  %2770 = vmatprep.subr.bf16.mxu0 %v4534_v21  ;;  %v5244_v19 = vld [vmem:[#allocation16 + $0xc8] sm:$0xff]  }
 0xa02   : > { %2757 = vmatprep.mubr.bf16.mxu1 %v5722_v1  ;;  %2800 = vmatprep.mubr.bf16.mxu0 %v5722_v1  ;;  %v4582_v1 = vcombine.high %v1686_v42, %v1694_v43  ;;  %v5245_v20 = vld [vmem:[#allocation16 + $0x8] sm:$0xff]   ;;  %v5266_v42 = vld [vmem:[#allocation16 + $0xb0] sm:$0xff]   ;;  %v5267_v43 = vld [vmem:[#allocation16 + $0x78] sm:$0xff]  }
 0xa03   : > { %v5246_v21 = vld [vmem:[#allocation16 + $0x88] sm:$0xff]  }
 0xa04   : > { %2728 = vmatpush1.bf16.msra.mxu1 %v4531_v26  ;;  %2771 = vmatpush1.bf16.msra.mxu0 %v4533_v27  ;;  %v5251_v26 = vld [vmem:[#allocation16 + $0x58] sm:$0xff]  }
 0xa05   : > { %2729 = vmatprep.subr.bf16.mxu1 %v4548_v28  ;;  %2772 = vmatprep.subr.bf16.mxu0 %v4550_v29  ;;  %v5252_v27 = vld [vmem:[#allocation16 + $0xd8] sm:$0xff]   ;;  %v5255_v29 = vld [vmem:[#allocation16 + $0x60] sm:$0xff]  }
 0xa06   : > { %v5253_v28 = vld [vmem:[#allocation16 + $0x18] sm:$0xff]  }
 0xa08   : > { %2730 = vmatpush1.bf16.msra.mxu1 %v4547_v55  ;;  %2773 = vmatpush1.bf16.msra.mxu0 %v4549_v37  ;;  %v5260_v55 = vld [vmem:[#allocation16 + $0xe8] sm:$0xff]  }
 0xa09   : > { %2731 = vmatprep.subr.bf16.mxu1 %v4564_v38  ;;  %2774 = vmatprep.subr.bf16.mxu0 %v4566_v39  ;;  %v5261_v37 = vld [vmem:[#allocation16 + $0x28] sm:$0xff]   ;;  %v5263_v39 = vld [vmem:[#allocation16 + $0x70] sm:$0xff]  }
 0xa0a   : > { %v5262_v38 = vld [vmem:[#allocation16 + $0xa8] sm:$0xff]  }
 0xa0c   : > { %2732 = vmatpush1.bf16.msra.mxu1 %v4563_v44  ;;  %2775 = vmatpush1.bf16.msra.mxu0 %v4565_v45  ;;  %v5268_v44 = vld [vmem:[#allocation16 + $0xf8] sm:$0xff]  }
 0xa0d   : > { %2733 = vmatprep.subr.bf16.mxu1 %v4580_v47  ;;  %2776 = vmatprep.subr.bf16.mxu0 %v4582_v1  ;;  %v5269_v45 = vld [vmem:[#allocation16 + $0x38] sm:$0xff]   ;;  %v5271_v1 = vld [vmem:[#allocation16 + $0x140] sm:$0xff]  }
 0xa0e   : > { %v5270_v47 = vld [vmem:[#allocation16 + $0xb8] sm:$0xff]  }
 0xa10   : > { %2734 = vmatpush1.bf16.msra.mxu1 %v4579_v53  ;;  %2777 = vmatpush1.bf16.msra.mxu0 %v4581_v54  ;;  %v1750_v53 = vrot.slane %v6306_v51, %v6169_v34  ;;  %v1758_v54 = vrot.slane %v6306_v51, %v1757_v50 }
 0xa11   : > { %2735 = vmatprep.subr.bf16.mxu1 %v4596_v56  ;;  %2778 = vmatprep.subr.bf16.mxu0 %v4598_v57  ;;  %v1754_v56 = vrot.slane %v6306_v51, %v6175_v36  ;;  %v1762_v57 = vrot.slane %v6306_v51, %v1761_v52 }
 0xa14   : > { %2736 = vmatpush1.bf16.msra.mxu1 %v4595_v62  ;;  %2779 = vmatpush1.bf16.msra.mxu0 %v4597_v63 }
 0xa15   : > { %2737 = vmatprep.subr.bf16.mxu1 %v4612_v2  ;;  %2780 = vmatprep.subr.bf16.mxu0 %v4614_v3 }
 0xa18   : > { %2738 = vmatpush1.bf16.msra.mxu1 %v4611_v48  ;;  %2781 = vmatpush1.bf16.msra.mxu0 %v4613_v10 }
 0xa19   : > { %2739 = vmatprep.subr.bf16.mxu1 %v4628_v11  ;;  %2782 = vmatprep.subr.bf16.mxu0 %v4630_v12 }
 0xa1c   : > { %2740 = vmatpush1.bf16.msra.mxu1 %v4627_v0  ;;  %2783 = vmatpush1.bf16.msra.mxu0 %v4629_v13 }
 0xa1d   : > { %4804 = vmatprep.subr.bf16.mxu1 %v5239_v14  ;;  %4826 = vmatprep.subr.bf16.mxu0 %v5240_v15 }
 0xa1f   : > { %2758 = vmatmul.mubr.bf16.vlgmr.msra.gmra.mrb[40].mxu1 %v6286_v7  ;;  %2801 = vmatmul.mubr.bf16.vlgmr.msra.gmra.mrb[28].mxu0 %v6286_v7  ;;  %v5254_v7 = vld [vmem:[#allocation16 + $0x98] sm:$0xff]  }
 0xa20   : > { %4805 = vmatpush3.bf16.msra.mxu1 %v5241_v16  ;;  %4827 = vmatpush3.bf16.msra.mxu0 %v5242_v17 }
 0xa21   : > { %4806 = vmatprep.subr.bf16.mxu1 %v5243_v18  ;;  %4828 = vmatprep.subr.bf16.mxu0 %v5244_v19 }
 0xa24   : > { %4807 = vmatpush3.bf16.msra.mxu1 %v5245_v20  ;;  %4829 = vmatpush3.bf16.msra.mxu0 %v5246_v21 }
 0xa25   : > { %4808 = vmatprep.subr.bf16.mxu1 %v5247_v22  ;;  %4830 = vmatprep.subr.bf16.mxu0 %v5248_v23 }
 0xa28   : > { %4809 = vmatpush3.bf16.msra.mxu1 %v5249_v24  ;;  %4831 = vmatpush3.bf16.msra.mxu0 %v5250_v25  ;;  %v5273_v24 = vld [vmem:[#allocation16 + $0x100] sm:$0xff]  }
 0xa29   : > { %4810 = vmatprep.subr.bf16.mxu1 %v5251_v26  ;;  %4832 = vmatprep.subr.bf16.mxu0 %v5252_v27  ;;  %v5274_v25 = vld [vmem:[#allocation16 + $0x180] sm:$0xff]   ;;  %v5275_v26 = vld [vmem:[#allocation16 + $0x148] sm:$0xff]  }
 0xa2a   : > { %v5276_v27 = vld [vmem:[#allocation16 + $0x1c8] sm:$0xff]  }
 0xa2c   : > { %4811 = vmatpush3.bf16.msra.mxu1 %v5253_v28  ;;  %4833 = vmatpush3.bf16.msra.mxu0 %v5254_v7  ;;  %v5277_v28 = vld [vmem:[#allocation16 + $0x108] sm:$0xff]  }
 0xa2d   : > { %4812 = vmatprep.subr.bf16.mxu1 %v5255_v29  ;;  %4834 = vmatprep.subr.bf16.mxu0 %v5256_v30  ;;  %v5278_v7 = vld [vmem:[#allocation16 + $0x188] sm:$0xff]   ;;  %v5279_v29 = vld [vmem:[#allocation16 + $0x150] sm:$0xff]  }
 0xa2e   : > { %v5280_v30 = vld [vmem:[#allocation16 + $0x1d0] sm:$0xff]  }
 0xa30   : > { %4813 = vmatpush3.bf16.msra.mxu1 %v5257_v31  ;;  %4835 = vmatpush3.bf16.msra.mxu0 %v5258_v32  ;;  %v5281_v31 = vld [vmem:[#allocation16 + $0x110] sm:$0xff]  }
 0xa31   : > { %4814 = vmatprep.subr.bf16.mxu1 %v5259_v35  ;;  %4836 = vmatprep.subr.bf16.mxu0 %v5260_v55  ;;  %v5282_v32 = vld [vmem:[#allocation16 + $0x190] sm:$0xff]   ;;  %v5283_v35 = vld [vmem:[#allocation16 + $0x158] sm:$0xff]  }
 0xa32   : > { %v5284_v55 = vld [vmem:[#allocation16 + $0x1d8] sm:$0xff]  }
 0xa34   : > { %4815 = vmatpush3.bf16.msra.mxu1 %v5261_v37  ;;  %4837 = vmatpush3.bf16.msra.mxu0 %v5262_v38  ;;  %v5285_v37 = vld [vmem:[#allocation16 + $0x118] sm:$0xff]  }
 0xa35   : > { %4816 = vmatprep.subr.bf16.mxu1 %v5263_v39  ;;  %4838 = vmatprep.subr.bf16.mxu0 %v5264_v40  ;;  %v5286_v38 = vld [vmem:[#allocation16 + $0x198] sm:$0xff]   ;;  %v5287_v39 = vld [vmem:[#allocation16 + $0x160] sm:$0xff]  }
 0xa36   : > { %v5288_v40 = vld [vmem:[#allocation16 + $0x1e0] sm:$0xff]  }
 0xa38   : > { %4817 = vmatpush3.bf16.msra.mxu1 %v5265_v41  ;;  %4839 = vmatpush3.bf16.msra.mxu0 %v5266_v42  ;;  %v5289_v41 = vld [vmem:[#allocation16 + $0x120] sm:$0xff]  }
 0xa39   : > { %4818 = vmatprep.subr.bf16.mxu1 %v5267_v43  ;;  %4840 = vmatprep.subr.bf16.mxu0 %v5268_v44  ;;  %v5290_v42 = vld [vmem:[#allocation16 + $0x1a0] sm:$0xff]   ;;  %v5291_v43 = vld [vmem:[#allocation16 + $0x168] sm:$0xff]  }
 0xa3a   : > { %v5292_v44 = vld [vmem:[#allocation16 + $0x1e8] sm:$0xff]  }
 0xa3c   : > { %4819 = vmatpush3.bf16.msra.mxu1 %v5269_v45  ;;  %4841 = vmatpush3.bf16.msra.mxu0 %v5270_v47  ;;  %v1765_v45 = vsub.s32 4, %v6166_v33  ;;  %v1773_v47 = vsub.s32 6, %v6166_v33 }
 0xa3d   : > { %4848 = vmatprep.subr.bf16.mxu1 %v5271_v1  ;;  %4870 = vmatprep.subr.bf16.mxu0 %v5272_v49  ;;  %v1769_v1 = vsub.s32 5, %v6166_v33  ;;  %v1777_v49 = vsub.s32 7, %v6166_v33 }
 0xa92   : > { %v2501_v58 = vpop.f32.mrb[28].mxu1  ;;  %v2544_v59 = vpop.f32.mrb[16].mxu0 }
 0xa93   : > { %v2502_v60 = vadd.f32 %v2501_v58, %v1750_v53  ;;  %v2545_v61 = vadd.f32 %v2544_v59, %v1758_v54  ;;  %v2503_v62 = vpop.f32.mrb[29].mxu1  ;;  %v2546_v63 = vpop.f32.mrb[17].mxu0  ;;  %v5295_v58 = vld [vmem:[#allocation16 + $0x170] sm:$0xff]  }
 0xa94   : > { %v2504_v2 = vadd.f32 %v2503_v62, %v1754_v56  ;;  %v2547_v3 = vadd.f32 %v2546_v63, %v1762_v57  ;;  %v2505_v4 = vpop.f32.mrb[30].mxu1  ;;  %v2548_v5 = vpop.f32.mrb[18].mxu0  ;;  %v5296_v59 = vld [vmem:[#allocation16 + $0x1f0] sm:$0xff]  }
 0xa95   : > { %v2506_v8 = vadd.f32 %v2505_v4, %v1750_v53  ;;  %v2549_v9 = vadd.f32 %v2548_v5, %v1758_v54  ;;  %v2507_v48 = vpop.f32.mrb[31].mxu1  ;;  %v2550_v10 = vpop.f32.mrb[19].mxu0  ;;  %v2811_v0 = vmax.f32 %v2502_v60, 0.0  ;;  %v2813_v13 = vmax.f32 %v2545_v61, 0.0  ;;  %v5293_v53 = vld [vmem:[#allocation16 + $0x128] sm:$0xff]  }
 0xa96   : > { %v2508_v11 = vadd.f32 %v2507_v48, %v1754_v56  ;;  %v2551_v12 = vadd.f32 %v2550_v10, %v1762_v57  ;;  %v2812_v16 = vmax.f32 %v2504_v2, 0.0  ;;  %v2814_v17 = vmax.f32 %v2547_v3, 0.0  ;;  %v5294_v54 = vld [vmem:[#allocation16 + $0x1a8] sm:$0xff]   ;;  %v5297_v2 = vld [vmem:[#allocation16 + $0x130] sm:$0xff]   ;;  %v5299_v48 = vld [vmem:[#allocation16 + $0x178] sm:$0xff]  }
 0xa97   : > { %v2827_v14 = vmax.f32 %v2506_v8, 0.0  ;;  %v2829_v15 = vmax.f32 %v2549_v9, 0.0  ;;  %v1766_v56 = vrot.slane %v6306_v51, %v1765_v45  ;;  %v1774_v57 = vrot.slane %v6306_v51, %v1773_v47  ;;  %v5298_v3 = vld [vmem:[#allocation16 + $0x1b0] sm:$0xff]   ;;  %v5300_v10 = vld [vmem:[#allocation16 + $0x1f8] sm:$0xff]  }
 0xa98   : > { %v2828_v18 = vmax.f32 %v2508_v11, 0.0  ;;  %v2830_v19 = vmax.f32 %v2551_v12, 0.0  ;;  %v1770_v60 = vrot.slane %v6306_v51, %v1769_v1  ;;  %v1778_v61 = vrot.slane %v6306_v51, %v1777_v49 }
 0xa99   : > { %v2843_v20 = vpack.c.bf16 %v2827_v14, %v2811_v0  ;;  %v2845_v21 = vpack.c.bf16 %v2829_v15, %v2813_v13 }
 0xa9a   : > { %v2844_v22 = vpack.c.bf16 %v2828_v18, %v2812_v16  ;;  %v2846_v23 = vpack.c.bf16 %v2830_v19, %v2814_v17  ;;  %v5301_v19 = vld [vmem:[#allocation16 + $0x138] sm:$0xff]  }
 0xa9c   : > { %3922 = vmatprep.mubr.bf16.mxu1 %v2844_v22  ;;  %3963 = vmatprep.mubr.bf16.mxu0 %v2846_v23 }
 0xa9d   : > { %3923 = vmatmul.mubr.bf16.vlgmr.msra.gmra.mrb[44].mxu1 %v2843_v20  ;;  %3964 = vmatmul.mubr.bf16.vlgmr.msra.gmra.mrb[32].mxu0 %v2845_v21  ;;  %v5302_v20 = vld [vmem:[#allocation16 + $0x1b8] sm:$0xff]  }
 0xa9e   : > { %4849 = vmatpush3.bf16.msra.mxu1 %v5273_v24  ;;  %4871 = vmatpush3.bf16.msra.mxu0 %v5274_v25  ;;  %v5303_v25 = vld [vmem:[#allocation16 + $0x240] sm:$0xff]  }
 0xa9f   : > { %4850 = vmatprep.subr.bf16.mxu1 %v5275_v26  ;;  %4872 = vmatprep.subr.bf16.mxu0 %v5276_v27  ;;  %v5304_v26 = vld [vmem:[#allocation16 + $0x2c0] sm:$0xff]  }
 0xaa2   : > { %4851 = vmatpush3.bf16.msra.mxu1 %v5277_v28  ;;  %4873 = vmatpush3.bf16.msra.mxu0 %v5278_v7 }
 0xaa3   : > { %4852 = vmatprep.subr.bf16.mxu1 %v5279_v29  ;;  %4874 = vmatprep.subr.bf16.mxu0 %v5280_v30 }
 0xaa6   : > { %4853 = vmatpush3.bf16.msra.mxu1 %v5281_v31  ;;  %4875 = vmatpush3.bf16.msra.mxu0 %v5282_v32 }
 0xaa7   : > { %4854 = vmatprep.subr.bf16.mxu1 %v5283_v35  ;;  %4876 = vmatprep.subr.bf16.mxu0 %v5284_v55  ;;  %v5305_v55 = vld [vmem:[#allocation16 + $0x200] sm:$0xff]  }
 0xaaa   : > { %4855 = vmatpush3.bf16.msra.mxu1 %v5285_v37  ;;  %4877 = vmatpush3.bf16.msra.mxu0 %v5286_v38  ;;  %v5306_v37 = vld [vmem:[#allocation16 + $0x280] sm:$0xff]   ;;  %v5307_v38 = vld [vmem:[#allocation16 + $0x248] sm:$0xff]  }
 0xaab   : > { %4856 = vmatprep.subr.bf16.mxu1 %v5287_v39  ;;  %4878 = vmatprep.subr.bf16.mxu0 %v5288_v40  ;;  %v5308_v39 = vld [vmem:[#allocation16 + $0x2c8] sm:$0xff]  }
 0xaac   : > { %v5309_v40 = vld [vmem:[#allocation16 + $0x208] sm:$0xff]  }
 0xaae   : > { %4857 = vmatpush3.bf16.msra.mxu1 %v5289_v41  ;;  %4879 = vmatpush3.bf16.msra.mxu0 %v5290_v42  ;;  %v5310_v41 = vld [vmem:[#allocation16 + $0x288] sm:$0xff]   ;;  %v5311_v42 = vld [vmem:[#allocation16 + $0x250] sm:$0xff]  }
 0xaaf   : > { %4858 = vmatprep.subr.bf16.mxu1 %v5291_v43  ;;  %4880 = vmatprep.subr.bf16.mxu0 %v5292_v44  ;;  %v5312_v43 = vld [vmem:[#allocation16 + $0x2d0] sm:$0xff]  }
 0xab0   : > { %v5313_v44 = vld [vmem:[#allocation16 + $0x210] sm:$0xff]  }
 0xab2   : > { %v2587_v62 = vpop.f32.mrb[32].mxu1  ;;  %v2630_v63 = vpop.f32.mrb[20].mxu0  ;;  %4859 = vmatpush3.bf16.msra.mxu1 %v5293_v53  ;;  %4881 = vmatpush3.bf16.msra.mxu0 %v5294_v54  ;;  %v5314_v53 = vld [vmem:[#allocation16 + $0x290] sm:$0xff]   ;;  %v5315_v54 = vld [vmem:[#allocation16 + $0x258] sm:$0xff]  }
 0xab3   : > { %v2588_v4 = vadd.f32 %v2587_v62, %v1766_v56  ;;  %v2631_v5 = vadd.f32 %v2630_v63, %v1774_v57  ;;  %v2589_v8 = vpop.f32.mrb[33].mxu1  ;;  %v2632_v9 = vpop.f32.mrb[21].mxu0  ;;  %4860 = vmatprep.subr.bf16.mxu1 %v5295_v58  ;;  %4882 = vmatprep.subr.bf16.mxu0 %v5296_v59  ;;  %v5318_v58 = vld [vmem:[#allocation16 + $0x298] sm:$0xff]   ;;  %v5319_v59 = vld [vmem:[#allocation16 + $0x260] sm:$0xff]   ;;  %v5323_v63 = vld [vmem:[#allocation16 + $0x268] sm:$0xff]  }
 0xab4   : > { %v2590_v11 = vadd.f32 %v2589_v8, %v1770_v60  ;;  %v2633_v12 = vadd.f32 %v2632_v9, %v1778_v61  ;;  %v2591_v0 = vpop.f32.mrb[34].mxu1  ;;  %v2634_v13 = vpop.f32.mrb[22].mxu0  ;;  %v5322_v62 = vld [vmem:[#allocation16 + $0x2a0] sm:$0xff]  }
 0xab5   : > { %v2592_v14 = vadd.f32 %v2591_v0, %v1766_v56  ;;  %v2635_v51 = vadd.f32 %v2634_v13, %v1774_v57  ;;  %v2593_v15 = vpop.f32.mrb[35].mxu1  ;;  %v2636_v16 = vpop.f32.mrb[23].mxu0  ;;  %v2815_v21 = vmax.f32 %v2588_v4, 0.0  ;;  %v2817_v22 = vmax.f32 %v2631_v5, 0.0  ;;  %v5316_v56 = vld [vmem:[#allocation16 + $0x2d8] sm:$0xff]   ;;  %v5325_v4 = vld [vmem:[#allocation16 + $0x228] sm:$0xff]  }
 0xab6   : > { %v2594_v17 = vadd.f32 %v2593_v15, %v1770_v60  ;;  %v2637_v18 = vadd.f32 %v2636_v16, %v1778_v61  ;;  %4861 = vmatpush3.bf16.msra.mxu1 %v5297_v2  ;;  %4883 = vmatpush3.bf16.msra.mxu0 %v5298_v3  ;;  %v2816_v27 = vmax.f32 %v2590_v11, 0.0  ;;  %v2818_v28 = vmax.f32 %v2633_v12, 0.0  ;;  %v5317_v57 = vld [vmem:[#allocation16 + $0x218] sm:$0xff]   ;;  %v5320_v60 = vld [vmem:[#allocation16 + $0x2e0] sm:$0xff]   ;;  %v5324_v2 = vld [vmem:[#allocation16 + $0x2e8] sm:$0xff]  }
 0xab7   : > { %v2831_v23 = vmax.f32 %v2592_v14, 0.0  ;;  %v2833_v24 = vmax.f32 %v2635_v51, 0.0  ;;  %4862 = vmatprep.subr.bf16.mxu1 %v5299_v48  ;;  %4884 = vmatprep.subr.bf16.mxu0 %v5300_v10  ;;  %v5321_v61 = vld [vmem:[#allocation16 + $0x220] sm:$0xff]   ;;  %v5326_v5 = vld [vmem:[#allocation16 + $0x2a8] sm:$0xff]   ;;  %v5327_v48 = vld [vmem:[#allocation16 + $0x270] sm:$0xff]  }
 0xab8   : > { %v2832_v7 = vmax.f32 %v2594_v17, 0.0  ;;  %v2834_v29 = vmax.f32 %v2637_v18, 0.0  ;;  %v6338_v3 = vld [vmem:[%s6509_s27 + $0x8] sm:$0xff]  ;;  %v5328_v10 = vld [vmem:[#allocation16 + $0x2f0] sm:$0xff]   ;;  %v5332_v18 = vld [vmem:[#allocation16 + $0x2f8] sm:$0xff]  }
 0xab9   : > { %v2847_v30 = vpack.c.bf16 %v2831_v23, %v2815_v21  ;;  %v2849_v31 = vpack.c.bf16 %v2833_v24, %v2817_v22  ;;  %v1782_v8 = vrot.slane %v6338_v3, %v6169_v34  ;;  %v1790_v9 = vrot.slane %v6338_v3, %v1757_v50  ;;  %v5329_v14 = vld [vmem:[#allocation16 + $0x230] sm:$0xff]   ;;  %v5331_v50 = vld [vmem:[#allocation16 + $0x278] sm:$0xff]  }
 0xaba   : > { %v2848_v32 = vpack.c.bf16 %v2832_v7, %v2816_v27  ;;  %v2850_v35 = vpack.c.bf16 %v2834_v29, %v2818_v28  ;;  %4863 = vmatpush3.bf16.msra.mxu1 %v5301_v19  ;;  %4885 = vmatpush3.bf16.msra.mxu0 %v5302_v20  ;;  %v1786_v11 = vrot.slane %v6338_v3, %v6175_v36  ;;  %v5330_v51 = vld [vmem:[#allocation16 + $0x2b0] sm:$0xff]   ;;  %v5333_v27 = vld [vmem:[#allocation16 + $0x238] sm:$0xff]  }
 0xabb   : > { %4892 = vmatprep.subr.bf16.mxu1 %v5303_v25  ;;  %4914 = vmatprep.subr.bf16.mxu0 %v5304_v26  ;;  %v1794_v12 = vrot.slane %v6338_v3, %v1761_v52  ;;  %v5334_v28 = vld [vmem:[#allocation16 + $0x2b8] sm:$0xff]  }
 0xabc   : > { %4004 = vmatprep.mubr.bf16.mxu1 %v2848_v32  ;;  %4045 = vmatprep.mubr.bf16.mxu0 %v2850_v35  ;;  %v5335_v32 = vld [vmem:[#allocation16 + $0x340] sm:$0xff]  }
 0xabd   : > { %4005 = vmatmul.mubr.bf16.vlgmr.msra.gmra.mrb[48].mxu1 %v2847_v30  ;;  %4046 = vmatmul.mubr.bf16.vlgmr.msra.gmra.mrb[36].mxu0 %v2849_v31  ;;  %v5336_v35 = vld [vmem:[#allocation16 + $0x3c0] sm:$0xff]  }
 0xabe   : > { %4893 = vmatpush3.bf16.msra.mxu1 %v5305_v55  ;;  %4915 = vmatpush3.bf16.msra.mxu0 %v5306_v37 }
 0xabf   : > { %4894 = vmatprep.subr.bf16.mxu1 %v5307_v38  ;;  %4916 = vmatprep.subr.bf16.mxu0 %v5308_v39 }
 0xac2   : > { %4895 = vmatpush3.bf16.msra.mxu1 %v5309_v40  ;;  %4917 = vmatpush3.bf16.msra.mxu0 %v5310_v41 }
 0xac3   : > { %4896 = vmatprep.subr.bf16.mxu1 %v5311_v42  ;;  %4918 = vmatprep.subr.bf16.mxu0 %v5312_v43 }
 0xac6   : > { %4897 = vmatpush3.bf16.msra.mxu1 %v5313_v44  ;;  %4919 = vmatpush3.bf16.msra.mxu0 %v5314_v53  ;;  %v5337_v44 = vld [vmem:[#allocation16 + $0x300] sm:$0xff]  }
 0xac7   : > { %4898 = vmatprep.subr.bf16.mxu1 %v5315_v54  ;;  %4920 = vmatprep.subr.bf16.mxu0 %v5316_v56  ;;  %v5338_v53 = vld [vmem:[#allocation16 + $0x380] sm:$0xff]   ;;  %v5339_v54 = vld [vmem:[#allocation16 + $0x348] sm:$0xff]  }
 0xac8   : > { %v5340_v56 = vld [vmem:[#allocation16 + $0x3c8] sm:$0xff]  }
 0xaca   : > { %4899 = vmatpush3.bf16.msra.mxu1 %v5317_v57  ;;  %4921 = vmatpush3.bf16.msra.mxu0 %v5318_v58  ;;  %v5341_v57 = vld [vmem:[#allocation16 + $0x308] sm:$0xff]  }
 0xacb   : > { %4900 = vmatprep.subr.bf16.mxu1 %v5319_v59  ;;  %4922 = vmatprep.subr.bf16.mxu0 %v5320_v60  ;;  %v5342_v58 = vld [vmem:[#allocation16 + $0x388] sm:$0xff]   ;;  %v5343_v59 = vld [vmem:[#allocation16 + $0x350] sm:$0xff]  }
 0xacc   : > { %v5344_v60 = vld [vmem:[#allocation16 + $0x3d0] sm:$0xff]  }
 0xace   : > { %4901 = vmatpush3.bf16.msra.mxu1 %v5321_v61  ;;  %4923 = vmatpush3.bf16.msra.mxu0 %v5322_v62  ;;  %v5345_v61 = vld [vmem:[#allocation16 + $0x310] sm:$0xff]  }
 0xacf   : > { %4902 = vmatprep.subr.bf16.mxu1 %v5323_v63  ;;  %4924 = vmatprep.subr.bf16.mxu0 %v5324_v2  ;;  %v5346_v62 = vld [vmem:[#allocation16 + $0x390] sm:$0xff]   ;;  %v5347_v63 = vld [vmem:[#allocation16 + $0x358] sm:$0xff]  }
 0xad0   : > { %v5348_v2 = vld [vmem:[#allocation16 + $0x3d8] sm:$0xff]  }
 0xad2   : > { %v2673_v0 = vpop.f32.mrb[36].mxu1  ;;  %v2716_v13 = vpop.f32.mrb[24].mxu0  ;;  %4903 = vmatpush3.bf16.msra.mxu1 %v5325_v4  ;;  %4925 = vmatpush3.bf16.msra.mxu0 %v5326_v5  ;;  %v5349_v4 = vld [vmem:[#allocation16 + $0x318] sm:$0xff]  }
 0xad3   : > { %v2674_v34 = vadd.f32 %v2673_v0, %v1782_v8  ;;  %v2717_v15 = vadd.f32 %v2716_v13, %v1790_v9  ;;  %v2675_v16 = vpop.f32.mrb[37].mxu1  ;;  %v2718_v17 = vpop.f32.mrb[25].mxu0  ;;  %4904 = vmatprep.subr.bf16.mxu1 %v5327_v48  ;;  %4926 = vmatprep.subr.bf16.mxu0 %v5328_v10  ;;  %v5350_v5 = vld [vmem:[#allocation16 + $0x398] sm:$0xff]   ;;  %v5353_v48 = vld [vmem:[#allocation16 + $0x320] sm:$0xff]   ;;  %v5357_v0 = vld [vmem:[#allocation16 + $0x328] sm:$0xff]  }
 0xad4   : > { %v2676_v19 = vadd.f32 %v2675_v16, %v1786_v11  ;;  %v2719_v36 = vadd.f32 %v2718_v17, %v1794_v12  ;;  %v2677_v20 = vpop.f32.mrb[38].mxu1  ;;  %v2720_v21 = vpop.f32.mrb[26].mxu0  ;;  %v5354_v10 = vld [vmem:[#allocation16 + $0x3a0] sm:$0xff]   ;;  %v5358_v13 = vld [vmem:[#allocation16 + $0x3a8] sm:$0xff]   ;;  %v1802_v16 = vrot.slane %v6338_v3, %v1769_v1  ;;  %v1810_v17 = vrot.slane %v6338_v3, %v1777_v49 }
 0xad5   : > { %v2678_v22 = vadd.f32 %v2677_v20, %v1782_v8  ;;  %v2721_v52 = vadd.f32 %v2720_v21, %v1790_v9  ;;  %v2679_v23 = vpop.f32.mrb[39].mxu1  ;;  %v2722_v24 = vpop.f32.mrb[27].mxu0  ;;  %v2819_v7 = vmax.f32 %v2674_v34, 0.0  ;;  %v2821_v29 = vmax.f32 %v2717_v15, 0.0  ;;  %v5351_v8 = vld [vmem:[#allocation16 + $0x360] sm:$0xff]   ;;  %v5359_v34 = vld [vmem:[#allocation16 + $0x370] sm:$0xff]  }
 0xad6   : > { %v2680_v25 = vadd.f32 %v2679_v23, %v1786_v11  ;;  %v2723_v26 = vadd.f32 %v2722_v24, %v1794_v12  ;;  %4905 = vmatpush3.bf16.msra.mxu1 %v5329_v14  ;;  %4927 = vmatpush3.bf16.msra.mxu0 %v5330_v51  ;;  %v2820_v55 = vmax.f32 %v2676_v19, 0.0  ;;  %v2822_v37 = vmax.f32 %v2719_v36, 0.0  ;;  %v5352_v9 = vld [vmem:[#allocation16 + $0x3e0] sm:$0xff]   ;;  %v5355_v11 = vld [vmem:[#allocation16 + $0x368] sm:$0xff]   ;;  %v5360_v15 = vld [vmem:[#allocation16 + $0x3f0] sm:$0xff]  }
 0xad7   : > { %v2835_v30 = vmax.f32 %v2678_v22, 0.0  ;;  %v2837_v31 = vmax.f32 %v2721_v52, 0.0  ;;  %4906 = vmatprep.subr.bf16.mxu1 %v5331_v50  ;;  %4928 = vmatprep.subr.bf16.mxu0 %v5332_v18  ;;  %v5356_v12 = vld [vmem:[#allocation16 + $0x3e8] sm:$0xff]   ;;  %v1798_v14 = vrot.slane %v6338_v3, %v1765_v45  ;;  %v1806_v51 = vrot.slane %v6338_v3, %v1773_v47  ;;  %v5361_v19 = vld [vmem:[#allocation16 + $0x330] sm:$0xff]   ;;  %v5363_v22 = vld [vmem:[#allocation16 + $0x378] sm:$0xff]  }
 0xad8   : > { %v2836_v38 = vmax.f32 %v2680_v25, 0.0  ;;  %v2838_v39 = vmax.f32 %v2723_v26, 0.0  ;;  %v5362_v45 = vld [vmem:[#allocation16 + $0x3b0] sm:$0xff]   ;;  %v5364_v52 = vld [vmem:[#allocation16 + $0x3f8] sm:$0xff]  }
 0xad9   : > { %v2851_v40 = vpack.c.bf16 %v2835_v30, %v2819_v7  ;;  %v2853_v41 = vpack.c.bf16 %v2837_v31, %v2821_v29  ;;  %v5365_v7 = vld [vmem:[#allocation16 + $0x338] sm:$0xff]  }
 0xada   : > { %v2852_v42 = vpack.c.bf16 %v2836_v38, %v2820_v55  ;;  %v2854_v43 = vpack.c.bf16 %v2838_v39, %v2822_v37  ;;  %4907 = vmatpush3.bf16.msra.mxu1 %v5333_v27  ;;  %4929 = vmatpush3.bf16.msra.mxu0 %v5334_v28  ;;  %v5366_v29 = vld [vmem:[#allocation16 + $0x3b8] sm:$0xff]  }
 0xadb   : > { %4936 = vmatprep.subr.bf16.mxu1 %v5335_v32  ;;  %4958 = vmatprep.subr.bf16.mxu0 %v5336_v35 }
 0xadc   : > { %4086 = vmatprep.mubr.bf16.mxu1 %v2852_v42  ;;  %4127 = vmatprep.mubr.bf16.mxu0 %v2854_v43 }
 0xadd   : > { %4087 = vmatmul.mubr.bf16.vlgmr.msra.gmra.mrb[52].mxu1 %v2851_v40  ;;  %4128 = vmatmul.mubr.bf16.vlgmr.msra.gmra.mrb[40].mxu0 %v2853_v41 }
 0xade   : > { %4937 = vmatpush3.bf16.msra.mxu1 %v5337_v44  ;;  %4959 = vmatpush3.bf16.msra.mxu0 %v5338_v53 }
 0xadf   : > { %4938 = vmatprep.subr.bf16.mxu1 %v5339_v54  ;;  %4960 = vmatprep.subr.bf16.mxu0 %v5340_v56  ;;  %v4631_v54 = vld [vmem:[%s6510_s14] ss:$0 sm:$0xff]  ;;  %s5615_s14 = scalar_lea.vmem %s5614_s16, 512 }
 0xae0   : > { %p5617_p7 = scmp.lt.s32.totalorder %s5615_s14, %s5609_s18 }
 0xae2   : > { %4939 = vmatpush3.bf16.msra.mxu1 %v5341_v57  ;;  %4961 = vmatpush3.bf16.msra.mxu0 %v5342_v58  ;;  %p5618_p5 = por %p5617_p7, %p5616_p0 }
 0xae3   : > { %4940 = vmatprep.subr.bf16.mxu1 %v5343_v59  ;;  %4962 = vmatprep.subr.bf16.mxu0 %v5344_v60 }
 0xae4   : > { %p5619_p11 = pnand %p5618_p5, %p5612_p9 }
 0xae6   : > { %4941 = vmatpush3.bf16.msra.mxu1 %v5345_v61  ;;  %4963 = vmatpush3.bf16.msra.mxu0 %v5346_v62 }
 0xae7   : > { %4942 = vmatprep.subr.bf16.mxu1 %v5347_v63  ;;  %4964 = vmatprep.subr.bf16.mxu0 %v5348_v2 }
 0xaea   : > { %4943 = vmatpush3.bf16.msra.mxu1 %v5349_v4  ;;  %4965 = vmatpush3.bf16.msra.mxu0 %v5350_v5 }
 0xaeb   : > { %4944 = vmatprep.subr.bf16.mxu1 %v5351_v8  ;;  %4966 = vmatprep.subr.bf16.mxu0 %v5352_v9 }
 0xaee   : > { %4945 = vmatpush3.bf16.msra.mxu1 %v5353_v48  ;;  %4967 = vmatpush3.bf16.msra.mxu0 %v5354_v10 }
 0xaef   : > { %4946 = vmatprep.subr.bf16.mxu1 %v5355_v11  ;;  %4968 = vmatprep.subr.bf16.mxu0 %v5356_v12 }
 0xaf2   : > { %v2759_v50 = vpop.f32.mrb[40].mxu1  ;;  %v2802_v18 = vpop.f32.mrb[28].mxu0  ;;  %4947 = vmatpush3.bf16.msra.mxu1 %v5357_v0  ;;  %4969 = vmatpush3.bf16.msra.mxu0 %v5358_v13 }
 0xaf3   : > { %v2760_v36 = vadd.f32 %v2759_v50, %v1798_v14  ;;  %v2803_v20 = vadd.f32 %v2802_v18, %v1806_v51  ;;  %v2761_v21 = vpop.f32.mrb[41].mxu1  ;;  %v2804_v47 = vpop.f32.mrb[29].mxu0  ;;  %4948 = vmatprep.subr.bf16.mxu1 %v5359_v34  ;;  %4970 = vmatprep.subr.bf16.mxu0 %v5360_v15 }
 0xaf4   : > { %v2762_v23 = vadd.f32 %v2761_v21, %v1802_v16  ;;  %v2805_v1 = vadd.f32 %v2804_v47, %v1810_v17  ;;  %v2763_v24 = vpop.f32.mrb[42].mxu1  ;;  %v2806_v33 = vpop.f32.mrb[30].mxu0 }
 0xaf5   : > { %v2764_v25 = vadd.f32 %v2763_v24, %v1798_v14  ;;  %v2807_v49 = vadd.f32 %v2806_v33, %v1806_v51  ;;  %v2765_v3 = vpop.f32.mrb[43].mxu1  ;;  %v2808_v26 = vpop.f32.mrb[31].mxu0  ;;  %v2823_v30 = vmax.f32 %v2760_v36, 0.0  ;;  %v2825_v31 = vmax.f32 %v2803_v20, 0.0 }
 0xaf6   : > { %v2766_v27 = vadd.f32 %v2765_v3, %v1802_v16  ;;  %v2809_v28 = vadd.f32 %v2808_v26, %v1810_v17  ;;  %4949 = vmatpush3.bf16.msra.mxu1 %v5361_v19  ;;  %4971 = vmatpush3.bf16.msra.mxu0 %v5362_v45  ;;  %v2824_v55 = vmax.f32 %v2762_v23, 0.0  ;;  %v2826_v37 = vmax.f32 %v2805_v1, 0.0 }
 0xaf7   : > { %v2839_v32 = vmax.f32 %v2764_v25, 0.0  ;;  %v2841_v35 = vmax.f32 %v2807_v49, 0.0  ;;  %4950 = vmatprep.subr.bf16.mxu1 %v5363_v22  ;;  %4972 = vmatprep.subr.bf16.mxu0 %v5364_v52 }
 0xaf8   : > { %v2840_v38 = vmax.f32 %v2766_v27, 0.0  ;;  %v2842_v39 = vmax.f32 %v2809_v28, 0.0 }
 0xaf9   : > { %v2855_v40 = vpack.c.bf16 %v2839_v32, %v2823_v30  ;;  %v2857_v41 = vpack.c.bf16 %v2841_v35, %v2825_v31 }
 0xafa   : > { %v2856_v42 = vpack.c.bf16 %v2840_v38, %v2824_v55  ;;  %v2858_v43 = vpack.c.bf16 %v2842_v39, %v2826_v37  ;;  %4951 = vmatpush3.bf16.msra.mxu1 %v5365_v7  ;;  %4973 = vmatpush3.bf16.msra.mxu0 %v5366_v29 }
 0xafc   : > { %4168 = vmatprep.mubr.bf16.mxu1 %v2856_v42  ;;  %4209 = vmatprep.mubr.bf16.mxu0 %v2858_v43 }
 0xafd   : > { %4169 = vmatmul.mubr.bf16.vlgmr.msra.gmra.mrb[56].mxu1 %v2855_v40  ;;  %4210 = vmatmul.mubr.bf16.vlgmr.msra.gmra.mrb[44].mxu0 %v2857_v41 }
 0xb70   : > { %v4820_v44 = vpop.f32.mrb[44].mxu1  ;;  %v4842_v53 = vpop.f32.mrb[32].mxu0 }
 0xb71   : > { %v4821_v56 = vpop.f32.mrb[45].mxu1  ;;  %v4843_v57 = vpop.f32.mrb[33].mxu0 }
 0xb72   : > { %v4822_v58 = vadd.f32 %v4821_v56, %v4820_v44  ;;  %v4844_v59 = vadd.f32 %v4843_v57, %v4842_v53  ;;  %v4823_v60 = vpop.f32.mrb[46].mxu1  ;;  %v4845_v61 = vpop.f32.mrb[34].mxu0 }
 0xb73   : > { %v4824_v62 = vpop.f32.mrb[47].mxu1  ;;  %v4846_v63 = vpop.f32.mrb[35].mxu0 }
 0xb74   : > { %v3925_v2 = vadd.f32 %v4822_v58, %v4631_v54  ;;  %v4825_v4 = vadd.f32 %v4824_v62, %v4823_v60  ;;  %v4847_v5 = vadd.f32 %v4846_v63, %v4845_v61 }
 0xb76   : > { %v3966_v8 = vadd.f32 %v4844_v59, %v3925_v2  ;;  %v3928_v9 = vadd.f32 %v4825_v4, %v4631_v54 }
 0xb78   : > { %v3969_v48 = vadd.f32 %v4847_v5, %v3928_v9 }
 0xb90   : > { %v4864_v10 = vpop.f32.mrb[48].mxu1  ;;  %v4886_v11 = vpop.f32.mrb[36].mxu0 }
 0xb91   : > { %v4865_v12 = vpop.f32.mrb[49].mxu1  ;;  %v4887_v0 = vpop.f32.mrb[37].mxu0 }
 0xb92   : > { %v4866_v13 = vadd.f32 %v4865_v12, %v4864_v10  ;;  %v4888_v14 = vadd.f32 %v4887_v0, %v4886_v11  ;;  %v4867_v51 = vpop.f32.mrb[50].mxu1  ;;  %v4889_v34 = vpop.f32.mrb[38].mxu0  ;;  %v4760_v11 = vld [vmem:[%s6512_s10] ss:$0 sm:$0xff] }
 0xb93   : > { %v4868_v15 = vpop.f32.mrb[51].mxu1  ;;  %v4890_v16 = vpop.f32.mrb[39].mxu0 }
 0xb94   : > { %v4007_v17 = vadd.f32 %v4866_v13, %v3966_v8  ;;  %v4869_v50 = vadd.f32 %v4868_v15, %v4867_v51  ;;  %v4891_v18 = vadd.f32 %v4890_v16, %v4889_v34  ;;  %v4761_v13 = vld [vmem:[%s6513_s9] ss:$0 sm:$0xff] }
 0xb96   : > { %v4048_v19 = vadd.f32 %v4888_v14, %v4007_v17  ;;  %v4010_v45 = vadd.f32 %v4869_v50, %v3969_v48 }
 0xb98   : > { %v4051_v36 = vadd.f32 %v4891_v18, %v4010_v45 }
 0xbb0   : > { %v4908_v20 = vpop.f32.mrb[52].mxu1  ;;  %v4930_v21 = vpop.f32.mrb[40].mxu0 }
 0xbb1   : > { %v4909_v47 = vpop.f32.mrb[53].mxu1  ;;  %v4931_v22 = vpop.f32.mrb[41].mxu0 }
 0xbb2   : > { %v4910_v52 = vadd.f32 %v4909_v47, %v4908_v20  ;;  %v4932_v23 = vadd.f32 %v4931_v22, %v4930_v21  ;;  %v4911_v1 = vpop.f32.mrb[54].mxu1  ;;  %v4933_v24 = vpop.f32.mrb[42].mxu0 }
 0xbb3   : > { %v4912_v33 = vpop.f32.mrb[55].mxu1  ;;  %v4934_v25 = vpop.f32.mrb[43].mxu0 }
 0xbb4   : > { %v4089_v49 = vadd.f32 %v4910_v52, %v4048_v19  ;;  %v4913_v3 = vadd.f32 %v4912_v33, %v4911_v1  ;;  %v4935_v26 = vadd.f32 %v4934_v25, %v4933_v24 }
 0xbb6   : > { %v4130_v27 = vadd.f32 %v4932_v23, %v4089_v49  ;;  %v4092_v28 = vadd.f32 %v4913_v3, %v4051_v36 }
 0xbb8   : > { %v4133_v7 = vadd.f32 %v4935_v26, %v4092_v28 }
 0xbd0   : > { %v4952_v29 = vpop.f32.mrb[56].mxu1  ;;  %v4974_v30 = vpop.f32.mrb[44].mxu0 }
 0xbd1   : > { %v4953_v31 = vpop.f32.mrb[57].mxu1  ;;  %v4975_v32 = vpop.f32.mrb[45].mxu0 }
 0xbd2   : > { %v4954_v35 = vadd.f32 %v4953_v31, %v4952_v29  ;;  %v4976_v55 = vadd.f32 %v4975_v32, %v4974_v30  ;;  %v4955_v37 = vpop.f32.mrb[58].mxu1  ;;  %v4977_v38 = vpop.f32.mrb[46].mxu0 }
 0xbd3   : > { %v4956_v39 = vpop.f32.mrb[59].mxu1  ;;  %v4978_v40 = vpop.f32.mrb[47].mxu0 }
 0xbd4   : > { %v4171_v41 = vadd.f32 %v4954_v35, %v4130_v27  ;;  %v4957_v42 = vadd.f32 %v4956_v39, %v4955_v37  ;;  %v4979_v43 = vadd.f32 %v4978_v40, %v4977_v38 }
 0xbd6   : > { %v4212_v44 = vadd.f32 %v4976_v55, %v4171_v41  ;;  %v4174_v53 = vadd.f32 %v4957_v42, %v4133_v7 }
 0xbd8   : > { %v4215_v54 = vadd.f32 %v4979_v43, %v4174_v53  ;;  %v4218_v56 = vadd.f32 %v4212_v44, %v6280_v6 }
 0xbda   : > { %4220 = vadd.xlane.f32.xlu0 %v4218_v56  ;;  %v4219_v57 = vadd.f32 %v4215_v54, %v6282_v46 }
 0xbdc   : > { %4222 = vadd.xlane.f32.xlu1 %v4219_v57 }
 0xc67   : > { %v4221_v58 = vpop.xlane.xlu0 %4220 }
 0xc68   : > { %v4224_v59 = vmul.f32 0.0078125, %v4221_v58 }
 0xc69   : > { %v4223_v60 = vpop.xlane.xlu1 %4222 }
 0xc6a   : > { %v4226_v61 = vsub.f32 %v4218_v56, %v4224_v59  ;;  %v4225_v62 = vmul.f32 0.0078125, %v4223_v60 }
 0xc6c   : > { %v4227_v63 = vsub.f32 %v4219_v57, %v4225_v62  ;;  %v4228_v2 = vmul.f32 %v4226_v61, %v4226_v61 }
 0xc6e   : > { %4230 = vadd.xlane.f32.xlu0 %v4228_v2  ;;  %v4229_v4 = vmul.f32 %v4227_v63, %v4227_v63 }
 0xc70   : > { %4232 = vadd.xlane.f32.xlu1 %v4229_v4 }
 0xcfb   : > { %v4231_v5 = vpop.xlane.xlu0 %4230 }
 0xcfc   : > { %v4234_v8 = vmul.f32 0.0078125, %v4231_v5 }
 0xcfd   : > { %v4233_v9 = vpop.xlane.xlu1 %4232 }
 0xcfe   : > { %v4236_v6 = vadd.f32 1e-05, %v4234_v8  ;;  %v4235_v48 = vmul.f32 0.0078125, %v4233_v9 }
 0xd00   : > { %5403 = vrsqrt.f32 %v4236_v6  ;;  %v4237_v46 = vadd.f32 1e-05, %v4235_v48 }
 0xd02   : > { %5405 = vrsqrt.f32 %v4237_v46 }
 0xd0a   : > { %v5404_v10 = vpop.eup %5403 }
 0xd0b   : > { %v4240_v12 = vmul.f32 %v5404_v10, %v4226_v61 }
 0xd0c   : > { %v5406_v0 = vpop.eup %5405 }
 0xd0d   : > { %v4249_v14 = vmul.f32 %v4760_v11, %v4240_v12  ;;  %v4241_v51 = vmul.f32 %v5406_v0, %v4227_v63 }
 0xd0f   : > { %v4258_v34 = vadd.f32 %v4761_v13, %v4249_v14  ;;  %v4250_v15 = vmul.f32 %v4760_v11, %v4241_v51 }
 0xd11   : > { %v4259_v16 = vadd.f32 %v4761_v13, %v4250_v15  ;;  %4260 = vst [vmem:[%s669_s19] sm:$0xff] %v4258_v34 }
 0xd13   : > { %4261 = vst [vmem:[%s669_s19 + $0x8] sm:$0xff] %v4259_v16 }
 0xd14   : > { %5622 = shalt.err (!%p5619_p11)
}
 0xd15   : > { %s5623_s11 = scalar_lea.hbm %s6378_s20, 256  ;;  %s5627_s10 = scalar_lea.hbm %s6514_s4, 512 }
 0xd16   : > { %p5624_p10 = scmp.ne.s32.totalorder %s6378_s20, %s5623_s11  ;;  %p5628_p1 = scmp.lt.u32.totalorder %s6378_s20, %s6514_s4 }
 0xd17   : > { %p5629_p12 = scmp.lt.u32.totalorder %s5627_s10, %s5623_s11  ;;  %p5631_p2 = scmp.lt.u32.totalorder %s5623_s11, %s6378_s20 }
 0xd18   : > { %p5625_p3 = pnand %p5624_p10, %p6515_p13 }
 0xd19   : > { %p5630_p6 = por %p5629_p12, %p5628_p1 }
 0xd1a   : > { %p5626_p8 = pneg %p5625_p3 }
 0xd1b   : > { %p5632_p4 = por %p5631_p2, %p5630_p6 }
 0xd1d   : > { %p5633_p9 = pnand %p5632_p4, %p5626_p8 }
 0xd1f   : > { %5636 = shalt.err (!%p5633_p9)
}
 0xd20   : > { %s5728_s9 = smov 128   ;;  %s5729_s0 = smov 8  }
 0xd21   : > { %5092 = dma.vmem_to_hbm [thread:$0]  (%p6515_p13), %s6380_s12, 256, %s6378_s20, %s4263_s6, %s5728_s9, %s5728_s9, %s5729_s0  }
 0xd22 PF: > { %s4293_s19 = sand.u32 1, %s5687_s21   ;;  %p6516_p0 = scmp.ne.s32.totalorder %s6493_s24, 0 }
 0xd23   : > { %p6517_p7 = scmp.ge.s32.totalorder %s5707_s26, 2  ;;  %s4294_s28 = scalar_lea.sflag [#allocation7], %s4293_s19 }
 0xd25   : > { %p5118_p5 = pnand %p6517_p7, %p6516_p0 }
 0xd27   : > { %5682 = dma.done.wait (!%p5118_p5), %s4294_s28, 256  }
 0xd28   : > { %5684 = vsyncadd (!%p5118_p5), %s4294_s28, 4294967040  ;;  %s37_s26 = sadd.s32 1, %s5707_s26   ;;  %s6518_s7 = sld [smem:[#allocation25_spill]] }
 0xd29   : > { %p34_p11 = scmp.ge.s32.totalorder %s37_s26, 4   ;;  %s6519_s21 = smov %s5691_s22 }
 0xd2a   : > { %s6520_s22 = smov %s5695_s23  ;;  %s6521_s23 = smov %s6015_s13 }
 0xd2b   : > { %s6522_s24 = smov %s5703_s25  ;;  %36 = sbr.rel (!%p34_p11) target bundleno = 26 (0x1a), region = 166 }
 0xd2e   : > { %s6523_s25 = smov %s6518_s7 }
 0xd32   :  { %4299 = vsyncpa [#allocation6], 1 }
 0xd33   :  { %4301 = vsyncpa [#allocation6 + $0x1], 1 }
 0xd34   :  { %4302 = vsyncpa [#allocation9], 1 }
 0xd35   :  { %4304 = vsyncpa [#allocation9 + $0x1], 1 }
 0xd36   :  { %4305 = vsyncpa [#allocation12], 1 }
 0xd37   :  { %4306 = vsyncpa [#allocation15], 1 }
 0xd38   :  { %4307 = vsyncpa [#allocation7], 1 }
 0xd39   :  { %4309 = vsyncpa [#allocation7 + $0x1], 1 }

</bundles_post_ra>
